<compile_context>
chip_gen: v7x
topology: tpu7x:2x2x1
jax: 0.10.0
libtpu: 0.0.40
codegen_flags: <defaults>
</compile_context>

<pallas_src>
import numpy as np
import jax
import jax.numpy as jnp
from jax.experimental import pallas as pl
from jax.experimental.pallas import tpu as pltpu

NUM_QUBITS = 4          # fixed by the k[i,j,k,l] indexing in VQC.forward
VQC_DEPTH = 3
DIM = 2 ** NUM_QUBITS   # 16
EDIM = 2 * DIM          # 32: real-embedded dimension ([re | im])

NUM_ANGLES = NUM_QUBITS + VQC_DEPTH * 3 * NUM_QUBITS        # 40
NUM_GATES = NUM_QUBITS + VQC_DEPTH * (1 + 3 * NUM_QUBITS)   # 43 (CNOT ring folded)
N_SCRATCH = (NUM_GATES + 1) // 2                            # 22 level-1 slots

# Constant-stack layout (indices into the (NC, 32, 32) VMEM constant input).
IDX_EYE = 0
IDX_S_RX = 1                       # 1..4   (per qubit)
IDX_S_RY = IDX_S_RX + NUM_QUBITS   # 5..8
IDX_S_RZ = IDX_S_RY + NUM_QUBITS   # 9..12
IDX_CNOT_LAYER = IDX_S_RZ + NUM_QUBITS  # 13
NUM_CONSTS = IDX_CNOT_LAYER + 1    # 14


# ----------------------------------------------------------------------------
# Host-side numpy constants (parameter-independent).
# ----------------------------------------------------------------------------
_I2 = np.eye(2)
_X2 = np.array([[0.0, 1.0], [1.0, 0.0]])
_Z2 = np.array([[1.0, 0.0], [0.0, -1.0]])
_YR2 = np.array([[0.0, -1.0], [1.0, 0.0]])   # -i * Y (real)


def _full_real(op2, n):
    """Full-register 16x16 real matrix of real 2x2 op on qubit n (qubit 0 = MSB)."""
    m = np.array([[1.0]])
    for q in range(NUM_QUBITS):
        m = np.kron(m, op2 if q == n else _I2)
    return m


def _cnot_full_real(ctrl, tgt):
    p0 = np.array([[1.0, 0.0], [0.0, 0.0]])
    p1 = np.array([[0.0, 0.0], [0.0, 1.0]])
    m0 = np.array([[1.0]])
    m1 = np.array([[1.0]])
    for q in range(NUM_QUBITS):
        m0 = np.kron(m0, p0 if q == ctrl else _I2)
        m1 = np.kron(m1, p1 if q == ctrl else (_X2 if q == tgt else _I2))
    return m0 + m1


def _embed_T(ur, ui):
    """Real 32x32 embedding of complex U = Ur + i*Ui in the row convention:
    row' = row @ [[Ur^T, Ui^T], [-Ui^T, Ur^T]]  with row = [Re(s)^T | Im(s)^T]."""
    return np.block([[ur.T, ui.T], [-ui.T, ur.T]]).astype(np.float32)


def _build_consts():
    z16 = np.zeros((DIM, DIM))
    consts = [np.eye(EDIM, dtype=np.float32)]                       # IDX_EYE
    # Rotation gate on qubit n:  E_T(gate) = cos(th/2)*I32 + sin(th/2)*S.
    for n in range(NUM_QUBITS):                                     # RX: U = cI - isX
        consts.append(_embed_T(z16, -_full_real(_X2, n)))
    for n in range(NUM_QUBITS):                                     # RY: U = cI + s(-iY)
        consts.append(_embed_T(_full_real(_YR2, n), z16))
    for n in range(NUM_QUBITS):                                     # RZ: U = cI - isZ
        consts.append(_embed_T(z16, -_full_real(_Z2, n)))
    # One full CNOT-ring layer (parameter independent): applied in order
    # CNOT(0,1), CNOT(1,2), CNOT(2,3), CNOT(3,0)  ->  product of embeddings.
    cl = np.eye(EDIM)
    for n in range(NUM_QUBITS):
        cl = cl @ _embed_T(_cnot_full_real(n, (n + 1) % NUM_QUBITS), z16)
    consts.append(cl.astype(np.float32))                            # IDX_CNOT_LAYER
    out = np.stack(consts).astype(np.float32)
    assert out.shape == (NUM_CONSTS, EDIM, EDIM)
    return out


def _build_sel():
    """(32,3): out_j = re_kj^2 + im_kj^2 for amplitudes k = (0, 2, 15)."""
    sel = np.zeros((EDIM, 3), dtype=np.float32)
    for j, k in enumerate((0, 2, 15)):   # k[0,0,0,0], k[0,0,1,0], k[1,1,1,1]
        sel[k, j] = 1.0
        sel[k + DIM, j] = 1.0
    return sel


_CONSTS_NP = _build_consts()
_SEL_NP = _build_sel()


def _gate_specs():
    """Trace-time gate descriptors in application order.
    ('rot', angle_idx, const_idx) or ('const', const_idx)."""
    specs = []
    a = 0
    for n in range(NUM_QUBITS):                          # RX(psi) encoding
        specs.append(("rot", a, IDX_S_RX + n)); a += 1
    for _ in range(VQC_DEPTH):
        specs.append(("const", IDX_CNOT_LAYER))          # folded CNOT ring
        for n in range(NUM_QUBITS):
            specs.append(("rot", a, IDX_S_RX + n)); a += 1
            specs.append(("rot", a, IDX_S_RY + n)); a += 1
            specs.append(("rot", a, IDX_S_RZ + n)); a += 1
    assert len(specs) == NUM_GATES and a == NUM_ANGLES
    return specs


_SPECS = _gate_specs()


# ----------------------------------------------------------------------------
# Pallas kernel: in-kernel gate assembly + balanced-tree composition + readout.
# ----------------------------------------------------------------------------
def vqc_kernel(cs_ref, sn_ref, consts_ref, sel_ref, out_ref, buf):
    eye = consts_ref[IDX_EYE]                                  # (32, 32)

    def make_gate(spec):
        if spec[0] == "const":
            return consts_ref[spec[1]]
        _, ai, si = spec
        # gate = cos(theta/2) * I + sin(theta/2) * S   (real 32x32 embedding)
        return cs_ref[ai] * eye + sn_ref[ai] * consts_ref[si]

    # Level 1: pair adjacent gates (order preserved: T = G0 G1 ... G42).
    n_pairs = NUM_GATES // 2                                   # 21
    for j in range(n_pairs):
        buf[j] = jnp.dot(make_gate(_SPECS[2 * j]), make_gate(_SPECS[2 * j + 1]),
                         preferred_element_type=jnp.float32)
    live = list(range(n_pairs))
    if NUM_GATES % 2:                                          # trailing odd gate
        buf[n_pairs] = make_gate(_SPECS[-1])
        live.append(n_pairs)                                   # 22 live items

    # Levels 2..: pairwise in-place halving (write slot a reads only a, b >= a).
    # Odd counts: last item passes through at trace time (no copy, no dot).
    while len(live) > 3:                                       # 22 -> 11 -> 6 -> 3
        nxt = []
        for j in range(len(live) // 2):
            a, b = live[2 * j], live[2 * j + 1]
            buf[a] = jnp.dot(buf[a], buf[b], preferred_element_type=jnp.float32)
            nxt.append(a)
        if len(live) % 2:
            nxt.append(live[-1])
        live = nxt

    # Row-vector finish: initial state |0..0> is e0 in the [re|im] embedding,
    # so only row 0 of the composed matrix is needed.
    row = buf[live[0]][0:1, :]                                 # (1, 32)
    for idx in live[1:]:
        row = jnp.dot(row, buf[idx], preferred_element_type=jnp.float32)

    sq = row * row                                             # (1, 32) re^2 / im^2
    # out_j = |amp_kj|^2 via the baked (32,3) selection constant.
    out_ref[...] = jnp.dot(sq, sel_ref[...], preferred_element_type=jnp.float32)


@jax.jit
def vqc_forward(psi, params_rx, params_ry, params_rz):
    """Equivalent of VQC.forward(ring_tensors=|0..0>, psi, hamiltonian=None)."""
    # Angles flattened in gate-application order: psi, then (rx, ry, rz) per
    # (depth, qubit).  Only this tiny cos/sin fusion runs in XLA.
    per_depth = jnp.stack([params_rx, params_ry, params_rz], axis=-1)   # (d, n, 3)
    angles = jnp.concatenate(
        [psi.reshape(-1), per_depth.reshape(-1)]).astype(jnp.float32)   # (40,)
    half = 0.5 * angles
    cs = jnp.cos(half)
    sn = jnp.sin(half)

    consts = jnp.asarray(_CONSTS_NP)        # (14, 32, 32) baked constant
    sel = jnp.asarray(_SEL_NP)              # (32, 3) baked constant

    return pl.pallas_call(
        vqc_kernel,
        out_shape=jax.ShapeDtypeStruct((1, 3), jnp.float32),
        in_specs=[
            pl.BlockSpec(memory_space=pltpu.MemorySpace.SMEM),   # cos(theta/2)
            pl.BlockSpec(memory_space=pltpu.MemorySpace.SMEM),   # sin(theta/2)
            pl.BlockSpec(memory_space=pltpu.MemorySpace.VMEM),   # constant stack
            pl.BlockSpec(memory_space=pltpu.MemorySpace.VMEM),   # readout selector
        ],
        out_specs=pl.BlockSpec(memory_space=pltpu.MemorySpace.VMEM),
        scratch_shapes=[pltpu.VMEM((N_SCRATCH, EDIM, EDIM), jnp.float32)],
    )(cs, sn, consts, sel)


# ----------------------------------------------------------------------------
# Plain-numpy reference for verification (unfolded, complex, float64).
# ----------------------------------------------------------------------------
def _rx(theta):
    c, s = np.cos(theta / 2.0), np.sin(theta / 2.0)
    return np.array([[c, -1j * s], [-1j * s, c]], dtype=np.complex128)


def _ry(theta):
    c, s = np.cos(theta / 2.0), np.sin(theta / 2.0)
    return np.array([[c, -s], [s, c]], dtype=np.complex128)


def _rz(theta):
    return np.array([[np.exp(-1j * theta / 2.0), 0.0],
                     [0.0, np.exp(1j * theta / 2.0)]], dtype=np.complex128)


def _single_qubit_full(g, n):
    m = np.array([[1.0]], dtype=np.complex128)
    eye = np.eye(2, dtype=np.complex128)
    for q in range(NUM_QUBITS):            # qubit 0 = most significant bit
        m = np.kron(m, g if q == n else eye)
    return m


def vqc_reference(psi, params_rx, params_ry, params_rz):
    gates = []
    for n in range(NUM_QUBITS):
        gates.append(_single_qubit_full(_rx(psi[n]), n))
    for d in range(VQC_DEPTH):
        for n in range(NUM_QUBITS):
            gates.append(_cnot_full_real(n, (n + 1) % NUM_QUBITS).astype(np.complex128))
        for n in range(NUM_QUBITS):
            gates.append(_single_qubit_full(_rx(params_rx[d, n]), n))
            gates.append(_single_qubit_full(_ry(params_ry[d, n]), n))
            gates.append(_single_qubit_full(_rz(params_rz[d, n]), n))
    state = np.zeros((DIM,), dtype=np.complex128)
    state[0] = 1.0
    for g in gates:
        state = g @ state
    k = state.reshape((2,) * NUM_QUBITS)
    return np.array([[abs(k[0, 0, 0, 0]) ** 2,
                      abs(k[0, 0, 1, 0]) ** 2,
                      abs(k[1, 1, 1, 1]) ** 2]], dtype=np.float32)


if __name__ == "__main__":
    key = jax.random.PRNGKey(0)
    k1, k2, k3, k4 = jax.random.split(key, 4)
    # nn.Parameter(torch.randn(vqc_depth, num_qubits)) equivalents:
    params_rx = jax.random.normal(k1, (VQC_DEPTH, NUM_QUBITS), dtype=jnp.float32)
    params_ry = jax.random.normal(k2, (VQC_DEPTH, NUM_QUBITS), dtype=jnp.float32)
    params_rz = jax.random.normal(k3, (VQC_DEPTH, NUM_QUBITS), dtype=jnp.float32)
    # psi: one encoding angle per qubit.
    psi = jax.random.normal(k4, (NUM_QUBITS,), dtype=jnp.float32)

    out = vqc_forward(psi, params_rx, params_ry, params_rz)
    out = jax.block_until_ready(out)
    assert out.shape == (1, 3), out.shape

    ref = vqc_reference(
        np.asarray(jax.device_get(psi), dtype=np.float64),
        np.asarray(jax.device_get(params_rx), dtype=np.float64),
        np.asarray(jax.device_get(params_ry), dtype=np.float64),
        np.asarray(jax.device_get(params_rz), dtype=np.float64),
    )
    np.testing.assert_allclose(np.asarray(out), ref, rtol=2e-3, atol=2e-5)

    print("KERNEL_OK")
</pallas_src>

<mosaic_0001>
module attributes {stable_mosaic.version = 11 : i64} {
  func.func @vqc_kernel(%arg0: memref<40xf32, #tpu.memory_space<smem>>, %arg1: memref<40xf32, #tpu.memory_space<smem>>, %arg2: memref<14x32x32xf32, #tpu.memory_space<vmem>>, %arg3: memref<32x3xf32, #tpu.memory_space<vmem>>, %arg4: memref<1x3xf32, #tpu.memory_space<vmem>>, %arg5: memref<22x32x32xf32, #tpu.memory_space<vmem>>) attributes {dimension_semantics = [], scalar_prefetch = 0 : i64, scratch_operands = 1 : i64, tpu.core_type = #tpu.core_type<tc>} {
    %c0 = arith.constant 0 : index
    %c0_0 = arith.constant 0 : index
    %c0_1 = arith.constant 0 : index
    %0 = vector.load %arg2[%c0, %c0_0, %c0_1] : memref<14x32x32xf32, #tpu.memory_space<vmem>>, vector<1x32x32xf32>
    %1 = vector.shape_cast %0 : vector<1x32x32xf32> to vector<32x32xf32>
    %c0_2 = arith.constant 0 : index
    %2 = memref.load %arg0[%c0_2] : memref<40xf32, #tpu.memory_space<smem>>
    %3 = vector.broadcast %2 : f32 to vector<32x32xf32>
    %4 = arith.mulf %3, %1 : vector<32x32xf32>
    %c0_3 = arith.constant 0 : index
    %5 = memref.load %arg1[%c0_3] : memref<40xf32, #tpu.memory_space<smem>>
    %c1 = arith.constant 1 : index
    %c0_4 = arith.constant 0 : index
    %c0_5 = arith.constant 0 : index
    %6 = vector.load %arg2[%c1, %c0_4, %c0_5] : memref<14x32x32xf32, #tpu.memory_space<vmem>>, vector<1x32x32xf32>
    %7 = vector.shape_cast %6 : vector<1x32x32xf32> to vector<32x32xf32>
    %8 = vector.broadcast %5 : f32 to vector<32x32xf32>
    %9 = arith.mulf %8, %7 : vector<32x32xf32>
    %10 = arith.addf %4, %9 : vector<32x32xf32>
    %c1_6 = arith.constant 1 : index
    %11 = memref.load %arg0[%c1_6] : memref<40xf32, #tpu.memory_space<smem>>
    %12 = vector.broadcast %11 : f32 to vector<32x32xf32>
    %13 = arith.mulf %12, %1 : vector<32x32xf32>
    %c1_7 = arith.constant 1 : index
    %14 = memref.load %arg1[%c1_7] : memref<40xf32, #tpu.memory_space<smem>>
    %c2 = arith.constant 2 : index
    %c0_8 = arith.constant 0 : index
    %c0_9 = arith.constant 0 : index
    %15 = vector.load %arg2[%c2, %c0_8, %c0_9] : memref<14x32x32xf32, #tpu.memory_space<vmem>>, vector<1x32x32xf32>
    %16 = vector.shape_cast %15 : vector<1x32x32xf32> to vector<32x32xf32>
    %17 = vector.broadcast %14 : f32 to vector<32x32xf32>
    %18 = arith.mulf %17, %16 : vector<32x32xf32>
    %19 = arith.addf %13, %18 : vector<32x32xf32>
    %cst = arith.constant dense<0.000000e+00> : vector<32x32xf32>
    %20 = tpu.matmul %10, %19, %cst {dimension_numbers = #tpu.dot_dimension_numbers<[1], [0], [0], [1], [0, 0, 1, 1], [], []>} : vector<32x32xf32>, vector<32x32xf32>, vector<32x32xf32> -> vector<32x32xf32>
    %c0_10 = arith.constant 0 : index
    %c0_11 = arith.constant 0 : index
    %c0_12 = arith.constant 0 : index
    %21 = vector.load %arg5[%c0_10, %c0_11, %c0_12] : memref<22x32x32xf32, #tpu.memory_space<vmem>>, vector<1x32x32xf32>
    %22 = vector.shape_cast %21 : vector<1x32x32xf32> to vector<32x32xf32>
    %23 = vector.shape_cast %20 : vector<32x32xf32> to vector<1x32x32xf32>
    tpu.vector_store %arg5[%c0_10, %c0_11, %c0_12], %23 {strides = array<i32>} : memref<22x32x32xf32, #tpu.memory_space<vmem>>, vector<1x32x32xf32>,
    %c2_13 = arith.constant 2 : index
    %24 = memref.load %arg0[%c2_13] : memref<40xf32, #tpu.memory_space<smem>>
    %25 = vector.broadcast %24 : f32 to vector<32x32xf32>
    %26 = arith.mulf %25, %1 : vector<32x32xf32>
    %c2_14 = arith.constant 2 : index
    %27 = memref.load %arg1[%c2_14] : memref<40xf32, #tpu.memory_space<smem>>
    %c3 = arith.constant 3 : index
    %c0_15 = arith.constant 0 : index
    %c0_16 = arith.constant 0 : index
    %28 = vector.load %arg2[%c3, %c0_15, %c0_16] : memref<14x32x32xf32, #tpu.memory_space<vmem>>, vector<1x32x32xf32>
    %29 = vector.shape_cast %28 : vector<1x32x32xf32> to vector<32x32xf32>
    %30 = vector.broadcast %27 : f32 to vector<32x32xf32>
    %31 = arith.mulf %30, %29 : vector<32x32xf32>
    %32 = arith.addf %26, %31 : vector<32x32xf32>
    %c3_17 = arith.constant 3 : index
    %33 = memref.load %arg0[%c3_17] : memref<40xf32, #tpu.memory_space<smem>>
    %34 = vector.broadcast %33 : f32 to vector<32x32xf32>
    %35 = arith.mulf %34, %1 : vector<32x32xf32>
    %c3_18 = arith.constant 3 : index
    %36 = memref.load %arg1[%c3_18] : memref<40xf32, #tpu.memory_space<smem>>
    %c4 = arith.constant 4 : index
    %c0_19 = arith.constant 0 : index
    %c0_20 = arith.constant 0 : index
    %37 = vector.load %arg2[%c4, %c0_19, %c0_20] : memref<14x32x32xf32, #tpu.memory_space<vmem>>, vector<1x32x32xf32>
    %38 = vector.shape_cast %37 : vector<1x32x32xf32> to vector<32x32xf32>
    %39 = vector.broadcast %36 : f32 to vector<32x32xf32>
    %40 = arith.mulf %39, %38 : vector<32x32xf32>
    %41 = arith.addf %35, %40 : vector<32x32xf32>
    %cst_21 = arith.constant dense<0.000000e+00> : vector<32x32xf32>
    %42 = tpu.matmul %32, %41, %cst_21 {dimension_numbers = #tpu.dot_dimension_numbers<[1], [0], [0], [1], [0, 0, 1, 1], [], []>} : vector<32x32xf32>, vector<32x32xf32>, vector<32x32xf32> -> vector<32x32xf32>
    %c1_22 = arith.constant 1 : index
    %c0_23 = arith.constant 0 : index
    %c0_24 = arith.constant 0 : index
    %43 = vector.load %arg5[%c1_22, %c0_23, %c0_24] : memref<22x32x32xf32, #tpu.memory_space<vmem>>, vector<1x32x32xf32>
    %44 = vector.shape_cast %43 : vector<1x32x32xf32> to vector<32x32xf32>
    %45 = vector.shape_cast %42 : vector<32x32xf32> to vector<1x32x32xf32>
    tpu.vector_store %arg5[%c1_22, %c0_23, %c0_24], %45 {strides = array<i32>} : memref<22x32x32xf32, #tpu.memory_space<vmem>>, vector<1x32x32xf32>,
    %c13 = arith.constant 13 : index
    %c0_25 = arith.constant 0 : index
    %c0_26 = arith.constant 0 : index
    %46 = vector.load %arg2[%c13, %c0_25, %c0_26] : memref<14x32x32xf32, #tpu.memory_space<vmem>>, vector<1x32x32xf32>
    %47 = vector.shape_cast %46 : vector<1x32x32xf32> to vector<32x32xf32>
    %c4_27 = arith.constant 4 : index
    %48 = memref.load %arg0[%c4_27] : memref<40xf32, #tpu.memory_space<smem>>
    %49 = vector.broadcast %48 : f32 to vector<32x32xf32>
    %50 = arith.mulf %49, %1 : vector<32x32xf32>
    %c4_28 = arith.constant 4 : index
    %51 = memref.load %arg1[%c4_28] : memref<40xf32, #tpu.memory_space<smem>>
    %c1_29 = arith.constant 1 : index
    %c0_30 = arith.constant 0 : index
    %c0_31 = arith.constant 0 : index
    %52 = vector.load %arg2[%c1_29, %c0_30, %c0_31] : memref<14x32x32xf32, #tpu.memory_space<vmem>>, vector<1x32x32xf32>
    %53 = vector.shape_cast %52 : vector<1x32x32xf32> to vector<32x32xf32>
    %54 = vector.broadcast %51 : f32 to vector<32x32xf32>
    %55 = arith.mulf %54, %53 : vector<32x32xf32>
    %56 = arith.addf %50, %55 : vector<32x32xf32>
    %cst_32 = arith.constant dense<0.000000e+00> : vector<32x32xf32>
    %57 = tpu.matmul %47, %56, %cst_32 {dimension_numbers = #tpu.dot_dimension_numbers<[1], [0], [0], [1], [0, 0, 1, 1], [], []>} : vector<32x32xf32>, vector<32x32xf32>, vector<32x32xf32> -> vector<32x32xf32>
    %c2_33 = arith.constant 2 : index
    %c0_34 = arith.constant 0 : index
    %c0_35 = arith.constant 0 : index
    %58 = vector.load %arg5[%c2_33, %c0_34, %c0_35] : memref<22x32x32xf32, #tpu.memory_space<vmem>>, vector<1x32x32xf32>
    %59 = vector.shape_cast %58 : vector<1x32x32xf32> to vector<32x32xf32>
    %60 = vector.shape_cast %57 : vector<32x32xf32> to vector<1x32x32xf32>
    tpu.vector_store %arg5[%c2_33, %c0_34, %c0_35], %60 {strides = array<i32>} : memref<22x32x32xf32, #tpu.memory_space<vmem>>, vector<1x32x32xf32>,
    %c5 = arith.constant 5 : index
    %61 = memref.load %arg0[%c5] : memref<40xf32, #tpu.memory_space<smem>>
    %62 = vector.broadcast %61 : f32 to vector<32x32xf32>
    %63 = arith.mulf %62, %1 : vector<32x32xf32>
    %c5_36 = arith.constant 5 : index
    %64 = memref.load %arg1[%c5_36] : memref<40xf32, #tpu.memory_space<smem>>
    %c5_37 = arith.constant 5 : index
    %c0_38 = arith.constant 0 : index
    %c0_39 = arith.constant 0 : index
    %65 = vector.load %arg2[%c5_37, %c0_38, %c0_39] : memref<14x32x32xf32, #tpu.memory_space<vmem>>, vector<1x32x32xf32>
    %66 = vector.shape_cast %65 : vector<1x32x32xf32> to vector<32x32xf32>
    %67 = vector.broadcast %64 : f32 to vector<32x32xf32>
    %68 = arith.mulf %67, %66 : vector<32x32xf32>
    %69 = arith.addf %63, %68 : vector<32x32xf32>
    %c6 = arith.constant 6 : index
    %70 = memref.load %arg0[%c6] : memref<40xf32, #tpu.memory_space<smem>>
    %71 = vector.broadcast %70 : f32 to vector<32x32xf32>
    %72 = arith.mulf %71, %1 : vector<32x32xf32>
    %c6_40 = arith.constant 6 : index
    %73 = memref.load %arg1[%c6_40] : memref<40xf32, #tpu.memory_space<smem>>
    %c9 = arith.constant 9 : index
    %c0_41 = arith.constant 0 : index
    %c0_42 = arith.constant 0 : index
    %74 = vector.load %arg2[%c9, %c0_41, %c0_42] : memref<14x32x32xf32, #tpu.memory_space<vmem>>, vector<1x32x32xf32>
    %75 = vector.shape_cast %74 : vector<1x32x32xf32> to vector<32x32xf32>
    %76 = vector.broadcast %73 : f32 to vector<32x32xf32>
    %77 = arith.mulf %76, %75 : vector<32x32xf32>
    %78 = arith.addf %72, %77 : vector<32x32xf32>
    %cst_43 = arith.constant dense<0.000000e+00> : vector<32x32xf32>
    %79 = tpu.matmul %69, %78, %cst_43 {dimension_numbers = #tpu.dot_dimension_numbers<[1], [0], [0], [1], [0, 0, 1, 1], [], []>} : vector<32x32xf32>, vector<32x32xf32>, vector<32x32xf32> -> vector<32x32xf32>
    %c3_44 = arith.constant 3 : index
    %c0_45 = arith.constant 0 : index
    %c0_46 = arith.constant 0 : index
    %80 = vector.load %arg5[%c3_44, %c0_45, %c0_46] : memref<22x32x32xf32, #tpu.memory_space<vmem>>, vector<1x32x32xf32>
    %81 = vector.shape_cast %80 : vector<1x32x32xf32> to vector<32x32xf32>
    %82 = vector.shape_cast %79 : vector<32x32xf32> to vector<1x32x32xf32>
    tpu.vector_store %arg5[%c3_44, %c0_45, %c0_46], %82 {strides = array<i32>} : memref<22x32x32xf32, #tpu.memory_space<vmem>>, vector<1x32x32xf32>,
    %c7 = arith.constant 7 : index
    %83 = memref.load %arg0[%c7] : memref<40xf32, #tpu.memory_space<smem>>
    %84 = vector.broadcast %83 : f32 to vector<32x32xf32>
    %85 = arith.mulf %84, %1 : vector<32x32xf32>
    %c7_47 = arith.constant 7 : index
    %86 = memref.load %arg1[%c7_47] : memref<40xf32, #tpu.memory_space<smem>>
    %c2_48 = arith.constant 2 : index
    %c0_49 = arith.constant 0 : index
    %c0_50 = arith.constant 0 : index
    %87 = vector.load %arg2[%c2_48, %c0_49, %c0_50] : memref<14x32x32xf32, #tpu.memory_space<vmem>>, vector<1x32x32xf32>
    %88 = vector.shape_cast %87 : vector<1x32x32xf32> to vector<32x32xf32>
    %89 = vector.broadcast %86 : f32 to vector<32x32xf32>
    %90 = arith.mulf %89, %88 : vector<32x32xf32>
    %91 = arith.addf %85, %90 : vector<32x32xf32>
    %c8 = arith.constant 8 : index
    %92 = memref.load %arg0[%c8] : memref<40xf32, #tpu.memory_space<smem>>
    %93 = vector.broadcast %92 : f32 to vector<32x32xf32>
    %94 = arith.mulf %93, %1 : vector<32x32xf32>
    %c8_51 = arith.constant 8 : index
    %95 = memref.load %arg1[%c8_51] : memref<40xf32, #tpu.memory_space<smem>>
    %c6_52 = arith.constant 6 : index
    %c0_53 = arith.constant 0 : index
    %c0_54 = arith.constant 0 : index
    %96 = vector.load %arg2[%c6_52, %c0_53, %c0_54] : memref<14x32x32xf32, #tpu.memory_space<vmem>>, vector<1x32x32xf32>
    %97 = vector.shape_cast %96 : vector<1x32x32xf32> to vector<32x32xf32>
    %98 = vector.broadcast %95 : f32 to vector<32x32xf32>
    %99 = arith.mulf %98, %97 : vector<32x32xf32>
    %100 = arith.addf %94, %99 : vector<32x32xf32>
    %cst_55 = arith.constant dense<0.000000e+00> : vector<32x32xf32>
    %101 = tpu.matmul %91, %100, %cst_55 {dimension_numbers = #tpu.dot_dimension_numbers<[1], [0], [0], [1], [0, 0, 1, 1], [], []>} : vector<32x32xf32>, vector<32x32xf32>, vector<32x32xf32> -> vector<32x32xf32>
    %c4_56 = arith.constant 4 : index
    %c0_57 = arith.constant 0 : index
    %c0_58 = arith.constant 0 : index
    %102 = vector.load %arg5[%c4_56, %c0_57, %c0_58] : memref<22x32x32xf32, #tpu.memory_space<vmem>>, vector<1x32x32xf32>
    %103 = vector.shape_cast %102 : vector<1x32x32xf32> to vector<32x32xf32>
    %104 = vector.shape_cast %101 : vector<32x32xf32> to vector<1x32x32xf32>
    tpu.vector_store %arg5[%c4_56, %c0_57, %c0_58], %104 {strides = array<i32>} : memref<22x32x32xf32, #tpu.memory_space<vmem>>, vector<1x32x32xf32>,
    %c9_59 = arith.constant 9 : index
    %105 = memref.load %arg0[%c9_59] : memref<40xf32, #tpu.memory_space<smem>>
    %106 = vector.broadcast %105 : f32 to vector<32x32xf32>
    %107 = arith.mulf %106, %1 : vector<32x32xf32>
    %c9_60 = arith.constant 9 : index
    %108 = memref.load %arg1[%c9_60] : memref<40xf32, #tpu.memory_space<smem>>
    %c10 = arith.constant 10 : index
    %c0_61 = arith.constant 0 : index
    %c0_62 = arith.constant 0 : index
    %109 = vector.load %arg2[%c10, %c0_61, %c0_62] : memref<14x32x32xf32, #tpu.memory_space<vmem>>, vector<1x32x32xf32>
    %110 = vector.shape_cast %109 : vector<1x32x32xf32> to vector<32x32xf32>
    %111 = vector.broadcast %108 : f32 to vector<32x32xf32>
    %112 = arith.mulf %111, %110 : vector<32x32xf32>
    %113 = arith.addf %107, %112 : vector<32x32xf32>
    %c10_63 = arith.constant 10 : index
    %114 = memref.load %arg0[%c10_63] : memref<40xf32, #tpu.memory_space<smem>>
    %115 = vector.broadcast %114 : f32 to vector<32x32xf32>
    %116 = arith.mulf %115, %1 : vector<32x32xf32>
    %c10_64 = arith.constant 10 : index
    %117 = memref.load %arg1[%c10_64] : memref<40xf32, #tpu.memory_space<smem>>
    %c3_65 = arith.constant 3 : index
    %c0_66 = arith.constant 0 : index
    %c0_67 = arith.constant 0 : index
    %118 = vector.load %arg2[%c3_65, %c0_66, %c0_67] : memref<14x32x32xf32, #tpu.memory_space<vmem>>, vector<1x32x32xf32>
    %119 = vector.shape_cast %118 : vector<1x32x32xf32> to vector<32x32xf32>
    %120 = vector.broadcast %117 : f32 to vector<32x32xf32>
    %121 = arith.mulf %120, %119 : vector<32x32xf32>
    %122 = arith.addf %116, %121 : vector<32x32xf32>
    %cst_68 = arith.constant dense<0.000000e+00> : vector<32x32xf32>
    %123 = tpu.matmul %113, %122, %cst_68 {dimension_numbers = #tpu.dot_dimension_numbers<[1], [0], [0], [1], [0, 0, 1, 1], [], []>} : vector<32x32xf32>, vector<32x32xf32>, vector<32x32xf32> -> vector<32x32xf32>
    %c5_69 = arith.constant 5 : index
    %c0_70 = arith.constant 0 : index
    %c0_71 = arith.constant 0 : index
    %124 = vector.load %arg5[%c5_69, %c0_70, %c0_71] : memref<22x32x32xf32, #tpu.memory_space<vmem>>, vector<1x32x32xf32>
    %125 = vector.shape_cast %124 : vector<1x32x32xf32> to vector<32x32xf32>
    %126 = vector.shape_cast %123 : vector<32x32xf32> to vector<1x32x32xf32>
    tpu.vector_store %arg5[%c5_69, %c0_70, %c0_71], %126 {strides = array<i32>} : memref<22x32x32xf32, #tpu.memory_space<vmem>>, vector<1x32x32xf32>,
    %c11 = arith.constant 11 : index
    %127 = memref.load %arg0[%c11] : memref<40xf32, #tpu.memory_space<smem>>
    %128 = vector.broadcast %127 : f32 to vector<32x32xf32>
    %129 = arith.mulf %128, %1 : vector<32x32xf32>
    %c11_72 = arith.constant 11 : index
    %130 = memref.load %arg1[%c11_72] : memref<40xf32, #tpu.memory_space<smem>>
    %c7_73 = arith.constant 7 : index
    %c0_74 = arith.constant 0 : index
    %c0_75 = arith.constant 0 : index
    %131 = vector.load %arg2[%c7_73, %c0_74, %c0_75] : memref<14x32x32xf32, #tpu.memory_space<vmem>>, vector<1x32x32xf32>
    %132 = vector.shape_cast %131 : vector<1x32x32xf32> to vector<32x32xf32>
    %133 = vector.broadcast %130 : f32 to vector<32x32xf32>
    %134 = arith.mulf %133, %132 : vector<32x32xf32>
    %135 = arith.addf %129, %134 : vector<32x32xf32>
    %c12 = arith.constant 12 : index
    %136 = memref.load %arg0[%c12] : memref<40xf32, #tpu.memory_space<smem>>
    %137 = vector.broadcast %136 : f32 to vector<32x32xf32>
    %138 = arith.mulf %137, %1 : vector<32x32xf32>
    %c12_76 = arith.constant 12 : index
    %139 = memref.load %arg1[%c12_76] : memref<40xf32, #tpu.memory_space<smem>>
    %c11_77 = arith.constant 11 : index
    %c0_78 = arith.constant 0 : index
    %c0_79 = arith.constant 0 : index
    %140 = vector.load %arg2[%c11_77, %c0_78, %c0_79] : memref<14x32x32xf32, #tpu.memory_space<vmem>>, vector<1x32x32xf32>
    %141 = vector.shape_cast %140 : vector<1x32x32xf32> to vector<32x32xf32>
    %142 = vector.broadcast %139 : f32 to vector<32x32xf32>
    %143 = arith.mulf %142, %141 : vector<32x32xf32>
    %144 = arith.addf %138, %143 : vector<32x32xf32>
    %cst_80 = arith.constant dense<0.000000e+00> : vector<32x32xf32>
    %145 = tpu.matmul %135, %144, %cst_80 {dimension_numbers = #tpu.dot_dimension_numbers<[1], [0], [0], [1], [0, 0, 1, 1], [], []>} : vector<32x32xf32>, vector<32x32xf32>, vector<32x32xf32> -> vector<32x32xf32>
    %c6_81 = arith.constant 6 : index
    %c0_82 = arith.constant 0 : index
    %c0_83 = arith.constant 0 : index
    %146 = vector.load %arg5[%c6_81, %c0_82, %c0_83] : memref<22x32x32xf32, #tpu.memory_space<vmem>>, vector<1x32x32xf32>
    %147 = vector.shape_cast %146 : vector<1x32x32xf32> to vector<32x32xf32>
    %148 = vector.shape_cast %145 : vector<32x32xf32> to vector<1x32x32xf32>
    tpu.vector_store %arg5[%c6_81, %c0_82, %c0_83], %148 {strides = array<i32>} : memref<22x32x32xf32, #tpu.memory_space<vmem>>, vector<1x32x32xf32>,
    %c13_84 = arith.constant 13 : index
    %149 = memref.load %arg0[%c13_84] : memref<40xf32, #tpu.memory_space<smem>>
    %150 = vector.broadcast %149 : f32 to vector<32x32xf32>
    %151 = arith.mulf %150, %1 : vector<32x32xf32>
    %c13_85 = arith.constant 13 : index
    %152 = memref.load %arg1[%c13_85] : memref<40xf32, #tpu.memory_space<smem>>
    %c4_86 = arith.constant 4 : index
    %c0_87 = arith.constant 0 : index
    %c0_88 = arith.constant 0 : index
    %153 = vector.load %arg2[%c4_86, %c0_87, %c0_88] : memref<14x32x32xf32, #tpu.memory_space<vmem>>, vector<1x32x32xf32>
    %154 = vector.shape_cast %153 : vector<1x32x32xf32> to vector<32x32xf32>
    %155 = vector.broadcast %152 : f32 to vector<32x32xf32>
    %156 = arith.mulf %155, %154 : vector<32x32xf32>
    %157 = arith.addf %151, %156 : vector<32x32xf32>
    %c14 = arith.constant 14 : index
    %158 = memref.load %arg0[%c14] : memref<40xf32, #tpu.memory_space<smem>>
    %159 = vector.broadcast %158 : f32 to vector<32x32xf32>
    %160 = arith.mulf %159, %1 : vector<32x32xf32>
    %c14_89 = arith.constant 14 : index
    %161 = memref.load %arg1[%c14_89] : memref<40xf32, #tpu.memory_space<smem>>
    %c8_90 = arith.constant 8 : index
    %c0_91 = arith.constant 0 : index
    %c0_92 = arith.constant 0 : index
    %162 = vector.load %arg2[%c8_90, %c0_91, %c0_92] : memref<14x32x32xf32, #tpu.memory_space<vmem>>, vector<1x32x32xf32>
    %163 = vector.shape_cast %162 : vector<1x32x32xf32> to vector<32x32xf32>
    %164 = vector.broadcast %161 : f32 to vector<32x32xf32>
    %165 = arith.mulf %164, %163 : vector<32x32xf32>
    %166 = arith.addf %160, %165 : vector<32x32xf32>
    %cst_93 = arith.constant dense<0.000000e+00> : vector<32x32xf32>
    %167 = tpu.matmul %157, %166, %cst_93 {dimension_numbers = #tpu.dot_dimension_numbers<[1], [0], [0], [1], [0, 0, 1, 1], [], []>} : vector<32x32xf32>, vector<32x32xf32>, vector<32x32xf32> -> vector<32x32xf32>
    %c7_94 = arith.constant 7 : index
    %c0_95 = arith.constant 0 : index
    %c0_96 = arith.constant 0 : index
    %168 = vector.load %arg5[%c7_94, %c0_95, %c0_96] : memref<22x32x32xf32, #tpu.memory_space<vmem>>, vector<1x32x32xf32>
    %169 = vector.shape_cast %168 : vector<1x32x32xf32> to vector<32x32xf32>
    %170 = vector.shape_cast %167 : vector<32x32xf32> to vector<1x32x32xf32>
    tpu.vector_store %arg5[%c7_94, %c0_95, %c0_96], %170 {strides = array<i32>} : memref<22x32x32xf32, #tpu.memory_space<vmem>>, vector<1x32x32xf32>,
    %c15 = arith.constant 15 : index
    %171 = memref.load %arg0[%c15] : memref<40xf32, #tpu.memory_space<smem>>
    %172 = vector.broadcast %171 : f32 to vector<32x32xf32>
    %173 = arith.mulf %172, %1 : vector<32x32xf32>
    %c15_97 = arith.constant 15 : index
    %174 = memref.load %arg1[%c15_97] : memref<40xf32, #tpu.memory_space<smem>>
    %c12_98 = arith.constant 12 : index
    %c0_99 = arith.constant 0 : index
    %c0_100 = arith.constant 0 : index
    %175 = vector.load %arg2[%c12_98, %c0_99, %c0_100] : memref<14x32x32xf32, #tpu.memory_space<vmem>>, vector<1x32x32xf32>
    %176 = vector.shape_cast %175 : vector<1x32x32xf32> to vector<32x32xf32>
    %177 = vector.broadcast %174 : f32 to vector<32x32xf32>
    %178 = arith.mulf %177, %176 : vector<32x32xf32>
    %179 = arith.addf %173, %178 : vector<32x32xf32>
    %c13_101 = arith.constant 13 : index
    %c0_102 = arith.constant 0 : index
    %c0_103 = arith.constant 0 : index
    %180 = vector.load %arg2[%c13_101, %c0_102, %c0_103] : memref<14x32x32xf32, #tpu.memory_space<vmem>>, vector<1x32x32xf32>
    %181 = vector.shape_cast %180 : vector<1x32x32xf32> to vector<32x32xf32>
    %cst_104 = arith.constant dense<0.000000e+00> : vector<32x32xf32>
    %182 = tpu.matmul %179, %181, %cst_104 {dimension_numbers = #tpu.dot_dimension_numbers<[1], [0], [0], [1], [0, 0, 1, 1], [], []>} : vector<32x32xf32>, vector<32x32xf32>, vector<32x32xf32> -> vector<32x32xf32>
    %c8_105 = arith.constant 8 : index
    %c0_106 = arith.constant 0 : index
    %c0_107 = arith.constant 0 : index
    %183 = vector.load %arg5[%c8_105, %c0_106, %c0_107] : memref<22x32x32xf32, #tpu.memory_space<vmem>>, vector<1x32x32xf32>
    %184 = vector.shape_cast %183 : vector<1x32x32xf32> to vector<32x32xf32>
    %185 = vector.shape_cast %182 : vector<32x32xf32> to vector<1x32x32xf32>
    tpu.vector_store %arg5[%c8_105, %c0_106, %c0_107], %185 {strides = array<i32>} : memref<22x32x32xf32, #tpu.memory_space<vmem>>, vector<1x32x32xf32>,
    %c16 = arith.constant 16 : index
    %186 = memref.load %arg0[%c16] : memref<40xf32, #tpu.memory_space<smem>>
    %187 = vector.broadcast %186 : f32 to vector<32x32xf32>
    %188 = arith.mulf %187, %1 : vector<32x32xf32>
    %c16_108 = arith.constant 16 : index
    %189 = memref.load %arg1[%c16_108] : memref<40xf32, #tpu.memory_space<smem>>
    %c1_109 = arith.constant 1 : index
    %c0_110 = arith.constant 0 : index
    %c0_111 = arith.constant 0 : index
    %190 = vector.load %arg2[%c1_109, %c0_110, %c0_111] : memref<14x32x32xf32, #tpu.memory_space<vmem>>, vector<1x32x32xf32>
    %191 = vector.shape_cast %190 : vector<1x32x32xf32> to vector<32x32xf32>
    %192 = vector.broadcast %189 : f32 to vector<32x32xf32>
    %193 = arith.mulf %192, %191 : vector<32x32xf32>
    %194 = arith.addf %188, %193 : vector<32x32xf32>
    %c17 = arith.constant 17 : index
    %195 = memref.load %arg0[%c17] : memref<40xf32, #tpu.memory_space<smem>>
    %196 = vector.broadcast %195 : f32 to vector<32x32xf32>
    %197 = arith.mulf %196, %1 : vector<32x32xf32>
    %c17_112 = arith.constant 17 : index
    %198 = memref.load %arg1[%c17_112] : memref<40xf32, #tpu.memory_space<smem>>
    %c5_113 = arith.constant 5 : index
    %c0_114 = arith.constant 0 : index
    %c0_115 = arith.constant 0 : index
    %199 = vector.load %arg2[%c5_113, %c0_114, %c0_115] : memref<14x32x32xf32, #tpu.memory_space<vmem>>, vector<1x32x32xf32>
    %200 = vector.shape_cast %199 : vector<1x32x32xf32> to vector<32x32xf32>
    %201 = vector.broadcast %198 : f32 to vector<32x32xf32>
    %202 = arith.mulf %201, %200 : vector<32x32xf32>
    %203 = arith.addf %197, %202 : vector<32x32xf32>
    %cst_116 = arith.constant dense<0.000000e+00> : vector<32x32xf32>
    %204 = tpu.matmul %194, %203, %cst_116 {dimension_numbers = #tpu.dot_dimension_numbers<[1], [0], [0], [1], [0, 0, 1, 1], [], []>} : vector<32x32xf32>, vector<32x32xf32>, vector<32x32xf32> -> vector<32x32xf32>
    %c9_117 = arith.constant 9 : index
    %c0_118 = arith.constant 0 : index
    %c0_119 = arith.constant 0 : index
    %205 = vector.load %arg5[%c9_117, %c0_118, %c0_119] : memref<22x32x32xf32, #tpu.memory_space<vmem>>, vector<1x32x32xf32>
    %206 = vector.shape_cast %205 : vector<1x32x32xf32> to vector<32x32xf32>
    %207 = vector.shape_cast %204 : vector<32x32xf32> to vector<1x32x32xf32>
    tpu.vector_store %arg5[%c9_117, %c0_118, %c0_119], %207 {strides = array<i32>} : memref<22x32x32xf32, #tpu.memory_space<vmem>>, vector<1x32x32xf32>,
    %c18 = arith.constant 18 : index
    %208 = memref.load %arg0[%c18] : memref<40xf32, #tpu.memory_space<smem>>
    %209 = vector.broadcast %208 : f32 to vector<32x32xf32>
    %210 = arith.mulf %209, %1 : vector<32x32xf32>
    %c18_120 = arith.constant 18 : index
    %211 = memref.load %arg1[%c18_120] : memref<40xf32, #tpu.memory_space<smem>>
    %c9_121 = arith.constant 9 : index
    %c0_122 = arith.constant 0 : index
    %c0_123 = arith.constant 0 : index
    %212 = vector.load %arg2[%c9_121, %c0_122, %c0_123] : memref<14x32x32xf32, #tpu.memory_space<vmem>>, vector<1x32x32xf32>
    %213 = vector.shape_cast %212 : vector<1x32x32xf32> to vector<32x32xf32>
    %214 = vector.broadcast %211 : f32 to vector<32x32xf32>
    %215 = arith.mulf %214, %213 : vector<32x32xf32>
    %216 = arith.addf %210, %215 : vector<32x32xf32>
    %c19 = arith.constant 19 : index
    %217 = memref.load %arg0[%c19] : memref<40xf32, #tpu.memory_space<smem>>
    %218 = vector.broadcast %217 : f32 to vector<32x32xf32>
    %219 = arith.mulf %218, %1 : vector<32x32xf32>
    %c19_124 = arith.constant 19 : index
    %220 = memref.load %arg1[%c19_124] : memref<40xf32, #tpu.memory_space<smem>>
    %c2_125 = arith.constant 2 : index
    %c0_126 = arith.constant 0 : index
    %c0_127 = arith.constant 0 : index
    %221 = vector.load %arg2[%c2_125, %c0_126, %c0_127] : memref<14x32x32xf32, #tpu.memory_space<vmem>>, vector<1x32x32xf32>
    %222 = vector.shape_cast %221 : vector<1x32x32xf32> to vector<32x32xf32>
    %223 = vector.broadcast %220 : f32 to vector<32x32xf32>
    %224 = arith.mulf %223, %222 : vector<32x32xf32>
    %225 = arith.addf %219, %224 : vector<32x32xf32>
    %cst_128 = arith.constant dense<0.000000e+00> : vector<32x32xf32>
    %226 = tpu.matmul %216, %225, %cst_128 {dimension_numbers = #tpu.dot_dimension_numbers<[1], [0], [0], [1], [0, 0, 1, 1], [], []>} : vector<32x32xf32>, vector<32x32xf32>, vector<32x32xf32> -> vector<32x32xf32>
    %c10_129 = arith.constant 10 : index
    %c0_130 = arith.constant 0 : index
    %c0_131 = arith.constant 0 : index
    %227 = vector.load %arg5[%c10_129, %c0_130, %c0_131] : memref<22x32x32xf32, #tpu.memory_space<vmem>>, vector<1x32x32xf32>
    %228 = vector.shape_cast %227 : vector<1x32x32xf32> to vector<32x32xf32>
    %229 = vector.shape_cast %226 : vector<32x32xf32> to vector<1x32x32xf32>
    tpu.vector_store %arg5[%c10_129, %c0_130, %c0_131], %229 {strides = array<i32>} : memref<22x32x32xf32, #tpu.memory_space<vmem>>, vector<1x32x32xf32>,
    %c20 = arith.constant 20 : index
    %230 = memref.load %arg0[%c20] : memref<40xf32, #tpu.memory_space<smem>>
    %231 = vector.broadcast %230 : f32 to vector<32x32xf32>
    %232 = arith.mulf %231, %1 : vector<32x32xf32>
    %c20_132 = arith.constant 20 : index
    %233 = memref.load %arg1[%c20_132] : memref<40xf32, #tpu.memory_space<smem>>
    %c6_133 = arith.constant 6 : index
    %c0_134 = arith.constant 0 : index
    %c0_135 = arith.constant 0 : index
    %234 = vector.load %arg2[%c6_133, %c0_134, %c0_135] : memref<14x32x32xf32, #tpu.memory_space<vmem>>, vector<1x32x32xf32>
    %235 = vector.shape_cast %234 : vector<1x32x32xf32> to vector<32x32xf32>
    %236 = vector.broadcast %233 : f32 to vector<32x32xf32>
    %237 = arith.mulf %236, %235 : vector<32x32xf32>
    %238 = arith.addf %232, %237 : vector<32x32xf32>
    %c21 = arith.constant 21 : index
    %239 = memref.load %arg0[%c21] : memref<40xf32, #tpu.memory_space<smem>>
    %240 = vector.broadcast %239 : f32 to vector<32x32xf32>
    %241 = arith.mulf %240, %1 : vector<32x32xf32>
    %c21_136 = arith.constant 21 : index
    %242 = memref.load %arg1[%c21_136] : memref<40xf32, #tpu.memory_space<smem>>
    %c10_137 = arith.constant 10 : index
    %c0_138 = arith.constant 0 : index
    %c0_139 = arith.constant 0 : index
    %243 = vector.load %arg2[%c10_137, %c0_138, %c0_139] : memref<14x32x32xf32, #tpu.memory_space<vmem>>, vector<1x32x32xf32>
    %244 = vector.shape_cast %243 : vector<1x32x32xf32> to vector<32x32xf32>
    %245 = vector.broadcast %242 : f32 to vector<32x32xf32>
    %246 = arith.mulf %245, %244 : vector<32x32xf32>
    %247 = arith.addf %241, %246 : vector<32x32xf32>
    %cst_140 = arith.constant dense<0.000000e+00> : vector<32x32xf32>
    %248 = tpu.matmul %238, %247, %cst_140 {dimension_numbers = #tpu.dot_dimension_numbers<[1], [0], [0], [1], [0, 0, 1, 1], [], []>} : vector<32x32xf32>, vector<32x32xf32>, vector<32x32xf32> -> vector<32x32xf32>
    %c11_141 = arith.constant 11 : index
    %c0_142 = arith.constant 0 : index
    %c0_143 = arith.constant 0 : index
    %249 = vector.load %arg5[%c11_141, %c0_142, %c0_143] : memref<22x32x32xf32, #tpu.memory_space<vmem>>, vector<1x32x32xf32>
    %250 = vector.shape_cast %249 : vector<1x32x32xf32> to vector<32x32xf32>
    %251 = vector.shape_cast %248 : vector<32x32xf32> to vector<1x32x32xf32>
    tpu.vector_store %arg5[%c11_141, %c0_142, %c0_143], %251 {strides = array<i32>} : memref<22x32x32xf32, #tpu.memory_space<vmem>>, vector<1x32x32xf32>,
    %c22 = arith.constant 22 : index
    %252 = memref.load %arg0[%c22] : memref<40xf32, #tpu.memory_space<smem>>
    %253 = vector.broadcast %252 : f32 to vector<32x32xf32>
    %254 = arith.mulf %253, %1 : vector<32x32xf32>
    %c22_144 = arith.constant 22 : index
    %255 = memref.load %arg1[%c22_144] : memref<40xf32, #tpu.memory_space<smem>>
    %c3_145 = arith.constant 3 : index
    %c0_146 = arith.constant 0 : index
    %c0_147 = arith.constant 0 : index
    %256 = vector.load %arg2[%c3_145, %c0_146, %c0_147] : memref<14x32x32xf32, #tpu.memory_space<vmem>>, vector<1x32x32xf32>
    %257 = vector.shape_cast %256 : vector<1x32x32xf32> to vector<32x32xf32>
    %258 = vector.broadcast %255 : f32 to vector<32x32xf32>
    %259 = arith.mulf %258, %257 : vector<32x32xf32>
    %260 = arith.addf %254, %259 : vector<32x32xf32>
    %c23 = arith.constant 23 : index
    %261 = memref.load %arg0[%c23] : memref<40xf32, #tpu.memory_space<smem>>
    %262 = vector.broadcast %261 : f32 to vector<32x32xf32>
    %263 = arith.mulf %262, %1 : vector<32x32xf32>
    %c23_148 = arith.constant 23 : index
    %264 = memref.load %arg1[%c23_148] : memref<40xf32, #tpu.memory_space<smem>>
    %c7_149 = arith.constant 7 : index
    %c0_150 = arith.constant 0 : index
    %c0_151 = arith.constant 0 : index
    %265 = vector.load %arg2[%c7_149, %c0_150, %c0_151] : memref<14x32x32xf32, #tpu.memory_space<vmem>>, vector<1x32x32xf32>
    %266 = vector.shape_cast %265 : vector<1x32x32xf32> to vector<32x32xf32>
    %267 = vector.broadcast %264 : f32 to vector<32x32xf32>
    %268 = arith.mulf %267, %266 : vector<32x32xf32>
    %269 = arith.addf %263, %268 : vector<32x32xf32>
    %cst_152 = arith.constant dense<0.000000e+00> : vector<32x32xf32>
    %270 = tpu.matmul %260, %269, %cst_152 {dimension_numbers = #tpu.dot_dimension_numbers<[1], [0], [0], [1], [0, 0, 1, 1], [], []>} : vector<32x32xf32>, vector<32x32xf32>, vector<32x32xf32> -> vector<32x32xf32>
    %c12_153 = arith.constant 12 : index
    %c0_154 = arith.constant 0 : index
    %c0_155 = arith.constant 0 : index
    %271 = vector.load %arg5[%c12_153, %c0_154, %c0_155] : memref<22x32x32xf32, #tpu.memory_space<vmem>>, vector<1x32x32xf32>
    %272 = vector.shape_cast %271 : vector<1x32x32xf32> to vector<32x32xf32>
    %273 = vector.shape_cast %270 : vector<32x32xf32> to vector<1x32x32xf32>
    tpu.vector_store %arg5[%c12_153, %c0_154, %c0_155], %273 {strides = array<i32>} : memref<22x32x32xf32, #tpu.memory_space<vmem>>, vector<1x32x32xf32>,
    %c24 = arith.constant 24 : index
    %274 = memref.load %arg0[%c24] : memref<40xf32, #tpu.memory_space<smem>>
    %275 = vector.broadcast %274 : f32 to vector<32x32xf32>
    %276 = arith.mulf %275, %1 : vector<32x32xf32>
    %c24_156 = arith.constant 24 : index
    %277 = memref.load %arg1[%c24_156] : memref<40xf32, #tpu.memory_space<smem>>
    %c11_157 = arith.constant 11 : index
    %c0_158 = arith.constant 0 : index
    %c0_159 = arith.constant 0 : index
    %278 = vector.load %arg2[%c11_157, %c0_158, %c0_159] : memref<14x32x32xf32, #tpu.memory_space<vmem>>, vector<1x32x32xf32>
    %279 = vector.shape_cast %278 : vector<1x32x32xf32> to vector<32x32xf32>
    %280 = vector.broadcast %277 : f32 to vector<32x32xf32>
    %281 = arith.mulf %280, %279 : vector<32x32xf32>
    %282 = arith.addf %276, %281 : vector<32x32xf32>
    %c25 = arith.constant 25 : index
    %283 = memref.load %arg0[%c25] : memref<40xf32, #tpu.memory_space<smem>>
    %284 = vector.broadcast %283 : f32 to vector<32x32xf32>
    %285 = arith.mulf %284, %1 : vector<32x32xf32>
    %c25_160 = arith.constant 25 : index
    %286 = memref.load %arg1[%c25_160] : memref<40xf32, #tpu.memory_space<smem>>
    %c4_161 = arith.constant 4 : index
    %c0_162 = arith.constant 0 : index
    %c0_163 = arith.constant 0 : index
    %287 = vector.load %arg2[%c4_161, %c0_162, %c0_163] : memref<14x32x32xf32, #tpu.memory_space<vmem>>, vector<1x32x32xf32>
    %288 = vector.shape_cast %287 : vector<1x32x32xf32> to vector<32x32xf32>
    %289 = vector.broadcast %286 : f32 to vector<32x32xf32>
    %290 = arith.mulf %289, %288 : vector<32x32xf32>
    %291 = arith.addf %285, %290 : vector<32x32xf32>
    %cst_164 = arith.constant dense<0.000000e+00> : vector<32x32xf32>
    %292 = tpu.matmul %282, %291, %cst_164 {dimension_numbers = #tpu.dot_dimension_numbers<[1], [0], [0], [1], [0, 0, 1, 1], [], []>} : vector<32x32xf32>, vector<32x32xf32>, vector<32x32xf32> -> vector<32x32xf32>
    %c13_165 = arith.constant 13 : index
    %c0_166 = arith.constant 0 : index
    %c0_167 = arith.constant 0 : index
    %293 = vector.load %arg5[%c13_165, %c0_166, %c0_167] : memref<22x32x32xf32, #tpu.memory_space<vmem>>, vector<1x32x32xf32>
    %294 = vector.shape_cast %293 : vector<1x32x32xf32> to vector<32x32xf32>
    %295 = vector.shape_cast %292 : vector<32x32xf32> to vector<1x32x32xf32>
    tpu.vector_store %arg5[%c13_165, %c0_166, %c0_167], %295 {strides = array<i32>} : memref<22x32x32xf32, #tpu.memory_space<vmem>>, vector<1x32x32xf32>,
    %c26 = arith.constant 26 : index
    %296 = memref.load %arg0[%c26] : memref<40xf32, #tpu.memory_space<smem>>
    %297 = vector.broadcast %296 : f32 to vector<32x32xf32>
    %298 = arith.mulf %297, %1 : vector<32x32xf32>
    %c26_168 = arith.constant 26 : index
    %299 = memref.load %arg1[%c26_168] : memref<40xf32, #tpu.memory_space<smem>>
    %c8_169 = arith.constant 8 : index
    %c0_170 = arith.constant 0 : index
    %c0_171 = arith.constant 0 : index
    %300 = vector.load %arg2[%c8_169, %c0_170, %c0_171] : memref<14x32x32xf32, #tpu.memory_space<vmem>>, vector<1x32x32xf32>
    %301 = vector.shape_cast %300 : vector<1x32x32xf32> to vector<32x32xf32>
    %302 = vector.broadcast %299 : f32 to vector<32x32xf32>
    %303 = arith.mulf %302, %301 : vector<32x32xf32>
    %304 = arith.addf %298, %303 : vector<32x32xf32>
    %c27 = arith.constant 27 : index
    %305 = memref.load %arg0[%c27] : memref<40xf32, #tpu.memory_space<smem>>
    %306 = vector.broadcast %305 : f32 to vector<32x32xf32>
    %307 = arith.mulf %306, %1 : vector<32x32xf32>
    %c27_172 = arith.constant 27 : index
    %308 = memref.load %arg1[%c27_172] : memref<40xf32, #tpu.memory_space<smem>>
    %c12_173 = arith.constant 12 : index
    %c0_174 = arith.constant 0 : index
    %c0_175 = arith.constant 0 : index
    %309 = vector.load %arg2[%c12_173, %c0_174, %c0_175] : memref<14x32x32xf32, #tpu.memory_space<vmem>>, vector<1x32x32xf32>
    %310 = vector.shape_cast %309 : vector<1x32x32xf32> to vector<32x32xf32>
    %311 = vector.broadcast %308 : f32 to vector<32x32xf32>
    %312 = arith.mulf %311, %310 : vector<32x32xf32>
    %313 = arith.addf %307, %312 : vector<32x32xf32>
    %cst_176 = arith.constant dense<0.000000e+00> : vector<32x32xf32>
    %314 = tpu.matmul %304, %313, %cst_176 {dimension_numbers = #tpu.dot_dimension_numbers<[1], [0], [0], [1], [0, 0, 1, 1], [], []>} : vector<32x32xf32>, vector<32x32xf32>, vector<32x32xf32> -> vector<32x32xf32>
    %c14_177 = arith.constant 14 : index
    %c0_178 = arith.constant 0 : index
    %c0_179 = arith.constant 0 : index
    %315 = vector.load %arg5[%c14_177, %c0_178, %c0_179] : memref<22x32x32xf32, #tpu.memory_space<vmem>>, vector<1x32x32xf32>
    %316 = vector.shape_cast %315 : vector<1x32x32xf32> to vector<32x32xf32>
    %317 = vector.shape_cast %314 : vector<32x32xf32> to vector<1x32x32xf32>
    tpu.vector_store %arg5[%c14_177, %c0_178, %c0_179], %317 {strides = array<i32>} : memref<22x32x32xf32, #tpu.memory_space<vmem>>, vector<1x32x32xf32>,
    %c13_180 = arith.constant 13 : index
    %c0_181 = arith.constant 0 : index
    %c0_182 = arith.constant 0 : index
    %318 = vector.load %arg2[%c13_180, %c0_181, %c0_182] : memref<14x32x32xf32, #tpu.memory_space<vmem>>, vector<1x32x32xf32>
    %319 = vector.shape_cast %318 : vector<1x32x32xf32> to vector<32x32xf32>
    %c28 = arith.constant 28 : index
    %320 = memref.load %arg0[%c28] : memref<40xf32, #tpu.memory_space<smem>>
    %321 = vector.broadcast %320 : f32 to vector<32x32xf32>
    %322 = arith.mulf %321, %1 : vector<32x32xf32>
    %c28_183 = arith.constant 28 : index
    %323 = memref.load %arg1[%c28_183] : memref<40xf32, #tpu.memory_space<smem>>
    %c1_184 = arith.constant 1 : index
    %c0_185 = arith.constant 0 : index
    %c0_186 = arith.constant 0 : index
    %324 = vector.load %arg2[%c1_184, %c0_185, %c0_186] : memref<14x32x32xf32, #tpu.memory_space<vmem>>, vector<1x32x32xf32>
    %325 = vector.shape_cast %324 : vector<1x32x32xf32> to vector<32x32xf32>
    %326 = vector.broadcast %323 : f32 to vector<32x32xf32>
    %327 = arith.mulf %326, %325 : vector<32x32xf32>
    %328 = arith.addf %322, %327 : vector<32x32xf32>
    %cst_187 = arith.constant dense<0.000000e+00> : vector<32x32xf32>
    %329 = tpu.matmul %319, %328, %cst_187 {dimension_numbers = #tpu.dot_dimension_numbers<[1], [0], [0], [1], [0, 0, 1, 1], [], []>} : vector<32x32xf32>, vector<32x32xf32>, vector<32x32xf32> -> vector<32x32xf32>
    %c15_188 = arith.constant 15 : index
    %c0_189 = arith.constant 0 : index
    %c0_190 = arith.constant 0 : index
    %330 = vector.load %arg5[%c15_188, %c0_189, %c0_190] : memref<22x32x32xf32, #tpu.memory_space<vmem>>, vector<1x32x32xf32>
    %331 = vector.shape_cast %330 : vector<1x32x32xf32> to vector<32x32xf32>
    %332 = vector.shape_cast %329 : vector<32x32xf32> to vector<1x32x32xf32>
    tpu.vector_store %arg5[%c15_188, %c0_189, %c0_190], %332 {strides = array<i32>} : memref<22x32x32xf32, #tpu.memory_space<vmem>>, vector<1x32x32xf32>,
    %c29 = arith.constant 29 : index
    %333 = memref.load %arg0[%c29] : memref<40xf32, #tpu.memory_space<smem>>
    %334 = vector.broadcast %333 : f32 to vector<32x32xf32>
    %335 = arith.mulf %334, %1 : vector<32x32xf32>
    %c29_191 = arith.constant 29 : index
    %336 = memref.load %arg1[%c29_191] : memref<40xf32, #tpu.memory_space<smem>>
    %c5_192 = arith.constant 5 : index
    %c0_193 = arith.constant 0 : index
    %c0_194 = arith.constant 0 : index
    %337 = vector.load %arg2[%c5_192, %c0_193, %c0_194] : memref<14x32x32xf32, #tpu.memory_space<vmem>>, vector<1x32x32xf32>
    %338 = vector.shape_cast %337 : vector<1x32x32xf32> to vector<32x32xf32>
    %339 = vector.broadcast %336 : f32 to vector<32x32xf32>
    %340 = arith.mulf %339, %338 : vector<32x32xf32>
    %341 = arith.addf %335, %340 : vector<32x32xf32>
    %c30 = arith.constant 30 : index
    %342 = memref.load %arg0[%c30] : memref<40xf32, #tpu.memory_space<smem>>
    %343 = vector.broadcast %342 : f32 to vector<32x32xf32>
    %344 = arith.mulf %343, %1 : vector<32x32xf32>
    %c30_195 = arith.constant 30 : index
    %345 = memref.load %arg1[%c30_195] : memref<40xf32, #tpu.memory_space<smem>>
    %c9_196 = arith.constant 9 : index
    %c0_197 = arith.constant 0 : index
    %c0_198 = arith.constant 0 : index
    %346 = vector.load %arg2[%c9_196, %c0_197, %c0_198] : memref<14x32x32xf32, #tpu.memory_space<vmem>>, vector<1x32x32xf32>
    %347 = vector.shape_cast %346 : vector<1x32x32xf32> to vector<32x32xf32>
    %348 = vector.broadcast %345 : f32 to vector<32x32xf32>
    %349 = arith.mulf %348, %347 : vector<32x32xf32>
    %350 = arith.addf %344, %349 : vector<32x32xf32>
    %cst_199 = arith.constant dense<0.000000e+00> : vector<32x32xf32>
    %351 = tpu.matmul %341, %350, %cst_199 {dimension_numbers = #tpu.dot_dimension_numbers<[1], [0], [0], [1], [0, 0, 1, 1], [], []>} : vector<32x32xf32>, vector<32x32xf32>, vector<32x32xf32> -> vector<32x32xf32>
    %c16_200 = arith.constant 16 : index
    %c0_201 = arith.constant 0 : index
    %c0_202 = arith.constant 0 : index
    %352 = vector.load %arg5[%c16_200, %c0_201, %c0_202] : memref<22x32x32xf32, #tpu.memory_space<vmem>>, vector<1x32x32xf32>
    %353 = vector.shape_cast %352 : vector<1x32x32xf32> to vector<32x32xf32>
    %354 = vector.shape_cast %351 : vector<32x32xf32> to vector<1x32x32xf32>
    tpu.vector_store %arg5[%c16_200, %c0_201, %c0_202], %354 {strides = array<i32>} : memref<22x32x32xf32, #tpu.memory_space<vmem>>, vector<1x32x32xf32>,
    %c31 = arith.constant 31 : index
    %355 = memref.load %arg0[%c31] : memref<40xf32, #tpu.memory_space<smem>>
    %356 = vector.broadcast %355 : f32 to vector<32x32xf32>
    %357 = arith.mulf %356, %1 : vector<32x32xf32>
    %c31_203 = arith.constant 31 : index
    %358 = memref.load %arg1[%c31_203] : memref<40xf32, #tpu.memory_space<smem>>
    %c2_204 = arith.constant 2 : index
    %c0_205 = arith.constant 0 : index
    %c0_206 = arith.constant 0 : index
    %359 = vector.load %arg2[%c2_204, %c0_205, %c0_206] : memref<14x32x32xf32, #tpu.memory_space<vmem>>, vector<1x32x32xf32>
    %360 = vector.shape_cast %359 : vector<1x32x32xf32> to vector<32x32xf32>
    %361 = vector.broadcast %358 : f32 to vector<32x32xf32>
    %362 = arith.mulf %361, %360 : vector<32x32xf32>
    %363 = arith.addf %357, %362 : vector<32x32xf32>
    %c32 = arith.constant 32 : index
    %364 = memref.load %arg0[%c32] : memref<40xf32, #tpu.memory_space<smem>>
    %365 = vector.broadcast %364 : f32 to vector<32x32xf32>
    %366 = arith.mulf %365, %1 : vector<32x32xf32>
    %c32_207 = arith.constant 32 : index
    %367 = memref.load %arg1[%c32_207] : memref<40xf32, #tpu.memory_space<smem>>
    %c6_208 = arith.constant 6 : index
    %c0_209 = arith.constant 0 : index
    %c0_210 = arith.constant 0 : index
    %368 = vector.load %arg2[%c6_208, %c0_209, %c0_210] : memref<14x32x32xf32, #tpu.memory_space<vmem>>, vector<1x32x32xf32>
    %369 = vector.shape_cast %368 : vector<1x32x32xf32> to vector<32x32xf32>
    %370 = vector.broadcast %367 : f32 to vector<32x32xf32>
    %371 = arith.mulf %370, %369 : vector<32x32xf32>
    %372 = arith.addf %366, %371 : vector<32x32xf32>
    %cst_211 = arith.constant dense<0.000000e+00> : vector<32x32xf32>
    %373 = tpu.matmul %363, %372, %cst_211 {dimension_numbers = #tpu.dot_dimension_numbers<[1], [0], [0], [1], [0, 0, 1, 1], [], []>} : vector<32x32xf32>, vector<32x32xf32>, vector<32x32xf32> -> vector<32x32xf32>
    %c17_212 = arith.constant 17 : index
    %c0_213 = arith.constant 0 : index
    %c0_214 = arith.constant 0 : index
    %374 = vector.load %arg5[%c17_212, %c0_213, %c0_214] : memref<22x32x32xf32, #tpu.memory_space<vmem>>, vector<1x32x32xf32>
    %375 = vector.shape_cast %374 : vector<1x32x32xf32> to vector<32x32xf32>
    %376 = vector.shape_cast %373 : vector<32x32xf32> to vector<1x32x32xf32>
    tpu.vector_store %arg5[%c17_212, %c0_213, %c0_214], %376 {strides = array<i32>} : memref<22x32x32xf32, #tpu.memory_space<vmem>>, vector<1x32x32xf32>,
    %c33 = arith.constant 33 : index
    %377 = memref.load %arg0[%c33] : memref<40xf32, #tpu.memory_space<smem>>
    %378 = vector.broadcast %377 : f32 to vector<32x32xf32>
    %379 = arith.mulf %378, %1 : vector<32x32xf32>
    %c33_215 = arith.constant 33 : index
    %380 = memref.load %arg1[%c33_215] : memref<40xf32, #tpu.memory_space<smem>>
    %c10_216 = arith.constant 10 : index
    %c0_217 = arith.constant 0 : index
    %c0_218 = arith.constant 0 : index
    %381 = vector.load %arg2[%c10_216, %c0_217, %c0_218] : memref<14x32x32xf32, #tpu.memory_space<vmem>>, vector<1x32x32xf32>
    %382 = vector.shape_cast %381 : vector<1x32x32xf32> to vector<32x32xf32>
    %383 = vector.broadcast %380 : f32 to vector<32x32xf32>
    %384 = arith.mulf %383, %382 : vector<32x32xf32>
    %385 = arith.addf %379, %384 : vector<32x32xf32>
    %c34 = arith.constant 34 : index
    %386 = memref.load %arg0[%c34] : memref<40xf32, #tpu.memory_space<smem>>
    %387 = vector.broadcast %386 : f32 to vector<32x32xf32>
    %388 = arith.mulf %387, %1 : vector<32x32xf32>
    %c34_219 = arith.constant 34 : index
    %389 = memref.load %arg1[%c34_219] : memref<40xf32, #tpu.memory_space<smem>>
    %c3_220 = arith.constant 3 : index
    %c0_221 = arith.constant 0 : index
    %c0_222 = arith.constant 0 : index
    %390 = vector.load %arg2[%c3_220, %c0_221, %c0_222] : memref<14x32x32xf32, #tpu.memory_space<vmem>>, vector<1x32x32xf32>
    %391 = vector.shape_cast %390 : vector<1x32x32xf32> to vector<32x32xf32>
    %392 = vector.broadcast %389 : f32 to vector<32x32xf32>
    %393 = arith.mulf %392, %391 : vector<32x32xf32>
    %394 = arith.addf %388, %393 : vector<32x32xf32>
    %cst_223 = arith.constant dense<0.000000e+00> : vector<32x32xf32>
    %395 = tpu.matmul %385, %394, %cst_223 {dimension_numbers = #tpu.dot_dimension_numbers<[1], [0], [0], [1], [0, 0, 1, 1], [], []>} : vector<32x32xf32>, vector<32x32xf32>, vector<32x32xf32> -> vector<32x32xf32>
    %c18_224 = arith.constant 18 : index
    %c0_225 = arith.constant 0 : index
    %c0_226 = arith.constant 0 : index
    %396 = vector.load %arg5[%c18_224, %c0_225, %c0_226] : memref<22x32x32xf32, #tpu.memory_space<vmem>>, vector<1x32x32xf32>
    %397 = vector.shape_cast %396 : vector<1x32x32xf32> to vector<32x32xf32>
    %398 = vector.shape_cast %395 : vector<32x32xf32> to vector<1x32x32xf32>
    tpu.vector_store %arg5[%c18_224, %c0_225, %c0_226], %398 {strides = array<i32>} : memref<22x32x32xf32, #tpu.memory_space<vmem>>, vector<1x32x32xf32>,
    %c35 = arith.constant 35 : index
    %399 = memref.load %arg0[%c35] : memref<40xf32, #tpu.memory_space<smem>>
    %400 = vector.broadcast %399 : f32 to vector<32x32xf32>
    %401 = arith.mulf %400, %1 : vector<32x32xf32>
    %c35_227 = arith.constant 35 : index
    %402 = memref.load %arg1[%c35_227] : memref<40xf32, #tpu.memory_space<smem>>
    %c7_228 = arith.constant 7 : index
    %c0_229 = arith.constant 0 : index
    %c0_230 = arith.constant 0 : index
    %403 = vector.load %arg2[%c7_228, %c0_229, %c0_230] : memref<14x32x32xf32, #tpu.memory_space<vmem>>, vector<1x32x32xf32>
    %404 = vector.shape_cast %403 : vector<1x32x32xf32> to vector<32x32xf32>
    %405 = vector.broadcast %402 : f32 to vector<32x32xf32>
    %406 = arith.mulf %405, %404 : vector<32x32xf32>
    %407 = arith.addf %401, %406 : vector<32x32xf32>
    %c36 = arith.constant 36 : index
    %408 = memref.load %arg0[%c36] : memref<40xf32, #tpu.memory_space<smem>>
    %409 = vector.broadcast %408 : f32 to vector<32x32xf32>
    %410 = arith.mulf %409, %1 : vector<32x32xf32>
    %c36_231 = arith.constant 36 : index
    %411 = memref.load %arg1[%c36_231] : memref<40xf32, #tpu.memory_space<smem>>
    %c11_232 = arith.constant 11 : index
    %c0_233 = arith.constant 0 : index
    %c0_234 = arith.constant 0 : index
    %412 = vector.load %arg2[%c11_232, %c0_233, %c0_234] : memref<14x32x32xf32, #tpu.memory_space<vmem>>, vector<1x32x32xf32>
    %413 = vector.shape_cast %412 : vector<1x32x32xf32> to vector<32x32xf32>
    %414 = vector.broadcast %411 : f32 to vector<32x32xf32>
    %415 = arith.mulf %414, %413 : vector<32x32xf32>
    %416 = arith.addf %410, %415 : vector<32x32xf32>
    %cst_235 = arith.constant dense<0.000000e+00> : vector<32x32xf32>
    %417 = tpu.matmul %407, %416, %cst_235 {dimension_numbers = #tpu.dot_dimension_numbers<[1], [0], [0], [1], [0, 0, 1, 1], [], []>} : vector<32x32xf32>, vector<32x32xf32>, vector<32x32xf32> -> vector<32x32xf32>
    %c19_236 = arith.constant 19 : index
    %c0_237 = arith.constant 0 : index
    %c0_238 = arith.constant 0 : index
    %418 = vector.load %arg5[%c19_236, %c0_237, %c0_238] : memref<22x32x32xf32, #tpu.memory_space<vmem>>, vector<1x32x32xf32>
    %419 = vector.shape_cast %418 : vector<1x32x32xf32> to vector<32x32xf32>
    %420 = vector.shape_cast %417 : vector<32x32xf32> to vector<1x32x32xf32>
    tpu.vector_store %arg5[%c19_236, %c0_237, %c0_238], %420 {strides = array<i32>} : memref<22x32x32xf32, #tpu.memory_space<vmem>>, vector<1x32x32xf32>,
    %c37 = arith.constant 37 : index
    %421 = memref.load %arg0[%c37] : memref<40xf32, #tpu.memory_space<smem>>
    %422 = vector.broadcast %421 : f32 to vector<32x32xf32>
    %423 = arith.mulf %422, %1 : vector<32x32xf32>
    %c37_239 = arith.constant 37 : index
    %424 = memref.load %arg1[%c37_239] : memref<40xf32, #tpu.memory_space<smem>>
    %c4_240 = arith.constant 4 : index
    %c0_241 = arith.constant 0 : index
    %c0_242 = arith.constant 0 : index
    %425 = vector.load %arg2[%c4_240, %c0_241, %c0_242] : memref<14x32x32xf32, #tpu.memory_space<vmem>>, vector<1x32x32xf32>
    %426 = vector.shape_cast %425 : vector<1x32x32xf32> to vector<32x32xf32>
    %427 = vector.broadcast %424 : f32 to vector<32x32xf32>
    %428 = arith.mulf %427, %426 : vector<32x32xf32>
    %429 = arith.addf %423, %428 : vector<32x32xf32>
    %c38 = arith.constant 38 : index
    %430 = memref.load %arg0[%c38] : memref<40xf32, #tpu.memory_space<smem>>
    %431 = vector.broadcast %430 : f32 to vector<32x32xf32>
    %432 = arith.mulf %431, %1 : vector<32x32xf32>
    %c38_243 = arith.constant 38 : index
    %433 = memref.load %arg1[%c38_243] : memref<40xf32, #tpu.memory_space<smem>>
    %c8_244 = arith.constant 8 : index
    %c0_245 = arith.constant 0 : index
    %c0_246 = arith.constant 0 : index
    %434 = vector.load %arg2[%c8_244, %c0_245, %c0_246] : memref<14x32x32xf32, #tpu.memory_space<vmem>>, vector<1x32x32xf32>
    %435 = vector.shape_cast %434 : vector<1x32x32xf32> to vector<32x32xf32>
    %436 = vector.broadcast %433 : f32 to vector<32x32xf32>
    %437 = arith.mulf %436, %435 : vector<32x32xf32>
    %438 = arith.addf %432, %437 : vector<32x32xf32>
    %cst_247 = arith.constant dense<0.000000e+00> : vector<32x32xf32>
    %439 = tpu.matmul %429, %438, %cst_247 {dimension_numbers = #tpu.dot_dimension_numbers<[1], [0], [0], [1], [0, 0, 1, 1], [], []>} : vector<32x32xf32>, vector<32x32xf32>, vector<32x32xf32> -> vector<32x32xf32>
    %c20_248 = arith.constant 20 : index
    %c0_249 = arith.constant 0 : index
    %c0_250 = arith.constant 0 : index
    %440 = vector.load %arg5[%c20_248, %c0_249, %c0_250] : memref<22x32x32xf32, #tpu.memory_space<vmem>>, vector<1x32x32xf32>
    %441 = vector.shape_cast %440 : vector<1x32x32xf32> to vector<32x32xf32>
    %442 = vector.shape_cast %439 : vector<32x32xf32> to vector<1x32x32xf32>
    tpu.vector_store %arg5[%c20_248, %c0_249, %c0_250], %442 {strides = array<i32>} : memref<22x32x32xf32, #tpu.memory_space<vmem>>, vector<1x32x32xf32>,
    %c39 = arith.constant 39 : index
    %443 = memref.load %arg0[%c39] : memref<40xf32, #tpu.memory_space<smem>>
    %444 = vector.broadcast %443 : f32 to vector<32x32xf32>
    %445 = arith.mulf %444, %1 : vector<32x32xf32>
    %c39_251 = arith.constant 39 : index
    %446 = memref.load %arg1[%c39_251] : memref<40xf32, #tpu.memory_space<smem>>
    %c12_252 = arith.constant 12 : index
    %c0_253 = arith.constant 0 : index
    %c0_254 = arith.constant 0 : index
    %447 = vector.load %arg2[%c12_252, %c0_253, %c0_254] : memref<14x32x32xf32, #tpu.memory_space<vmem>>, vector<1x32x32xf32>
    %448 = vector.shape_cast %447 : vector<1x32x32xf32> to vector<32x32xf32>
    %449 = vector.broadcast %446 : f32 to vector<32x32xf32>
    %450 = arith.mulf %449, %448 : vector<32x32xf32>
    %451 = arith.addf %445, %450 : vector<32x32xf32>
    %c21_255 = arith.constant 21 : index
    %c0_256 = arith.constant 0 : index
    %c0_257 = arith.constant 0 : index
    %452 = vector.load %arg5[%c21_255, %c0_256, %c0_257] : memref<22x32x32xf32, #tpu.memory_space<vmem>>, vector<1x32x32xf32>
    %453 = vector.shape_cast %452 : vector<1x32x32xf32> to vector<32x32xf32>
    %454 = vector.shape_cast %451 : vector<32x32xf32> to vector<1x32x32xf32>
    tpu.vector_store %arg5[%c21_255, %c0_256, %c0_257], %454 {strides = array<i32>} : memref<22x32x32xf32, #tpu.memory_space<vmem>>, vector<1x32x32xf32>,
    %c0_258 = arith.constant 0 : index
    %c0_259 = arith.constant 0 : index
    %c0_260 = arith.constant 0 : index
    %455 = vector.load %arg5[%c0_258, %c0_259, %c0_260] : memref<22x32x32xf32, #tpu.memory_space<vmem>>, vector<1x32x32xf32>
    %456 = vector.shape_cast %455 : vector<1x32x32xf32> to vector<32x32xf32>
    %c1_261 = arith.constant 1 : index
    %c0_262 = arith.constant 0 : index
    %c0_263 = arith.constant 0 : index
    %457 = vector.load %arg5[%c1_261, %c0_262, %c0_263] : memref<22x32x32xf32, #tpu.memory_space<vmem>>, vector<1x32x32xf32>
    %458 = vector.shape_cast %457 : vector<1x32x32xf32> to vector<32x32xf32>
    %cst_264 = arith.constant dense<0.000000e+00> : vector<32x32xf32>
    %459 = tpu.matmul %456, %458, %cst_264 {dimension_numbers = #tpu.dot_dimension_numbers<[1], [0], [0], [1], [0, 0, 1, 1], [], []>} : vector<32x32xf32>, vector<32x32xf32>, vector<32x32xf32> -> vector<32x32xf32>
    %c0_265 = arith.constant 0 : index
    %c0_266 = arith.constant 0 : index
    %c0_267 = arith.constant 0 : index
    %460 = vector.load %arg5[%c0_265, %c0_266, %c0_267] : memref<22x32x32xf32, #tpu.memory_space<vmem>>, vector<1x32x32xf32>
    %461 = vector.shape_cast %460 : vector<1x32x32xf32> to vector<32x32xf32>
    %462 = vector.shape_cast %459 : vector<32x32xf32> to vector<1x32x32xf32>
    tpu.vector_store %arg5[%c0_265, %c0_266, %c0_267], %462 {strides = array<i32>} : memref<22x32x32xf32, #tpu.memory_space<vmem>>, vector<1x32x32xf32>,
    %c2_268 = arith.constant 2 : index
    %c0_269 = arith.constant 0 : index
    %c0_270 = arith.constant 0 : index
    %463 = vector.load %arg5[%c2_268, %c0_269, %c0_270] : memref<22x32x32xf32, #tpu.memory_space<vmem>>, vector<1x32x32xf32>
    %464 = vector.shape_cast %463 : vector<1x32x32xf32> to vector<32x32xf32>
    %c3_271 = arith.constant 3 : index
    %c0_272 = arith.constant 0 : index
    %c0_273 = arith.constant 0 : index
    %465 = vector.load %arg5[%c3_271, %c0_272, %c0_273] : memref<22x32x32xf32, #tpu.memory_space<vmem>>, vector<1x32x32xf32>
    %466 = vector.shape_cast %465 : vector<1x32x32xf32> to vector<32x32xf32>
    %cst_274 = arith.constant dense<0.000000e+00> : vector<32x32xf32>
    %467 = tpu.matmul %464, %466, %cst_274 {dimension_numbers = #tpu.dot_dimension_numbers<[1], [0], [0], [1], [0, 0, 1, 1], [], []>} : vector<32x32xf32>, vector<32x32xf32>, vector<32x32xf32> -> vector<32x32xf32>
    %c2_275 = arith.constant 2 : index
    %c0_276 = arith.constant 0 : index
    %c0_277 = arith.constant 0 : index
    %468 = vector.load %arg5[%c2_275, %c0_276, %c0_277] : memref<22x32x32xf32, #tpu.memory_space<vmem>>, vector<1x32x32xf32>
    %469 = vector.shape_cast %468 : vector<1x32x32xf32> to vector<32x32xf32>
    %470 = vector.shape_cast %467 : vector<32x32xf32> to vector<1x32x32xf32>
    tpu.vector_store %arg5[%c2_275, %c0_276, %c0_277], %470 {strides = array<i32>} : memref<22x32x32xf32, #tpu.memory_space<vmem>>, vector<1x32x32xf32>,
    %c4_278 = arith.constant 4 : index
    %c0_279 = arith.constant 0 : index
    %c0_280 = arith.constant 0 : index
    %471 = vector.load %arg5[%c4_278, %c0_279, %c0_280] : memref<22x32x32xf32, #tpu.memory_space<vmem>>, vector<1x32x32xf32>
    %472 = vector.shape_cast %471 : vector<1x32x32xf32> to vector<32x32xf32>
    %c5_281 = arith.constant 5 : index
    %c0_282 = arith.constant 0 : index
    %c0_283 = arith.constant 0 : index
    %473 = vector.load %arg5[%c5_281, %c0_282, %c0_283] : memref<22x32x32xf32, #tpu.memory_space<vmem>>, vector<1x32x32xf32>
    %474 = vector.shape_cast %473 : vector<1x32x32xf32> to vector<32x32xf32>
    %cst_284 = arith.constant dense<0.000000e+00> : vector<32x32xf32>
    %475 = tpu.matmul %472, %474, %cst_284 {dimension_numbers = #tpu.dot_dimension_numbers<[1], [0], [0], [1], [0, 0, 1, 1], [], []>} : vector<32x32xf32>, vector<32x32xf32>, vector<32x32xf32> -> vector<32x32xf32>
    %c4_285 = arith.constant 4 : index
    %c0_286 = arith.constant 0 : index
    %c0_287 = arith.constant 0 : index
    %476 = vector.load %arg5[%c4_285, %c0_286, %c0_287] : memref<22x32x32xf32, #tpu.memory_space<vmem>>, vector<1x32x32xf32>
    %477 = vector.shape_cast %476 : vector<1x32x32xf32> to vector<32x32xf32>
    %478 = vector.shape_cast %475 : vector<32x32xf32> to vector<1x32x32xf32>
    tpu.vector_store %arg5[%c4_285, %c0_286, %c0_287], %478 {strides = array<i32>} : memref<22x32x32xf32, #tpu.memory_space<vmem>>, vector<1x32x32xf32>,
    %c6_288 = arith.constant 6 : index
    %c0_289 = arith.constant 0 : index
    %c0_290 = arith.constant 0 : index
    %479 = vector.load %arg5[%c6_288, %c0_289, %c0_290] : memref<22x32x32xf32, #tpu.memory_space<vmem>>, vector<1x32x32xf32>
    %480 = vector.shape_cast %479 : vector<1x32x32xf32> to vector<32x32xf32>
    %c7_291 = arith.constant 7 : index
    %c0_292 = arith.constant 0 : index
    %c0_293 = arith.constant 0 : index
    %481 = vector.load %arg5[%c7_291, %c0_292, %c0_293] : memref<22x32x32xf32, #tpu.memory_space<vmem>>, vector<1x32x32xf32>
    %482 = vector.shape_cast %481 : vector<1x32x32xf32> to vector<32x32xf32>
    %cst_294 = arith.constant dense<0.000000e+00> : vector<32x32xf32>
    %483 = tpu.matmul %480, %482, %cst_294 {dimension_numbers = #tpu.dot_dimension_numbers<[1], [0], [0], [1], [0, 0, 1, 1], [], []>} : vector<32x32xf32>, vector<32x32xf32>, vector<32x32xf32> -> vector<32x32xf32>
    %c6_295 = arith.constant 6 : index
    %c0_296 = arith.constant 0 : index
    %c0_297 = arith.constant 0 : index
    %484 = vector.load %arg5[%c6_295, %c0_296, %c0_297] : memref<22x32x32xf32, #tpu.memory_space<vmem>>, vector<1x32x32xf32>
    %485 = vector.shape_cast %484 : vector<1x32x32xf32> to vector<32x32xf32>
    %486 = vector.shape_cast %483 : vector<32x32xf32> to vector<1x32x32xf32>
    tpu.vector_store %arg5[%c6_295, %c0_296, %c0_297], %486 {strides = array<i32>} : memref<22x32x32xf32, #tpu.memory_space<vmem>>, vector<1x32x32xf32>,
    %c8_298 = arith.constant 8 : index
    %c0_299 = arith.constant 0 : index
    %c0_300 = arith.constant 0 : index
    %487 = vector.load %arg5[%c8_298, %c0_299, %c0_300] : memref<22x32x32xf32, #tpu.memory_space<vmem>>, vector<1x32x32xf32>
    %488 = vector.shape_cast %487 : vector<1x32x32xf32> to vector<32x32xf32>
    %c9_301 = arith.constant 9 : index
    %c0_302 = arith.constant 0 : index
    %c0_303 = arith.constant 0 : index
    %489 = vector.load %arg5[%c9_301, %c0_302, %c0_303] : memref<22x32x32xf32, #tpu.memory_space<vmem>>, vector<1x32x32xf32>
    %490 = vector.shape_cast %489 : vector<1x32x32xf32> to vector<32x32xf32>
    %cst_304 = arith.constant dense<0.000000e+00> : vector<32x32xf32>
    %491 = tpu.matmul %488, %490, %cst_304 {dimension_numbers = #tpu.dot_dimension_numbers<[1], [0], [0], [1], [0, 0, 1, 1], [], []>} : vector<32x32xf32>, vector<32x32xf32>, vector<32x32xf32> -> vector<32x32xf32>
    %c8_305 = arith.constant 8 : index
    %c0_306 = arith.constant 0 : index
    %c0_307 = arith.constant 0 : index
    %492 = vector.load %arg5[%c8_305, %c0_306, %c0_307] : memref<22x32x32xf32, #tpu.memory_space<vmem>>, vector<1x32x32xf32>
    %493 = vector.shape_cast %492 : vector<1x32x32xf32> to vector<32x32xf32>
    %494 = vector.shape_cast %491 : vector<32x32xf32> to vector<1x32x32xf32>
    tpu.vector_store %arg5[%c8_305, %c0_306, %c0_307], %494 {strides = array<i32>} : memref<22x32x32xf32, #tpu.memory_space<vmem>>, vector<1x32x32xf32>,
    %c10_308 = arith.constant 10 : index
    %c0_309 = arith.constant 0 : index
    %c0_310 = arith.constant 0 : index
    %495 = vector.load %arg5[%c10_308, %c0_309, %c0_310] : memref<22x32x32xf32, #tpu.memory_space<vmem>>, vector<1x32x32xf32>
    %496 = vector.shape_cast %495 : vector<1x32x32xf32> to vector<32x32xf32>
    %c11_311 = arith.constant 11 : index
    %c0_312 = arith.constant 0 : index
    %c0_313 = arith.constant 0 : index
    %497 = vector.load %arg5[%c11_311, %c0_312, %c0_313] : memref<22x32x32xf32, #tpu.memory_space<vmem>>, vector<1x32x32xf32>
    %498 = vector.shape_cast %497 : vector<1x32x32xf32> to vector<32x32xf32>
    %cst_314 = arith.constant dense<0.000000e+00> : vector<32x32xf32>
    %499 = tpu.matmul %496, %498, %cst_314 {dimension_numbers = #tpu.dot_dimension_numbers<[1], [0], [0], [1], [0, 0, 1, 1], [], []>} : vector<32x32xf32>, vector<32x32xf32>, vector<32x32xf32> -> vector<32x32xf32>
    %c10_315 = arith.constant 10 : index
    %c0_316 = arith.constant 0 : index
    %c0_317 = arith.constant 0 : index
    %500 = vector.load %arg5[%c10_315, %c0_316, %c0_317] : memref<22x32x32xf32, #tpu.memory_space<vmem>>, vector<1x32x32xf32>
    %501 = vector.shape_cast %500 : vector<1x32x32xf32> to vector<32x32xf32>
    %502 = vector.shape_cast %499 : vector<32x32xf32> to vector<1x32x32xf32>
    tpu.vector_store %arg5[%c10_315, %c0_316, %c0_317], %502 {strides = array<i32>} : memref<22x32x32xf32, #tpu.memory_space<vmem>>, vector<1x32x32xf32>,
    %c12_318 = arith.constant 12 : index
    %c0_319 = arith.constant 0 : index
    %c0_320 = arith.constant 0 : index
    %503 = vector.load %arg5[%c12_318, %c0_319, %c0_320] : memref<22x32x32xf32, #tpu.memory_space<vmem>>, vector<1x32x32xf32>
    %504 = vector.shape_cast %503 : vector<1x32x32xf32> to vector<32x32xf32>
    %c13_321 = arith.constant 13 : index
    %c0_322 = arith.constant 0 : index
    %c0_323 = arith.constant 0 : index
    %505 = vector.load %arg5[%c13_321, %c0_322, %c0_323] : memref<22x32x32xf32, #tpu.memory_space<vmem>>, vector<1x32x32xf32>
    %506 = vector.shape_cast %505 : vector<1x32x32xf32> to vector<32x32xf32>
    %cst_324 = arith.constant dense<0.000000e+00> : vector<32x32xf32>
    %507 = tpu.matmul %504, %506, %cst_324 {dimension_numbers = #tpu.dot_dimension_numbers<[1], [0], [0], [1], [0, 0, 1, 1], [], []>} : vector<32x32xf32>, vector<32x32xf32>, vector<32x32xf32> -> vector<32x32xf32>
    %c12_325 = arith.constant 12 : index
    %c0_326 = arith.constant 0 : index
    %c0_327 = arith.constant 0 : index
    %508 = vector.load %arg5[%c12_325, %c0_326, %c0_327] : memref<22x32x32xf32, #tpu.memory_space<vmem>>, vector<1x32x32xf32>
    %509 = vector.shape_cast %508 : vector<1x32x32xf32> to vector<32x32xf32>
    %510 = vector.shape_cast %507 : vector<32x32xf32> to vector<1x32x32xf32>
    tpu.vector_store %arg5[%c12_325, %c0_326, %c0_327], %510 {strides = array<i32>} : memref<22x32x32xf32, #tpu.memory_space<vmem>>, vector<1x32x32xf32>,
    %c14_328 = arith.constant 14 : index
    %c0_329 = arith.constant 0 : index
    %c0_330 = arith.constant 0 : index
    %511 = vector.load %arg5[%c14_328, %c0_329, %c0_330] : memref<22x32x32xf32, #tpu.memory_space<vmem>>, vector<1x32x32xf32>
    %512 = vector.shape_cast %511 : vector<1x32x32xf32> to vector<32x32xf32>
    %c15_331 = arith.constant 15 : index
    %c0_332 = arith.constant 0 : index
    %c0_333 = arith.constant 0 : index
    %513 = vector.load %arg5[%c15_331, %c0_332, %c0_333] : memref<22x32x32xf32, #tpu.memory_space<vmem>>, vector<1x32x32xf32>
    %514 = vector.shape_cast %513 : vector<1x32x32xf32> to vector<32x32xf32>
    %cst_334 = arith.constant dense<0.000000e+00> : vector<32x32xf32>
    %515 = tpu.matmul %512, %514, %cst_334 {dimension_numbers = #tpu.dot_dimension_numbers<[1], [0], [0], [1], [0, 0, 1, 1], [], []>} : vector<32x32xf32>, vector<32x32xf32>, vector<32x32xf32> -> vector<32x32xf32>
    %c14_335 = arith.constant 14 : index
    %c0_336 = arith.constant 0 : index
    %c0_337 = arith.constant 0 : index
    %516 = vector.load %arg5[%c14_335, %c0_336, %c0_337] : memref<22x32x32xf32, #tpu.memory_space<vmem>>, vector<1x32x32xf32>
    %517 = vector.shape_cast %516 : vector<1x32x32xf32> to vector<32x32xf32>
    %518 = vector.shape_cast %515 : vector<32x32xf32> to vector<1x32x32xf32>
    tpu.vector_store %arg5[%c14_335, %c0_336, %c0_337], %518 {strides = array<i32>} : memref<22x32x32xf32, #tpu.memory_space<vmem>>, vector<1x32x32xf32>,
    %c16_338 = arith.constant 16 : index
    %c0_339 = arith.constant 0 : index
    %c0_340 = arith.constant 0 : index
    %519 = vector.load %arg5[%c16_338, %c0_339, %c0_340] : memref<22x32x32xf32, #tpu.memory_space<vmem>>, vector<1x32x32xf32>
    %520 = vector.shape_cast %519 : vector<1x32x32xf32> to vector<32x32xf32>
    %c17_341 = arith.constant 17 : index
    %c0_342 = arith.constant 0 : index
    %c0_343 = arith.constant 0 : index
    %521 = vector.load %arg5[%c17_341, %c0_342, %c0_343] : memref<22x32x32xf32, #tpu.memory_space<vmem>>, vector<1x32x32xf32>
    %522 = vector.shape_cast %521 : vector<1x32x32xf32> to vector<32x32xf32>
    %cst_344 = arith.constant dense<0.000000e+00> : vector<32x32xf32>
    %523 = tpu.matmul %520, %522, %cst_344 {dimension_numbers = #tpu.dot_dimension_numbers<[1], [0], [0], [1], [0, 0, 1, 1], [], []>} : vector<32x32xf32>, vector<32x32xf32>, vector<32x32xf32> -> vector<32x32xf32>
    %c16_345 = arith.constant 16 : index
    %c0_346 = arith.constant 0 : index
    %c0_347 = arith.constant 0 : index
    %524 = vector.load %arg5[%c16_345, %c0_346, %c0_347] : memref<22x32x32xf32, #tpu.memory_space<vmem>>, vector<1x32x32xf32>
    %525 = vector.shape_cast %524 : vector<1x32x32xf32> to vector<32x32xf32>
    %526 = vector.shape_cast %523 : vector<32x32xf32> to vector<1x32x32xf32>
    tpu.vector_store %arg5[%c16_345, %c0_346, %c0_347], %526 {strides = array<i32>} : memref<22x32x32xf32, #tpu.memory_space<vmem>>, vector<1x32x32xf32>,
    %c18_348 = arith.constant 18 : index
    %c0_349 = arith.constant 0 : index
    %c0_350 = arith.constant 0 : index
    %527 = vector.load %arg5[%c18_348, %c0_349, %c0_350] : memref<22x32x32xf32, #tpu.memory_space<vmem>>, vector<1x32x32xf32>
    %528 = vector.shape_cast %527 : vector<1x32x32xf32> to vector<32x32xf32>
    %c19_351 = arith.constant 19 : index
    %c0_352 = arith.constant 0 : index
    %c0_353 = arith.constant 0 : index
    %529 = vector.load %arg5[%c19_351, %c0_352, %c0_353] : memref<22x32x32xf32, #tpu.memory_space<vmem>>, vector<1x32x32xf32>
    %530 = vector.shape_cast %529 : vector<1x32x32xf32> to vector<32x32xf32>
    %cst_354 = arith.constant dense<0.000000e+00> : vector<32x32xf32>
    %531 = tpu.matmul %528, %530, %cst_354 {dimension_numbers = #tpu.dot_dimension_numbers<[1], [0], [0], [1], [0, 0, 1, 1], [], []>} : vector<32x32xf32>, vector<32x32xf32>, vector<32x32xf32> -> vector<32x32xf32>
    %c18_355 = arith.constant 18 : index
    %c0_356 = arith.constant 0 : index
    %c0_357 = arith.constant 0 : index
    %532 = vector.load %arg5[%c18_355, %c0_356, %c0_357] : memref<22x32x32xf32, #tpu.memory_space<vmem>>, vector<1x32x32xf32>
    %533 = vector.shape_cast %532 : vector<1x32x32xf32> to vector<32x32xf32>
    %534 = vector.shape_cast %531 : vector<32x32xf32> to vector<1x32x32xf32>
    tpu.vector_store %arg5[%c18_355, %c0_356, %c0_357], %534 {strides = array<i32>} : memref<22x32x32xf32, #tpu.memory_space<vmem>>, vector<1x32x32xf32>,
    %c20_358 = arith.constant 20 : index
    %c0_359 = arith.constant 0 : index
    %c0_360 = arith.constant 0 : index
    %535 = vector.load %arg5[%c20_358, %c0_359, %c0_360] : memref<22x32x32xf32, #tpu.memory_space<vmem>>, vector<1x32x32xf32>
    %536 = vector.shape_cast %535 : vector<1x32x32xf32> to vector<32x32xf32>
    %c21_361 = arith.constant 21 : index
    %c0_362 = arith.constant 0 : index
    %c0_363 = arith.constant 0 : index
    %537 = vector.load %arg5[%c21_361, %c0_362, %c0_363] : memref<22x32x32xf32, #tpu.memory_space<vmem>>, vector<1x32x32xf32>
    %538 = vector.shape_cast %537 : vector<1x32x32xf32> to vector<32x32xf32>
    %cst_364 = arith.constant dense<0.000000e+00> : vector<32x32xf32>
    %539 = tpu.matmul %536, %538, %cst_364 {dimension_numbers = #tpu.dot_dimension_numbers<[1], [0], [0], [1], [0, 0, 1, 1], [], []>} : vector<32x32xf32>, vector<32x32xf32>, vector<32x32xf32> -> vector<32x32xf32>
    %c20_365 = arith.constant 20 : index
    %c0_366 = arith.constant 0 : index
    %c0_367 = arith.constant 0 : index
    %540 = vector.load %arg5[%c20_365, %c0_366, %c0_367] : memref<22x32x32xf32, #tpu.memory_space<vmem>>, vector<1x32x32xf32>
    %541 = vector.shape_cast %540 : vector<1x32x32xf32> to vector<32x32xf32>
    %542 = vector.shape_cast %539 : vector<32x32xf32> to vector<1x32x32xf32>
    tpu.vector_store %arg5[%c20_365, %c0_366, %c0_367], %542 {strides = array<i32>} : memref<22x32x32xf32, #tpu.memory_space<vmem>>, vector<1x32x32xf32>,
    %c0_368 = arith.constant 0 : index
    %c0_369 = arith.constant 0 : index
    %c0_370 = arith.constant 0 : index
    %543 = vector.load %arg5[%c0_368, %c0_369, %c0_370] : memref<22x32x32xf32, #tpu.memory_space<vmem>>, vector<1x32x32xf32>
    %544 = vector.shape_cast %543 : vector<1x32x32xf32> to vector<32x32xf32>
    %c2_371 = arith.constant 2 : index
    %c0_372 = arith.constant 0 : index
    %c0_373 = arith.constant 0 : index
    %545 = vector.load %arg5[%c2_371, %c0_372, %c0_373] : memref<22x32x32xf32, #tpu.memory_space<vmem>>, vector<1x32x32xf32>
    %546 = vector.shape_cast %545 : vector<1x32x32xf32> to vector<32x32xf32>
    %cst_374 = arith.constant dense<0.000000e+00> : vector<32x32xf32>
    %547 = tpu.matmul %544, %546, %cst_374 {dimension_numbers = #tpu.dot_dimension_numbers<[1], [0], [0], [1], [0, 0, 1, 1], [], []>} : vector<32x32xf32>, vector<32x32xf32>, vector<32x32xf32> -> vector<32x32xf32>
    %c0_375 = arith.constant 0 : index
    %c0_376 = arith.constant 0 : index
    %c0_377 = arith.constant 0 : index
    %548 = vector.load %arg5[%c0_375, %c0_376, %c0_377] : memref<22x32x32xf32, #tpu.memory_space<vmem>>, vector<1x32x32xf32>
    %549 = vector.shape_cast %548 : vector<1x32x32xf32> to vector<32x32xf32>
    %550 = vector.shape_cast %547 : vector<32x32xf32> to vector<1x32x32xf32>
    tpu.vector_store %arg5[%c0_375, %c0_376, %c0_377], %550 {strides = array<i32>} : memref<22x32x32xf32, #tpu.memory_space<vmem>>, vector<1x32x32xf32>,
    %c4_378 = arith.constant 4 : index
    %c0_379 = arith.constant 0 : index
    %c0_380 = arith.constant 0 : index
    %551 = vector.load %arg5[%c4_378, %c0_379, %c0_380] : memref<22x32x32xf32, #tpu.memory_space<vmem>>, vector<1x32x32xf32>
    %552 = vector.shape_cast %551 : vector<1x32x32xf32> to vector<32x32xf32>
    %c6_381 = arith.constant 6 : index
    %c0_382 = arith.constant 0 : index
    %c0_383 = arith.constant 0 : index
    %553 = vector.load %arg5[%c6_381, %c0_382, %c0_383] : memref<22x32x32xf32, #tpu.memory_space<vmem>>, vector<1x32x32xf32>
    %554 = vector.shape_cast %553 : vector<1x32x32xf32> to vector<32x32xf32>
    %cst_384 = arith.constant dense<0.000000e+00> : vector<32x32xf32>
    %555 = tpu.matmul %552, %554, %cst_384 {dimension_numbers = #tpu.dot_dimension_numbers<[1], [0], [0], [1], [0, 0, 1, 1], [], []>} : vector<32x32xf32>, vector<32x32xf32>, vector<32x32xf32> -> vector<32x32xf32>
    %c4_385 = arith.constant 4 : index
    %c0_386 = arith.constant 0 : index
    %c0_387 = arith.constant 0 : index
    %556 = vector.load %arg5[%c4_385, %c0_386, %c0_387] : memref<22x32x32xf32, #tpu.memory_space<vmem>>, vector<1x32x32xf32>
    %557 = vector.shape_cast %556 : vector<1x32x32xf32> to vector<32x32xf32>
    %558 = vector.shape_cast %555 : vector<32x32xf32> to vector<1x32x32xf32>
    tpu.vector_store %arg5[%c4_385, %c0_386, %c0_387], %558 {strides = array<i32>} : memref<22x32x32xf32, #tpu.memory_space<vmem>>, vector<1x32x32xf32>,
    %c8_388 = arith.constant 8 : index
    %c0_389 = arith.constant 0 : index
    %c0_390 = arith.constant 0 : index
    %559 = vector.load %arg5[%c8_388, %c0_389, %c0_390] : memref<22x32x32xf32, #tpu.memory_space<vmem>>, vector<1x32x32xf32>
    %560 = vector.shape_cast %559 : vector<1x32x32xf32> to vector<32x32xf32>
    %c10_391 = arith.constant 10 : index
    %c0_392 = arith.constant 0 : index
    %c0_393 = arith.constant 0 : index
    %561 = vector.load %arg5[%c10_391, %c0_392, %c0_393] : memref<22x32x32xf32, #tpu.memory_space<vmem>>, vector<1x32x32xf32>
    %562 = vector.shape_cast %561 : vector<1x32x32xf32> to vector<32x32xf32>
    %cst_394 = arith.constant dense<0.000000e+00> : vector<32x32xf32>
    %563 = tpu.matmul %560, %562, %cst_394 {dimension_numbers = #tpu.dot_dimension_numbers<[1], [0], [0], [1], [0, 0, 1, 1], [], []>} : vector<32x32xf32>, vector<32x32xf32>, vector<32x32xf32> -> vector<32x32xf32>
    %c8_395 = arith.constant 8 : index
    %c0_396 = arith.constant 0 : index
    %c0_397 = arith.constant 0 : index
    %564 = vector.load %arg5[%c8_395, %c0_396, %c0_397] : memref<22x32x32xf32, #tpu.memory_space<vmem>>, vector<1x32x32xf32>
    %565 = vector.shape_cast %564 : vector<1x32x32xf32> to vector<32x32xf32>
    %566 = vector.shape_cast %563 : vector<32x32xf32> to vector<1x32x32xf32>
    tpu.vector_store %arg5[%c8_395, %c0_396, %c0_397], %566 {strides = array<i32>} : memref<22x32x32xf32, #tpu.memory_space<vmem>>, vector<1x32x32xf32>,
    %c12_398 = arith.constant 12 : index
    %c0_399 = arith.constant 0 : index
    %c0_400 = arith.constant 0 : index
    %567 = vector.load %arg5[%c12_398, %c0_399, %c0_400] : memref<22x32x32xf32, #tpu.memory_space<vmem>>, vector<1x32x32xf32>
    %568 = vector.shape_cast %567 : vector<1x32x32xf32> to vector<32x32xf32>
    %c14_401 = arith.constant 14 : index
    %c0_402 = arith.constant 0 : index
    %c0_403 = arith.constant 0 : index
    %569 = vector.load %arg5[%c14_401, %c0_402, %c0_403] : memref<22x32x32xf32, #tpu.memory_space<vmem>>, vector<1x32x32xf32>
    %570 = vector.shape_cast %569 : vector<1x32x32xf32> to vector<32x32xf32>
    %cst_404 = arith.constant dense<0.000000e+00> : vector<32x32xf32>
    %571 = tpu.matmul %568, %570, %cst_404 {dimension_numbers = #tpu.dot_dimension_numbers<[1], [0], [0], [1], [0, 0, 1, 1], [], []>} : vector<32x32xf32>, vector<32x32xf32>, vector<32x32xf32> -> vector<32x32xf32>
    %c12_405 = arith.constant 12 : index
    %c0_406 = arith.constant 0 : index
    %c0_407 = arith.constant 0 : index
    %572 = vector.load %arg5[%c12_405, %c0_406, %c0_407] : memref<22x32x32xf32, #tpu.memory_space<vmem>>, vector<1x32x32xf32>
    %573 = vector.shape_cast %572 : vector<1x32x32xf32> to vector<32x32xf32>
    %574 = vector.shape_cast %571 : vector<32x32xf32> to vector<1x32x32xf32>
    tpu.vector_store %arg5[%c12_405, %c0_406, %c0_407], %574 {strides = array<i32>} : memref<22x32x32xf32, #tpu.memory_space<vmem>>, vector<1x32x32xf32>,
    %c16_408 = arith.constant 16 : index
    %c0_409 = arith.constant 0 : index
    %c0_410 = arith.constant 0 : index
    %575 = vector.load %arg5[%c16_408, %c0_409, %c0_410] : memref<22x32x32xf32, #tpu.memory_space<vmem>>, vector<1x32x32xf32>
    %576 = vector.shape_cast %575 : vector<1x32x32xf32> to vector<32x32xf32>
    %c18_411 = arith.constant 18 : index
    %c0_412 = arith.constant 0 : index
    %c0_413 = arith.constant 0 : index
    %577 = vector.load %arg5[%c18_411, %c0_412, %c0_413] : memref<22x32x32xf32, #tpu.memory_space<vmem>>, vector<1x32x32xf32>
    %578 = vector.shape_cast %577 : vector<1x32x32xf32> to vector<32x32xf32>
    %cst_414 = arith.constant dense<0.000000e+00> : vector<32x32xf32>
    %579 = tpu.matmul %576, %578, %cst_414 {dimension_numbers = #tpu.dot_dimension_numbers<[1], [0], [0], [1], [0, 0, 1, 1], [], []>} : vector<32x32xf32>, vector<32x32xf32>, vector<32x32xf32> -> vector<32x32xf32>
    %c16_415 = arith.constant 16 : index
    %c0_416 = arith.constant 0 : index
    %c0_417 = arith.constant 0 : index
    %580 = vector.load %arg5[%c16_415, %c0_416, %c0_417] : memref<22x32x32xf32, #tpu.memory_space<vmem>>, vector<1x32x32xf32>
    %581 = vector.shape_cast %580 : vector<1x32x32xf32> to vector<32x32xf32>
    %582 = vector.shape_cast %579 : vector<32x32xf32> to vector<1x32x32xf32>
    tpu.vector_store %arg5[%c16_415, %c0_416, %c0_417], %582 {strides = array<i32>} : memref<22x32x32xf32, #tpu.memory_space<vmem>>, vector<1x32x32xf32>,
    %c0_418 = arith.constant 0 : index
    %c0_419 = arith.constant 0 : index
    %c0_420 = arith.constant 0 : index
    %583 = vector.load %arg5[%c0_418, %c0_419, %c0_420] : memref<22x32x32xf32, #tpu.memory_space<vmem>>, vector<1x32x32xf32>
    %584 = vector.shape_cast %583 : vector<1x32x32xf32> to vector<32x32xf32>
    %c4_421 = arith.constant 4 : index
    %c0_422 = arith.constant 0 : index
    %c0_423 = arith.constant 0 : index
    %585 = vector.load %arg5[%c4_421, %c0_422, %c0_423] : memref<22x32x32xf32, #tpu.memory_space<vmem>>, vector<1x32x32xf32>
    %586 = vector.shape_cast %585 : vector<1x32x32xf32> to vector<32x32xf32>
    %cst_424 = arith.constant dense<0.000000e+00> : vector<32x32xf32>
    %587 = tpu.matmul %584, %586, %cst_424 {dimension_numbers = #tpu.dot_dimension_numbers<[1], [0], [0], [1], [0, 0, 1, 1], [], []>} : vector<32x32xf32>, vector<32x32xf32>, vector<32x32xf32> -> vector<32x32xf32>
    %c0_425 = arith.constant 0 : index
    %c0_426 = arith.constant 0 : index
    %c0_427 = arith.constant 0 : index
    %588 = vector.load %arg5[%c0_425, %c0_426, %c0_427] : memref<22x32x32xf32, #tpu.memory_space<vmem>>, vector<1x32x32xf32>
    %589 = vector.shape_cast %588 : vector<1x32x32xf32> to vector<32x32xf32>
    %590 = vector.shape_cast %587 : vector<32x32xf32> to vector<1x32x32xf32>
    tpu.vector_store %arg5[%c0_425, %c0_426, %c0_427], %590 {strides = array<i32>} : memref<22x32x32xf32, #tpu.memory_space<vmem>>, vector<1x32x32xf32>,
    %c8_428 = arith.constant 8 : index
    %c0_429 = arith.constant 0 : index
    %c0_430 = arith.constant 0 : index
    %591 = vector.load %arg5[%c8_428, %c0_429, %c0_430] : memref<22x32x32xf32, #tpu.memory_space<vmem>>, vector<1x32x32xf32>
    %592 = vector.shape_cast %591 : vector<1x32x32xf32> to vector<32x32xf32>
    %c12_431 = arith.constant 12 : index
    %c0_432 = arith.constant 0 : index
    %c0_433 = arith.constant 0 : index
    %593 = vector.load %arg5[%c12_431, %c0_432, %c0_433] : memref<22x32x32xf32, #tpu.memory_space<vmem>>, vector<1x32x32xf32>
    %594 = vector.shape_cast %593 : vector<1x32x32xf32> to vector<32x32xf32>
    %cst_434 = arith.constant dense<0.000000e+00> : vector<32x32xf32>
    %595 = tpu.matmul %592, %594, %cst_434 {dimension_numbers = #tpu.dot_dimension_numbers<[1], [0], [0], [1], [0, 0, 1, 1], [], []>} : vector<32x32xf32>, vector<32x32xf32>, vector<32x32xf32> -> vector<32x32xf32>
    %c8_435 = arith.constant 8 : index
    %c0_436 = arith.constant 0 : index
    %c0_437 = arith.constant 0 : index
    %596 = vector.load %arg5[%c8_435, %c0_436, %c0_437] : memref<22x32x32xf32, #tpu.memory_space<vmem>>, vector<1x32x32xf32>
    %597 = vector.shape_cast %596 : vector<1x32x32xf32> to vector<32x32xf32>
    %598 = vector.shape_cast %595 : vector<32x32xf32> to vector<1x32x32xf32>
    tpu.vector_store %arg5[%c8_435, %c0_436, %c0_437], %598 {strides = array<i32>} : memref<22x32x32xf32, #tpu.memory_space<vmem>>, vector<1x32x32xf32>,
    %c16_438 = arith.constant 16 : index
    %c0_439 = arith.constant 0 : index
    %c0_440 = arith.constant 0 : index
    %599 = vector.load %arg5[%c16_438, %c0_439, %c0_440] : memref<22x32x32xf32, #tpu.memory_space<vmem>>, vector<1x32x32xf32>
    %600 = vector.shape_cast %599 : vector<1x32x32xf32> to vector<32x32xf32>
    %c20_441 = arith.constant 20 : index
    %c0_442 = arith.constant 0 : index
    %c0_443 = arith.constant 0 : index
    %601 = vector.load %arg5[%c20_441, %c0_442, %c0_443] : memref<22x32x32xf32, #tpu.memory_space<vmem>>, vector<1x32x32xf32>
    %602 = vector.shape_cast %601 : vector<1x32x32xf32> to vector<32x32xf32>
    %cst_444 = arith.constant dense<0.000000e+00> : vector<32x32xf32>
    %603 = tpu.matmul %600, %602, %cst_444 {dimension_numbers = #tpu.dot_dimension_numbers<[1], [0], [0], [1], [0, 0, 1, 1], [], []>} : vector<32x32xf32>, vector<32x32xf32>, vector<32x32xf32> -> vector<32x32xf32>
    %c16_445 = arith.constant 16 : index
    %c0_446 = arith.constant 0 : index
    %c0_447 = arith.constant 0 : index
    %604 = vector.load %arg5[%c16_445, %c0_446, %c0_447] : memref<22x32x32xf32, #tpu.memory_space<vmem>>, vector<1x32x32xf32>
    %605 = vector.shape_cast %604 : vector<1x32x32xf32> to vector<32x32xf32>
    %606 = vector.shape_cast %603 : vector<32x32xf32> to vector<1x32x32xf32>
    tpu.vector_store %arg5[%c16_445, %c0_446, %c0_447], %606 {strides = array<i32>} : memref<22x32x32xf32, #tpu.memory_space<vmem>>, vector<1x32x32xf32>,
    %c0_448 = arith.constant 0 : index
    %c0_449 = arith.constant 0 : index
    %c0_450 = arith.constant 0 : index
    %607 = vector.load %arg5[%c0_448, %c0_449, %c0_450] : memref<22x32x32xf32, #tpu.memory_space<vmem>>, vector<1x32x32xf32>
    %608 = vector.shape_cast %607 : vector<1x32x32xf32> to vector<32x32xf32>
    %609 = vector.extract_strided_slice %608 {offsets = [0, 0], sizes = [1, 32], strides = [1, 1]} : vector<32x32xf32> to vector<1x32xf32>
    %c8_451 = arith.constant 8 : index
    %c0_452 = arith.constant 0 : index
    %c0_453 = arith.constant 0 : index
    %610 = vector.load %arg5[%c8_451, %c0_452, %c0_453] : memref<22x32x32xf32, #tpu.memory_space<vmem>>, vector<1x32x32xf32>
    %611 = vector.shape_cast %610 : vector<1x32x32xf32> to vector<32x32xf32>
    %cst_454 = arith.constant dense<0.000000e+00> : vector<1x32xf32>
    %612 = tpu.matmul %609, %611, %cst_454 {dimension_numbers = #tpu.dot_dimension_numbers<[1], [0], [0], [1], [0, 0, 1, 1], [], []>} : vector<1x32xf32>, vector<32x32xf32>, vector<1x32xf32> -> vector<1x32xf32>
    %c16_455 = arith.constant 16 : index
    %c0_456 = arith.constant 0 : index
    %c0_457 = arith.constant 0 : index
    %613 = vector.load %arg5[%c16_455, %c0_456, %c0_457] : memref<22x32x32xf32, #tpu.memory_space<vmem>>, vector<1x32x32xf32>
    %614 = vector.shape_cast %613 : vector<1x32x32xf32> to vector<32x32xf32>
    %cst_458 = arith.constant dense<0.000000e+00> : vector<1x32xf32>
    %615 = tpu.matmul %612, %614, %cst_458 {dimension_numbers = #tpu.dot_dimension_numbers<[1], [0], [0], [1], [0, 0, 1, 1], [], []>} : vector<1x32xf32>, vector<32x32xf32>, vector<1x32xf32> -> vector<1x32xf32>
    %616 = arith.mulf %615, %615 : vector<1x32xf32>
    %c0_459 = arith.constant 0 : index
    %c0_460 = arith.constant 0 : index
    %617 = vector.load %arg3[%c0_459, %c0_460] : memref<32x3xf32, #tpu.memory_space<vmem>>, vector<32x3xf32>
    %cst_461 = arith.constant dense<0.000000e+00> : vector<1x3xf32>
    %618 = tpu.matmul %616, %617, %cst_461 {dimension_numbers = #tpu.dot_dimension_numbers<[1], [0], [0], [1], [0, 0, 1, 1], [], []>} : vector<1x32xf32>, vector<32x3xf32>, vector<1x3xf32> -> vector<1x3xf32>
    %c0_462 = arith.constant 0 : index
    %c0_463 = arith.constant 0 : index
    %619 = vector.load %arg4[%c0_462, %c0_463] : memref<1x3xf32, #tpu.memory_space<vmem>>, vector<1x3xf32>
    tpu.vector_store %arg4[%c0_462, %c0_463], %618 {strides = array<i32>} : memref<1x3xf32, #tpu.memory_space<vmem>>, vector<1x3xf32>,
    return
  }
}

</mosaic_0001>

<bundles_post_ra>
// kernel: cos.1
= control target key start
LH: loop header
LB: loop body
LE: loop exit
PB: predicated region body
PF: predicated region fallthrough
CT: control target
= control target key end

     0   :  { %v125_v12 = vmov 683565275   ;;  %v126_v14 = vmov 2475754826   ;;  %v127_v16 = vmov 2131351028   ;;  %s168_s0 = inlined_call_operand.vmem [shape: f32[40], index: 0, kind: input, shape index: {}]   ;;  %s169_s1 = inlined_call_operand.vmem [shape: f32[40], index: 1, kind: output, shape index: {}]  }
   0x1   :  { %v144_v0 = vld [vmem:[%s168_s0] sm:$0x1]  ;;  %v128_v18 = vmov 2102212464   ;;  %v129_v20 = vmov 920167782  }
   0x2   :  { %v6_v1 = vand.u32 2139095040, %v144_v0  ;;  %v3_v3 = vand.u32 2147483647, %v144_v0  ;;  %v130_v27 = vmov 1326507024   ;;  %vm5_vm7 = vcmp.lt.s32.totalorder %v144_v0, 0 }
   0x3   :  { %vm95_vm12 = vweird.f32 %v144_v0 }
   0x4   :  { %v7_v2 = vshrl.u32 %v6_v1, 23  ;;  %v10_v6 = vand.u32 8388607, %v3_v3  ;;  %vm4_vm8 = vcmp.le.f32.partialorder %v3_v3, 0.7853982 }
   0x6   :  { %v107_v4 = vadd.s32 4294967169, %v7_v2  ;;  %v11_v9 = vor.u32 8388608, %v10_v6 }
   0x8   :  { %v13_v5 = vadd.s32 1, %v107_v4  ;;  %v51_v29 = vshll.u32 %v11_v9, 8 }
   0xa   :  { %vm14_vm0 = vcmp.gt.s32.totalorder %v13_v5, 0 }
   0xb   :  { %v15_v7 = vsel %vm14_vm0, %v13_v5, 0 }
   0xc   :  { %v17_v8 = vand.u32 31, %v15_v7  ;;  %v16_v10 = vshrl.u32 %v15_v7, 5 }
   0xe   :  { %v18_v11 = vsub.s32 32, %v17_v8  ;;  %v20_v13 = vshll.u32 %v125_v12, %v17_v8  ;;  %v23_v15 = vshll.u32 %v126_v14, %v17_v8  ;;  %v26_v17 = vshll.u32 %v127_v16, %v17_v8 }
   0xf   :  { %v29_v19 = vshll.u32 %v128_v18, %v17_v8  ;;  %v32_v21 = vshll.u32 %v129_v20, %v17_v8  ;;  %vm35_vm1 = vcmp.lt.s32.totalorder %v16_v10, 1  ;;  %vm38_vm2 = vcmp.lt.s32.totalorder %v16_v10, 4 }
  0x10   :  { %v19_v22 = vshrl.u32 %v125_v12, %v18_v11  ;;  %v21_v23 = vshrl.u32 %v126_v14, %v18_v11  ;;  %v24_v24 = vshrl.u32 %v127_v16, %v18_v11  ;;  %v27_v25 = vshrl.u32 %v128_v18, %v18_v11 }
  0x11   :  { %v30_v26 = vshrl.u32 %v129_v20, %v18_v11  ;;  %v33_v28 = vshrl.u32 %v130_v27, %v18_v11  ;;  %vm36_vm3 = vcmp.lt.s32.totalorder %v16_v10, 2  ;;  %vm37_vm4 = vcmp.lt.s32.totalorder %v16_v10, 3 }
  0x12   :  { %v22_v30 = vor.u32 %v21_v23, %v20_v13  ;;  %v25_v31 = vor.u32 %v24_v24, %v23_v15  ;;  %v28_v32 = vor.u32 %v27_v25, %v26_v17 }
  0x13   :  { %v31_v33 = vor.u32 %v30_v26, %v29_v19  ;;  %v34_v34 = vor.u32 %v33_v28, %v32_v21 }
  0x14   :  { %v39_v35 = vsel %vm35_vm1, %v19_v22, %v22_v30  ;;  %v40_v36 = vsel %vm38_vm2, %v28_v32, 2102212464  ;;  %v43_v37 = vsel %vm35_vm1, %v22_v30, %v25_v31  ;;  %v47_v38 = vsel %vm35_vm1, %v25_v31, %v28_v32 }
  0x15   :  { %v41_v39 = vsel %vm37_vm4, %v25_v31, %v40_v36  ;;  %v44_v40 = vsel %vm38_vm2, %v31_v33, 920167782  ;;  %v48_v41 = vsel %vm38_vm2, %v34_v34, 1326507024 }
  0x16   :  { %v45_v42 = vsel %vm37_vm4, %v28_v32, %v44_v40  ;;  %v49_v43 = vsel %vm37_vm4, %v31_v33, %v48_v41  ;;  %v42_v44 = vsel %vm36_vm3, %v39_v35, %v41_v39 }
  0x17   :  { %v46_v45 = vsel %vm36_vm3, %v43_v37, %v45_v42  ;;  %v50_v46 = vsel %vm36_vm3, %v47_v38, %v49_v43  ;;  %v58_v51 = vmul.u32 %v51_v29, %v42_v44 }
  0x18   :  { %v150_v47 = vmul.u32.u64.low %v51_v29, %v50_v46  ;;  %v151_v48 = vmul.u32.u64.high %v51_v29, %v50_v46, %v150_v47  ;;  %v153_v49 = vmul.u32.u64.low %v51_v29, %v46_v45  ;;  %v154_v50 = vmul.u32.u64.high %v51_v29, %v46_v45, %v153_v49 }
  0x1a   :  { %vm60_vm5 = vc.u32 %v151_v48, %v153_v49  ;;  %v61_v52 = vadd.s32 1, %v154_v50  ;;  %v59_v63 = vadd.s32 %v153_v49, %v151_v48 }
  0x1c   :  { %v62_v53 = vsel %vm60_vm5, %v61_v52, %v154_v50 }
  0x1d   :  { %v63_v54 = vadd.s32 %v62_v53, %v58_v51 }
  0x1f   :  { %v64_v55 = vadd.s32 536870912, %v63_v54 }
  0x21   :  { %v65_v56 = vshrl.u32 %v64_v55, 30 }
  0x23   :  { %v66_v57 = vshll.u32 %v65_v56, 30  ;;  %v89_v14 = vsub.s32 4, %v65_v56 }
  0x25   :  { %v67_v58 = vsub.s32 %v63_v54, %v66_v57  ;;  %v90_v17 = vsel %vm5_vm7, %v89_v14, %v65_v56 }
  0x26   :  { %v92_v18 = vsel %vm4_vm8, 0, %v90_v17 }
  0x27   :  { %v69_v59 = vsub.s32 0, %v67_v58  ;;  %v96_v19 = vand.u32 3, %v92_v18 }
  0x29   :  { %v108_v60 = vmin.u32 %v69_v59, %v67_v58  ;;  %vm101_vm9 = vcmp.eq.s32.totalorder %v96_v19, 2  ;;  %vm98_vm10 = vcmp.eq.s32.totalorder %v96_v19, 0  ;;  %vm97_vm11 = vcmp.lt.s32.totalorder %v96_v19, 2 }
  0x2b   :  { %v71_v61 = vclz %v108_v60 }
  0x2d   :  { %v109_v62 = vadd.s32 4294967294, %v71_v61 }
  0x2f   :  { %vm110_vm6 = vcmp.lt.s32.totalorder %v109_v62, 0 }
  0x30   :  { %v74_v1 = vsel %vm110_vm6, 0, %v109_v62 }
  0x31   :  { %v75_v2 = vsub.s32 32, %v74_v1  ;;  %v76_v4 = vshll.u32 %v67_v58, %v74_v1  ;;  %v79_v5 = vsub.s32 4294967266, %v74_v1 }
  0x33   :  { %v77_v6 = vshrl.u32 %v59_v63, %v75_v2  ;;  %v80_v7 = vadd.s32 127, %v79_v5 }
  0x35   :  { %v78_v8 = vor.u32 %v77_v6, %v76_v4  ;;  %v81_v9 = vshll.u32 %v80_v7, 23 }
  0x37   :  { %v82_v10 = vor.u32 4788187, %v81_v9  ;;  %v85_v11 = vcvt.s32.f32 %v78_v8 }
  0x39   :  { %v83_v12 = vand.u32 2147483647, %v82_v10 }
  0x3b   :  { %v86_v13 = vmul.f32 %v85_v11, %v83_v12 }
  0x3d   :  { %v87_v3 = vxor.u32 2147483648, %v86_v13 }
  0x3f   :  { %v88_v15 = vsel %vm5_vm7, %v87_v3, %v86_v13 }
  0x40   :  { %v91_v16 = vsel %vm4_vm8, %v144_v0, %v88_v15 }
  0x41   :  { %121 = vcosq.f32 %v91_v16 }
  0x42   :  { %123 = vsinq.f32 %v91_v16 }
  0x4b   :  { %v122_v20 = vpop.eup %121 }
  0x4c   :  { %v124_v21 = vpop.eup %123  ;;  %v102_v22 = vxor.u32 2147483648, %v122_v20 }
  0x4d   :  { %v99_v23 = vxor.u32 2147483648, %v124_v21 }
  0x4e   :  { %v103_v0 = vsel %vm101_vm9, %v102_v22, %v124_v21 }
  0x4f   :  { %v100_v24 = vsel %vm98_vm10, %v122_v20, %v99_v23 }
  0x50   :  { %v104_v25 = vsel %vm97_vm11, %v100_v24, %v103_v0 }
  0x51   :  { %v105_v26 = vsel %vm95_vm12, nan, %v104_v25 }
  0x52   :  { %106 = vst [vmem:[%s169_s1] sm:$0x1] %v105_v26 }

// kernel: vqc_forward.1
= control target key start
LH: loop header
LB: loop body
LE: loop exit
PB: predicated region body
PF: predicated region fallthrough
CT: control target
= control target key end

     0   :  { %9 = vsyncpa [#allocation6], 0  ;;  %s8172_s0 = inlined_call_operand.vmem [shape: f32[40], index: 0, kind: input, shape index: {}]   ;;  %s8173_s1 = inlined_call_operand.vmem [shape: f32[40], index: 1, kind: input, shape index: {}]   ;;  %s8174_s2 = inlined_call_operand.hbm [shape: f32[14,32,32], index: 2, kind: input, shape index: {}]   ;;  %s8175_s3 = inlined_call_operand.vmem [shape: f32[32,3], index: 3, kind: input, shape index: {}]   ;;  %s8176_s4 = inlined_call_operand.hbm [shape: f32[1,3], index: 4, kind: output, shape index: {}]  }
   0x1   :  { %10 = vsyncpa [#allocation8], 0 }
   0x2   :  { %11 = vsyncpa [#allocation4], 0 }
   0x3   :  { %12 = vsyncpa [#allocation5], 0  ;;  %s19_s17 = sshll.u32 %s8172_s0, 4  ;;  %s29_s20 = sshll.u32 %s8173_s1, 4  ;;  %s20_s17 = int_to_ptr.vmem [resolvable:$true] %s19_s17  ;;  %s30_s20 = int_to_ptr.vmem [resolvable:$true] %s29_s20 }
   0x4   :  { %s6880_s21 = scalar_lea.vmem %s20_s17, 16  ;;  %p6885_p1 = scmp.lt.s32.totalorder %s20_s17, %s20_s17 }
   0x5   :  { %p6881_p0 = scmp.ne.s32.totalorder %s20_s17, %s6880_s21  ;;  %p6886_p2 = scmp.lt.s32.totalorder %s6880_s21, %s6880_s21 }
   0x7   :  { %p6887_p3 = por %p6886_p2, %p6885_p1 }
   0x9   :  { %p6888_p4 = pnand %p6887_p3, %p6881_p0 }
   0xb   :  { %6891 = shalt.err (!%p6888_p4)
}
   0xc   :  { %s6956_s22 = smov [#allocation3]   ;;  %s6892_s23 = scalar_lea.vmem %s30_s20, 16 }
   0xd   :  { %22 = dma.vmem_to_smem %s20_s17, 16, %s6956_s22, [#allocation6]  }
   0xe   :  { %p6893_p5 = scmp.ne.s32.totalorder %s30_s20, %s6892_s23  ;;  %p6897_p6 = scmp.lt.s32.totalorder %s30_s20, %s30_s20 }
   0xf   :  { %p6898_p7 = scmp.lt.s32.totalorder %s6892_s23, %s6892_s23 }
  0x11   :  { %p6899_p8 = por %p6898_p7, %p6897_p6 }
  0x13   :  { %p6900_p9 = pnand %p6899_p8, %p6893_p5 }
  0x15   :  { %6903 = shalt.err (!%p6900_p9)
}
  0x16   :  { %s6957_s0 = smov [#allocation7]   ;;  %s6958_s1 = smov [#allocation9]  }
  0x17   :  { %32 = dma.vmem_to_smem %s30_s20, 16, %s6957_s0, [#allocation8]  }
  0x18   :  { %s38_s24 = sshll.u32 %s6958_s1, 4  ;;  %s6904_s27 = scalar_lea.hbm %s8174_s2, 7168  ;;  %s39_s24 = int_to_ptr.vmem [resolvable:$true] %s38_s24 }
  0x19   :  { %p6905_p10 = scmp.ne.s32.totalorder %s8174_s2, %s6904_s27  ;;  %p6908_p11 = scmp.lt.u32.totalorder %s6904_s27, %s8174_s2 }
  0x1b   :  { %p6910_p12 = pnand %p6908_p11, %p6905_p10 }
  0x1d   :  { %6913 = shalt.err (!%p6910_p12)
}
  0x1e   :  { %s6914_s6 = scalar_lea.vmem %s39_s24, 7168  ;;  %p6919_p0 = scmp.lt.s32.totalorder %s39_s24, %s39_s24 }
  0x1f   :  { %p6915_p13 = scmp.ne.s32.totalorder %s39_s24, %s6914_s6  ;;  %p6920_p1 = scmp.lt.s32.totalorder %s6914_s6, %s6914_s6 }
  0x21   :  { %p6921_p2 = por %p6920_p1, %p6919_p0 }
  0x23   :  { %p6922_p3 = pnand %p6921_p2, %p6915_p13 }
  0x25   :  { %6925 = shalt.err (!%p6922_p3)
}
  0x26   :  { %s6959_s7 = smov 128   ;;  %s6960_s8 = smov 8  }
  0x27   :  { %44 = dma.hbm_to_vmem [thread:$0]  %s8174_s2, 7168, %s39_s24, [#allocation4], %s6959_s7, %s6959_s7, %s6960_s8  }
  0x28   :  { %6948 = dma.done.wait [#allocation6], 16  }
  0x29   :  { %6949 = vsyncadd [#allocation6], 4294967280 }
  0x2a   :  { %6950 = dma.done.wait [#allocation8], 16  }
  0x2b   :  { %6951 = vsyncadd [#allocation8], 4294967280 }
  0x2c   :  { %6952 = dma.done.wait [#allocation4], 7168  }
  0x2d   :  { %6953 = vsyncadd [#allocation4], 4294960128 }
  0x2e   :  { %56 = sfence }
  0x2f   :  { %s5364_s11 = sld [smem:[#allocation3 + $0x3]]  ;;  %s5362_s13 = sld [smem:[#allocation3 + $0x2]]  ;;  %v7008_v0 = vld [vmem:[#allocation9] sm:$0xff]  ;;  %v7010_v1 = vld [vmem:[#allocation9 + $0x8] sm:$0xff]  ;;  %v7020_v4 = vld [vmem:[#allocation9 + $0x10] sm:$0xff]  ;;  %vm103_vm0 = vcmask 261120  }
  0x30   :  { %s5365_s12 = sld [smem:[#allocation7 + $0x3]]  ;;  %s5363_s14 = sld [smem:[#allocation7 + $0x2]]  ;;  %v7016_v2 = vld [vmem:[#allocation9 + $0x80] sm:$0xff]  ;;  %v7018_v3 = vld [vmem:[#allocation9 + $0x88] sm:$0xff]  ;;  %v7022_v5 = vld [vmem:[#allocation9 + $0x18] sm:$0xff]  ;;  %vm6962_vm1 = vmmov 0  }
  0x31   :  { %s7012_s15 = sld [smem:[#allocation3 + $0x1]]  ;;  %v7024_v6 = vld [vmem:[#allocation9 + $0x90] sm:$0xff]  ;;  %v7026_v7 = vld [vmem:[#allocation9 + $0x98] sm:$0xff]  ;;  %s7028_s2 = sld [smem:[#allocation3 + $0x6]]  ;;  %v7036_v14 = vld [vmem:[#allocation9 + $0x60] sm:$0xff]  ;;  %vm5337_vm2 = vcmask 16384  }
  0x32   :  { %s7014_s16 = sld [smem:[#allocation7 + $0x1]]  ;;  %s7030_s17 = sld [smem:[#allocation7 + $0x6]]  ;;  %v7044_v27 = vld [vmem:[#allocation9 + $0x40] sm:$0xff]  ;;  %v7046_v28 = vld [vmem:[#allocation9 + $0x48] sm:$0xff]  ;;  %v7061_v44 = vld [vmem:[#allocation9 + $0x70] sm:$0xff] }
  0x33   :  { %v7048_v29 = vld [vmem:[#allocation9 + $0x68] sm:$0xff]  ;;  %v505_v38 = vld [vmem:[#allocation9 + $0x120] sm:$0xff]  ;;  %s7055_s18 = sld [smem:[#allocation3]]  ;;  %s7065_s20 = sld [smem:[#allocation3 + $0x5]]  ;;  %v7072_v49 = vld [vmem:[#allocation9 + $0x50] sm:$0xff] }
  0x34   :  { %v506_v43 = vld [vmem:[#allocation9 + $0x128] sm:$0xff]  ;;  %s7063_s19 = sld [smem:[#allocation7]]  ;;  %v7074_v50 = vld [vmem:[#allocation9 + $0x58] sm:$0xff]  ;;  %s7076_s21 = sld [smem:[#allocation7 + $0x5]] }
  0x35   :  { %v227_v8 = vstv %s5364_s11  ;;  %v206_v21 = vstv %s5362_s13  ;;  %v7078_v55 = vld [vmem:[#allocation9 + $0x78] sm:$0xff]  ;;  %s7080_s22 = sld [smem:[#allocation3 + $0x4]]  ;;  %s7091_s0 = sld [smem:[#allocation3 + $0xa]] }
  0x36   :  { %v238_v9 = vstv %s5365_s12  ;;  %v228_v10 = vmul.f32 %v227_v8, %v7008_v0  ;;  %v229_v11 = vmul.f32 %v227_v8, %v7010_v1  ;;  %v230_v15 = vmul.f32 %v227_v8, %v7020_v4  ;;  %s7089_s23 = sld [smem:[#allocation7 + $0x4]]  ;;  %s7095_s1 = sld [smem:[#allocation7 + $0xa]] }
  0x37   :  { %v239_v12 = vmul.f32 %v238_v9, %v7016_v2  ;;  %v240_v13 = vmul.f32 %v238_v9, %v7018_v3  ;;  %v231_v16 = vmul.f32 %v227_v8, %v7022_v5  ;;  %v241_v17 = vmul.f32 %v238_v9, %v7024_v6  ;;  %v507_v8 = vld [vmem:[#allocation9 + $0x130] sm:$0xff]  ;;  %s7131_s24 = sld [smem:[#allocation3 + $0x9]]  ;;  %s7145_s26 = sld [smem:[#allocation3 + $0x8]] }
  0x38   :  { %v242_v18 = vmul.f32 %v238_v9, %v7026_v7  ;;  %v217_v22 = vstv %s5363_s14  ;;  %v207_v25 = vmul.f32 %v206_v21, %v7008_v0  ;;  %v83_v31 = vstv %s7012_s15  ;;  %v508_v9 = vld [vmem:[#allocation9 + $0x138] sm:$0xff]  ;;  %s7137_s25 = sld [smem:[#allocation7 + $0x9]]  ;;  %s7166_s27 = sld [smem:[#allocation7 + $0x8]] }
  0x39   :  { %v243_v19 = vadd.f32 %v239_v12, %v228_v10  ;;  %v244_v20 = vadd.f32 %v240_v13, %v229_v11  ;;  %v245_v23 = vadd.f32 %v241_v17, %v230_v15  ;;  %v218_v26 = vmul.f32 %v217_v22, %v7036_v14  ;;  %s7168_s28 = sld [smem:[#allocation3 + $0xe]]  ;;  %s7197_s30 = sld [smem:[#allocation3 + $0x7]] }
  0x3a   :  { %v246_v24 = vadd.f32 %v242_v18, %v231_v16  ;;  %v94_v32 = vstv %s7014_s16  ;;  %v208_v33 = vmul.f32 %v206_v21, %v7010_v1  ;;  %v84_v36 = vmul.f32 %v83_v31, %v7008_v0  ;;  %s7178_s29 = sld [smem:[#allocation7 + $0xe]]  ;;  %s7221_s5 = sld [smem:[#allocation7 + $0x7]] }
  0x3b   :  { %v6533_v30 = vpack.c.bf16 %v244_v20, %v243_v19  ;;  %v222_v35 = vadd.f32 %v218_v26, %v207_v25  ;;  %v85_v37 = vmul.f32 %v83_v31, %v7010_v1  ;;  %v95_v39 = vmul.f32 %v94_v32, %v7044_v27  ;;  %s7229_s6 = sld [smem:[#allocation3 + $0xd]]  ;;  %s7262_s8 = sld [smem:[#allocation3 + $0xc]] }
  0x3c   :  { %v6537_v34 = vpack.c.bf16 %v246_v24, %v245_v23  ;;  %v96_v40 = vmul.f32 %v94_v32, %v7046_v28  ;;  %v219_v41 = vmul.f32 %v217_v22, %v7048_v29  ;;  %v498_v42 = vstv %s7028_s2  ;;  %v7097_v23 = vld [vmem:[#allocation9 + $0x20] sm:$0xff]  ;;  %s7236_s7 = sld [smem:[#allocation7 + $0xd]]  ;;  %s7269_s9 = sld [smem:[#allocation7 + $0xc]] }
  0x3d   :  { %6534 = vmatprep.subr.bf16.mxu1 %v6533_v30  ;;  %5954 = vmatprep.mubr.msk.f32.mxu1 %vm103_vm0, %v222_v35  ;;  %v499_v45 = vmul.f32 %v498_v42, %v7008_v0  ;;  %v500_v46 = vmul.f32 %v498_v42, %v7010_v1  ;;  %v509_v47 = vstv %s7030_s17  ;;  %v209_v48 = vmul.f32 %v206_v21, %v7020_v4  ;;  %s7281_s10 = sld [smem:[#allocation3 + $0x11]]  ;;  %s7290_s12 = sld [smem:[#allocation3 + $0xb]] }
  0x3e   :  { %6536 = vmatpush3.bf16.msra.mxu1 %v6533_v30  ;;  %v99_v51 = vadd.f32 %v95_v39, %v84_v36  ;;  %v100_v52 = vadd.f32 %v96_v40, %v85_v37  ;;  %v223_v53 = vadd.f32 %v219_v41, %v208_v33  ;;  %v510_v54 = vmul.f32 %v509_v47, %v505_v38  ;;  %s7283_s11 = sld [smem:[#allocation7 + $0x11]]  ;;  %s7297_s13 = sld [smem:[#allocation7 + $0xb]] }
  0x3f   :  { %6538 = vmatprep.subr.bf16.mxu1 %v6537_v34  ;;  %v511_v56 = vmul.f32 %v509_v47, %v506_v43  ;;  %v220_v57 = vmul.f32 %v217_v22, %v7061_v44  ;;  %v86_v58 = vmul.f32 %v83_v31, %v7020_v4  ;;  %v87_v59 = vmul.f32 %v83_v31, %v7022_v5  ;;  %v7105_v31 = vld [vmem:[#allocation9 + $0xa0] sm:$0xff]  ;;  %s7329_s14 = sld [smem:[#allocation3 + $0x10]]  ;;  %s7344_s16 = sld [smem:[#allocation3 + $0x15]] }
  0x40   :  { %v6525_v60 = vpack.c.bf16 %v100_v52, %v99_v51  ;;  %v514_v61 = vadd.f32 %v510_v54, %v499_v45  ;;  %v97_v62 = vmul.f32 %v94_v32, %v7072_v49  ;;  %v98_v63 = vmul.f32 %v94_v32, %v7074_v50  ;;  %v7107_v32 = vld [vmem:[#allocation9 + $0xa8] sm:$0xff]  ;;  %s7335_s15 = sld [smem:[#allocation7 + $0x10]]  ;;  %s7378_s2 = sld [smem:[#allocation7 + $0x15]] }
  0x41   :  { %v515_v10 = vadd.f32 %v511_v56, %v500_v46  ;;  %v224_v11 = vadd.f32 %v220_v57, %v209_v48  ;;  %v210_v12 = vmul.f32 %v206_v21, %v7022_v5  ;;  %v221_v13 = vmul.f32 %v217_v22, %v7078_v55  ;;  %v7125_v46 = vld [vmem:[#allocation9 + $0x28] sm:$0xff]  ;;  %s7392_s17 = sld [smem:[#allocation3 + $0xf]] }
  0x42   :  { %6540 = vmatpush3.bf16.msra.mxu1 %v6537_v34  ;;  %6526 = vmatprep.subr.bf16.mxu0 %v6525_v60  ;;  %v101_v15 = vadd.f32 %v97_v62, %v86_v58  ;;  %v102_v16 = vadd.f32 %v98_v63, %v87_v59  ;;  %v501_v17 = vmul.f32 %v498_v42, %v7020_v4  ;;  %v62_v25 = vstv %s7055_s18  ;;  %v7135_v58 = vld [vmem:[#allocation9 + $0x30] sm:$0xff]  ;;  %s7399_s18 = sld [smem:[#allocation7 + $0xf]] }
  0x43   :  { %v502_v18 = vmul.f32 %v498_v42, %v7022_v5  ;;  %v6549_v19 = vpack.c.bf16 %v515_v10, %v514_v61  ;;  %6528 = vmatpush3.bf16.msra.mxu0 %v6525_v60  ;;  %v225_v20 = vadd.f32 %v221_v13, %v210_v12  ;;  %v512_v21 = vmul.f32 %v509_v47, %v507_v8  ;;  %v7143_v63 = vld [vmem:[#allocation9 + $0xb0] sm:$0xff] }
  0x44   :  { %v513_v22 = vmul.f32 %v509_v47, %v508_v9  ;;  %v6529_v24 = vpack.c.bf16 %v102_v16, %v101_v15  ;;  %v73_v26 = vstv %s7063_s19  ;;  %v7103_v30 = vstv %s7065_s20  ;;  %s7417_s19 = sld [smem:[#allocation3 + $0x14]] }
  0x45   :  { %5955 = vmatmul.mubr.msk.f32.vlgmr.msra.gmra.mrb[0].mxu1 %vm103_vm0, %v223_v53  ;;  %6550 = vmatprep.subr.bf16.mxu1 %v6549_v19  ;;  %v516_v33 = vadd.f32 %v512_v21, %v501_v17  ;;  %v63_v35 = vmul.f32 %v62_v25, %v7008_v0  ;;  %v7112_v36 = vstv %s7076_s21  ;;  %v74_v37 = vmul.f32 %v73_v26, %v7097_v23  ;;  %s7425_s20 = sld [smem:[#allocation7 + $0x14]]  ;;  %s7433_s21 = sld [smem:[#allocation3 + $0x13]] }
  0x46   :  { %5957 = vmatprep.mubr.msk.f32.mxu1 %vm103_vm0, %v224_v11  ;;  %v517_v34 = vadd.f32 %v513_v22, %v502_v18  ;;  %6552 = vmatpush3.bf16.msra.mxu1 %v6549_v19  ;;  %v478_v38 = vmul.f32 %v7103_v30, %v7008_v0  ;;  %v479_v39 = vmul.f32 %v7103_v30, %v7010_v1  ;;  %v355_v40 = vstv %s7080_s22  ;;  %s7441_s22 = sld [smem:[#allocation7 + $0x13]] }
  0x47   :  { %6530 = vmatprep.subr.bf16.mxu0 %v6529_v24  ;;  %v489_v42 = vmul.f32 %v7112_v36, %v7105_v31  ;;  %v490_v43 = vmul.f32 %v7112_v36, %v7107_v32  ;;  %v64_v45 = vmul.f32 %v62_v25, %v7010_v1  ;;  %v78_v47 = vadd.f32 %v74_v37, %v63_v35 }
  0x48   :  { %v6553_v41 = vpack.c.bf16 %v517_v34, %v516_v33  ;;  %6532 = vmatpush3.bf16.msra.mxu0 %v6529_v24  ;;  %v75_v48 = vmul.f32 %v73_v26, %v7125_v46  ;;  %v356_v51 = vmul.f32 %v355_v40, %v7008_v0  ;;  %v357_v52 = vmul.f32 %v355_v40, %v7010_v1  ;;  %v7164_v33 = vld [vmem:[#allocation9 + $0xb8] sm:$0xff] }
  0x49   :  { %5958 = vmatmul.mubr.msk.f32.gmra.mrb[2].mxu1 %vm103_vm0, %v225_v20  ;;  %v493_v53 = vadd.f32 %v489_v42, %v478_v38  ;;  %v365_v54 = vstv %s7089_s23  ;;  %v494_v56 = vadd.f32 %v490_v43, %v479_v39  ;;  %v785_v57 = vstv %s7091_s0  ;;  %5940 = vmatprep.mubr.msk.f32.mxu0 %vm103_vm0, %v78_v47  ;;  %v7160_v20 = vld [vmem:[#allocation9 + $0x38] sm:$0xff]  ;;  %v7187_v47 = vld [vmem:[#allocation9 + $0x140] sm:$0xff]  ;;  %s7469_s23 = sld [smem:[#allocation3 + $0x19]] }
  0x4a   :  { %6554 = vmatprep.subr.bf16.mxu1 %v6553_v41  ;;  %v79_v59 = vadd.f32 %v75_v48, %v64_v45  ;;  %v366_v60 = vmul.f32 %v365_v54, %v7097_v23  ;;  %v367_v61 = vmul.f32 %v365_v54, %v7125_v46  ;;  %v795_v62 = vstv %s7095_s1  ;;  %v7185_v45 = vld [vmem:[#allocation9 + $0x1a0] sm:$0xff]  ;;  %v7189_v48 = vld [vmem:[#allocation9 + $0x148] sm:$0xff]  ;;  %s7471_s0 = sld [smem:[#allocation7 + $0x19]]  ;;  %s7484_s1 = sld [smem:[#allocation3 + $0x12]] }
  0x4b   :  { %6556 = vmatpush3.bf16.msra.mxu1 %v6553_v41  ;;  %5982 = vmatprep.mubr.msk.f32.mxu1 %vm103_vm0, %v493_v53  ;;  %v786_v8 = vmul.f32 %v785_v57, %v7008_v0  ;;  %v787_v9 = vmul.f32 %v785_v57, %v7010_v1  ;;  %v796_v10 = vmul.f32 %v795_v62, %v7036_v14  ;;  %v7176_v41 = vstv %s7131_s24  ;;  %s7493_s24 = sld [smem:[#allocation7 + $0x12]] }
  0x4c   :  { %v797_v11 = vmul.f32 %v795_v62, %v7048_v29  ;;  %5941 = vmatmul.mubr.msk.f32.vlgmr.msra.gmra.mrb[0].mxu0 %vm103_vm0, %v79_v59  ;;  %v370_v12 = vadd.f32 %v366_v60, %v356_v51  ;;  %v371_v13 = vadd.f32 %v367_v61, %v357_v52  ;;  %v65_v15 = vmul.f32 %v62_v25, %v7020_v4 }
  0x4d   :  { %v76_v16 = vmul.f32 %v73_v26, %v7135_v58  ;;  %v800_v17 = vadd.f32 %v796_v10, %v786_v8  ;;  %v480_v19 = vmul.f32 %v7103_v30, %v7020_v4  ;;  %v491_v14 = vmul.f32 %v7112_v36, %v7143_v63 }
  0x4e   :  { %5983 = vmatmul.mubr.msk.f32.vlgmr.msra.gmra.mrb[4].mxu1 %vm103_vm0, %v494_v56  ;;  %v801_v18 = vadd.f32 %v797_v11, %v787_v9  ;;  %v6541_v29 = vpack.c.bf16 %v371_v13, %v370_v12  ;;  %v66_v22 = vmul.f32 %v62_v25, %v7022_v5  ;;  %v77_v24 = vmul.f32 %v73_v26, %v7160_v20  ;;  %v7212_v9 = vld [vmem:[#allocation9 + $0xc0] sm:$0xff]  ;;  %v7219_v13 = vld [vmem:[#allocation9 + $0x150] sm:$0xff] }
  0x4f   :  { %v80_v21 = vadd.f32 %v76_v16, %v65_v15  ;;  %v495_v35 = vadd.f32 %v491_v14, %v480_v19  ;;  %v358_v37 = vmul.f32 %v355_v40, %v7020_v4  ;;  %v359_v38 = vmul.f32 %v355_v40, %v7022_v5  ;;  %v7225_v19 = vld [vmem:[#allocation9 + $0x100] sm:$0xff]  ;;  %v7227_v14 = vld [vmem:[#allocation9 + $0x108] sm:$0xff] }
  0x50   :  { %v6565_v34 = vpack.c.bf16 %v801_v18, %v800_v17  ;;  %6542 = vmatprep.subr.bf16.mxu0 %v6541_v29  ;;  %v81_v39 = vadd.f32 %v77_v24, %v66_v22  ;;  %v368_v25 = vmul.f32 %v365_v54, %v7135_v58  ;;  %v369_v26 = vmul.f32 %v365_v54, %v7160_v20 }
  0x51   :  { %5943 = vmatprep.mubr.msk.f32.mxu0 %vm103_vm0, %v80_v21  ;;  %6544 = vmatpush3.bf16.msra.mxu0 %v6541_v29  ;;  %v481_v42 = vmul.f32 %v7103_v30, %v7022_v5  ;;  %v492_v40 = vmul.f32 %v7112_v36, %v7164_v33  ;;  %v788_v43 = vmul.f32 %v785_v57, %v7020_v4  ;;  %v7192_v51 = vstv %s7137_s25  ;;  %v7231_v21 = vld [vmem:[#allocation9 + $0x1a8] sm:$0xff]  ;;  %s7523_s25 = sld [smem:[#allocation3 + $0x18]] }
  0x52   :  { %6566 = vmatprep.subr.bf16.mxu1 %v6565_v34  ;;  %5985 = vmatprep.mubr.msk.f32.mxu1 %vm103_vm0, %v495_v35  ;;  %v372_v52 = vadd.f32 %v368_v25, %v358_v37  ;;  %v373_v53 = vadd.f32 %v369_v26, %v359_v38  ;;  %v789_v30 = vmul.f32 %v785_v57, %v7022_v5  ;;  %v641_v54 = vstv %s7145_s26  ;;  %v7241_v38 = vld [vmem:[#allocation9 + $0x1b0] sm:$0xff]  ;;  %s7533_s26 = sld [smem:[#allocation7 + $0x18]] }
  0x53   :  { %6568 = vmatpush3.bf16.msra.mxu1 %v6565_v34  ;;  %5944 = vmatmul.mubr.msk.f32.gmra.mrb[2].mxu0 %vm103_vm0, %v81_v39  ;;  %v496_v36 = vadd.f32 %v492_v40, %v481_v42  ;;  %v798_v56 = vmul.f32 %v795_v62, %v7061_v44  ;;  %v799_v59 = vmul.f32 %v795_v62, %v7078_v55  ;;  %v7214_v55 = vld [vmem:[#allocation9 + $0xc8] sm:$0xff]  ;;  %v652_v16 = vstv %s7166_s27  ;;  %v7247_v26 = vld [vmem:[#allocation9 + $0xd0] sm:$0xff]  ;;  %s7541_s27 = sld [smem:[#allocation3 + $0x17]] }
  0x54   :  { %v765_v60 = vmul.f32 %v7176_v41, %v7008_v0  ;;  %v6545_v61 = vpack.c.bf16 %v373_v53, %v372_v52  ;;  %5968 = vmatprep.mubr.msk.f32.mxu0 %vm103_vm0, %v7185_v45  ;;  %v766_v57 = vmul.f32 %v7176_v41, %v7010_v1  ;;  %v776_v8 = vmul.f32 %v7192_v51, %v7187_v47  ;;  %v7251_v53 = vld [vmem:[#allocation9 + $0xd8] sm:$0xff] }
  0x55   :  { %v777_v44 = vmul.f32 %v7192_v51, %v7189_v48  ;;  %5986 = vmatmul.mubr.msk.f32.gmra.mrb[6].mxu1 %vm103_vm0, %v496_v36  ;;  %v802_v62 = vadd.f32 %v798_v56, %v788_v43  ;;  %v803_v10 = vadd.f32 %v799_v59, %v789_v30  ;;  %v642_v11 = vmul.f32 %v641_v54, %v7008_v0  ;;  %v7253_v30 = vld [vmem:[#allocation9 + $0x158] sm:$0xff] }
  0x56   :  { %v643_v12 = vmul.f32 %v641_v54, %v7010_v1  ;;  %6546 = vmatprep.subr.bf16.mxu0 %v6545_v61  ;;  %v780_v15 = vadd.f32 %v776_v8, %v765_v60  ;;  %v1071_v18 = vstv %s7168_s28  ;;  %v653_v22 = vmul.f32 %v652_v16, %v7212_v9  ;;  %s7572_s28 = sld [smem:[#allocation7 + $0x17]] }
  0x57   :  { %v781_v17 = vadd.f32 %v777_v44, %v766_v57  ;;  %v6569_v29 = vpack.c.bf16 %v803_v10, %v802_v62  ;;  %6548 = vmatpush3.bf16.msra.mxu0 %v6545_v61  ;;  %v654_v24 = vmul.f32 %v652_v16, %v7214_v55  ;;  %v1072_v34 = vmul.f32 %v1071_v18, %v7008_v0  ;;  %v7267_v62 = vld [vmem:[#allocation9 + $0x110] sm:$0xff]  ;;  %v7271_v10 = vld [vmem:[#allocation9 + $0x1b8] sm:$0xff] }
  0x58   :  { %6010 = vmatprep.mubr.msk.f32.mxu1 %vm103_vm0, %v780_v15  ;;  %v1073_v35 = vmul.f32 %v1071_v18, %v7010_v1  ;;  %v1082_v37 = vstv %s7178_s29  ;;  %v767_v39 = vmul.f32 %v7176_v41, %v7020_v4  ;;  %v778_v25 = vmul.f32 %v7192_v51, %v7219_v13  ;;  %s7584_s29 = sld [smem:[#allocation3 + $0x1c]] }
  0x59   :  { %6570 = vmatprep.subr.bf16.mxu1 %v6569_v29  ;;  %v657_v42 = vadd.f32 %v653_v22, %v642_v11  ;;  %v658_v40 = vadd.f32 %v654_v24, %v643_v12  ;;  %v1083_v43 = vmul.f32 %v1082_v37, %v7225_v19  ;;  %v1084_v52 = vmul.f32 %v1082_v37, %v7227_v14 }
  0x5a   :  { %6572 = vmatpush3.bf16.msra.mxu1 %v6569_v29  ;;  %5969 = vmatmul.mubr.msk.f32.vlgmr.msra.gmra.mrb[4].mxu0 %vm103_vm0, %v7231_v21  ;;  %v782_v36 = vadd.f32 %v778_v25, %v767_v39  ;;  %v644_v56 = vmul.f32 %v641_v54, %v7020_v4  ;;  %v645_v59 = vmul.f32 %v641_v54, %v7022_v5  ;;  %v7260_v60 = vstv %s7197_s30  ;;  %v7279_v29 = vld [vmem:[#allocation9 + $0x118] sm:$0xff]  ;;  %s7586_s30 = sld [smem:[#allocation7 + $0x1c]] }
  0x5b   :  { %v6557_v61 = vpack.c.bf16 %v658_v40, %v657_v42  ;;  %v1087_v57 = vadd.f32 %v1083_v43, %v1072_v34  ;;  %v1088_v8 = vadd.f32 %v1084_v52, %v1073_v35  ;;  %5971 = vmatprep.mubr.msk.f32.mxu0 %vm103_vm0, %v7241_v38  ;;  %v655_v44 = vmul.f32 %v652_v16, %v7247_v26 }
  0x5c   :  { %v656_v54 = vmul.f32 %v652_v16, %v7251_v53  ;;  %v768_v11 = vmul.f32 %v7176_v41, %v7022_v5  ;;  %v779_v12 = vmul.f32 %v7192_v51, %v7253_v30  ;;  %v1074_v15 = vmul.f32 %v1071_v18, %v7020_v4 }
  0x5d   :  { %6558 = vmatprep.subr.bf16.mxu0 %v6557_v61  ;;  %6011 = vmatmul.mubr.msk.f32.vlgmr.msra.gmra.mrb[8].mxu1 %vm103_vm0, %v781_v17  ;;  %v6581_v22 = vpack.c.bf16 %v1088_v8, %v1087_v57  ;;  %v659_v16 = vadd.f32 %v655_v44, %v644_v56  ;;  %v1075_v41 = vmul.f32 %v1071_v18, %v7022_v5  ;;  %v7288_v24 = vstv %s7221_s5  ;;  %s7599_s5 = sld [smem:[#allocation3 + $0x16]] }
  0x5e   :  { %6560 = vmatpush3.bf16.msra.mxu0 %v6557_v61  ;;  %6013 = vmatprep.mubr.msk.f32.mxu1 %vm103_vm0, %v782_v36  ;;  %v660_v51 = vadd.f32 %v656_v54, %v645_v59  ;;  %v783_v34 = vadd.f32 %v779_v12, %v768_v11  ;;  %v1085_v35 = vmul.f32 %v1082_v37, %v7267_v62  ;;  %v7295_v39 = vstv %s7229_s6  ;;  %v7323_v11 = vld [vmem:[#allocation9 + $0x160] sm:$0xff]  ;;  %v7325_v12 = vld [vmem:[#allocation9 + $0x168] sm:$0xff]  ;;  %s7608_s6 = sld [smem:[#allocation7 + $0x16]] }
  0x5f   :  { %6582 = vmatprep.subr.bf16.mxu1 %v6581_v22  ;;  %5972 = vmatmul.mubr.msk.f32.gmra.mrb[6].mxu0 %vm103_vm0, %v7271_v10  ;;  %v1086_v17 = vmul.f32 %v1082_v37, %v7279_v29  ;;  %v622_v18 = vmul.f32 %v7260_v60, %v7008_v0  ;;  %v623_v25 = vmul.f32 %v7260_v60, %v7010_v1  ;;  %v7307_v42 = vstv %s7236_s7  ;;  %s7636_s7 = sld [smem:[#allocation3 + $0x1b]] }
  0x60   :  { %6584 = vmatpush3.bf16.msra.mxu1 %v6581_v22  ;;  %v6561_v40 = vpack.c.bf16 %v660_v51, %v659_v16  ;;  %v1089_v43 = vadd.f32 %v1085_v35, %v1074_v15  ;;  %v632_v52 = vmul.f32 %v7288_v24, %v7044_v27  ;;  %v633_v36 = vmul.f32 %v7288_v24, %v7046_v28 }
  0x61   :  { %6014 = vmatmul.mubr.msk.f32.gmra.mrb[10].mxu1 %vm103_vm0, %v783_v34  ;;  %v1090_v37 = vadd.f32 %v1086_v17, %v1075_v41  ;;  %v1052_v56 = vmul.f32 %v7295_v39, %v7008_v0  ;;  %v1053_v59 = vmul.f32 %v7295_v39, %v7010_v1  ;;  %v1062_v61 = vmul.f32 %v7307_v42, %v7016_v2 }
  0x62   :  { %6562 = vmatprep.subr.bf16.mxu0 %v6561_v40  ;;  %v636_v57 = vadd.f32 %v632_v52, %v622_v18  ;;  %v1063_v8 = vmul.f32 %v7307_v42, %v7018_v3  ;;  %v637_v44 = vadd.f32 %v633_v36, %v623_v25  ;;  %v928_v54 = vstv %s7262_s8  ;;  %s7645_s8 = sld [smem:[#allocation7 + $0x1b]] }
  0x63   :  { %v6585_v15 = vpack.c.bf16 %v1090_v37, %v1089_v43  ;;  %6564 = vmatpush3.bf16.msra.mxu0 %v6561_v40  ;;  %v1066_v22 = vadd.f32 %v1062_v61, %v1052_v56  ;;  %v929_v16 = vmul.f32 %v928_v54, %v7008_v0  ;;  %v930_v2 = vmul.f32 %v928_v54, %v7010_v1 }
  0x64   :  { %5996 = vmatprep.mubr.msk.f32.mxu0 %vm103_vm0, %v636_v57  ;;  %v939_v41 = vstv %s7269_s9  ;;  %v1067_v3 = vadd.f32 %v1063_v8, %v1053_v59  ;;  %v1341_v51 = vstv %s7281_s10  ;;  %v1351_v34 = vstv %s7283_s11  ;;  %s7654_s9 = sld [smem:[#allocation3 + $0x1a]]  ;;  %s7695_s11 = sld [smem:[#allocation3 + $0x20]] }
  0x65   :  { %6586 = vmatprep.subr.bf16.mxu1 %v6585_v15  ;;  %6038 = vmatprep.mubr.msk.f32.mxu1 %vm103_vm0, %v1066_v22  ;;  %v940_v35 = vmul.f32 %v939_v41, %v7323_v11  ;;  %v941_v17 = vmul.f32 %v939_v41, %v7325_v12  ;;  %v1342_v18 = vmul.f32 %v1341_v51, %v7008_v0  ;;  %v7342_v25 = vstv %s7290_s12  ;;  %s7673_s10 = sld [smem:[#allocation7 + $0x1a]]  ;;  %s7721_s12 = sld [smem:[#allocation7 + $0x20]] }
  0x66   :  { %6588 = vmatpush3.bf16.msra.mxu1 %v6585_v15  ;;  %5997 = vmatmul.mubr.msk.f32.vlgmr.msra.gmra.mrb[8].mxu0 %vm103_vm0, %v637_v44  ;;  %v1343_v40 = vmul.f32 %v1341_v51, %v7010_v1  ;;  %v1352_v43 = vmul.f32 %v1351_v34, %v7105_v31  ;;  %v1353_v52 = vmul.f32 %v1351_v34, %v7107_v32  ;;  %v7351_v36 = vstv %s7297_s13  ;;  %v7361_v15 = vld [vmem:[#allocation9 + $0x170] sm:$0xff]  ;;  %v7363_v32 = vld [vmem:[#allocation9 + $0x178] sm:$0xff]  ;;  %s7726_s13 = sld [smem:[#allocation3 + $0x1f]] }
  0x67   :  { %v944_v37 = vadd.f32 %v940_v35, %v929_v16  ;;  %v945_v56 = vadd.f32 %v941_v17, %v930_v2  ;;  %v624_v59 = vmul.f32 %v7260_v60, %v7020_v4  ;;  %v634_v61 = vmul.f32 %v7288_v24, %v7072_v49 }
  0x68   :  { %v1356_v57 = vadd.f32 %v1352_v43, %v1342_v18  ;;  %v1357_v8 = vadd.f32 %v1353_v52, %v1343_v40  ;;  %v1054_v44 = vmul.f32 %v7295_v39, %v7020_v4  ;;  %v1064_v31 = vmul.f32 %v7307_v42, %v7024_v6 }
  0x69   :  { %v6573_v22 = vpack.c.bf16 %v945_v56, %v944_v37  ;;  %6039 = vmatmul.mubr.msk.f32.vlgmr.msra.gmra.mrb[12].mxu1 %vm103_vm0, %v1067_v3  ;;  %v638_v16 = vadd.f32 %v634_v61, %v624_v59  ;;  %v625_v2 = vmul.f32 %v7260_v60, %v7022_v5  ;;  %v635_v35 = vmul.f32 %v7288_v24, %v7074_v50  ;;  %v7385_v56 = vld [vmem:[#allocation9 + $0xe0] sm:$0xff]  ;;  %v7387_v59 = vld [vmem:[#allocation9 + $0xe8] sm:$0xff] }
  0x6a   :  { %v6597_v17 = vpack.c.bf16 %v1357_v8, %v1356_v57  ;;  %v1068_v18 = vadd.f32 %v1064_v31, %v1054_v44  ;;  %v931_v40 = vmul.f32 %v928_v54, %v7020_v4  ;;  %v932_v6 = vmul.f32 %v928_v54, %v7022_v5 }
  0x6b   :  { %6574 = vmatprep.subr.bf16.mxu0 %v6573_v22  ;;  %5999 = vmatprep.mubr.msk.f32.mxu0 %vm103_vm0, %v638_v16  ;;  %v639_v43 = vadd.f32 %v635_v35, %v625_v2  ;;  %v942_v3 = vmul.f32 %v939_v41, %v7361_v15  ;;  %v943_v52 = vmul.f32 %v939_v41, %v7363_v32  ;;  %v7376_v37 = vstv %s7329_s14  ;;  %s7732_s14 = sld [smem:[#allocation7 + $0x1f]] }
  0x6c   :  { %6598 = vmatprep.subr.bf16.mxu1 %v6597_v17  ;;  %6576 = vmatpush3.bf16.msra.mxu0 %v6573_v22  ;;  %v1055_v60 = vmul.f32 %v7295_v39, %v7022_v5  ;;  %v1065_v24 = vmul.f32 %v7307_v42, %v7026_v7  ;;  %v1344_v54 = vmul.f32 %v1341_v51, %v7020_v4  ;;  %v7390_v41 = vstv %s7335_s15  ;;  %s7743_s15 = sld [smem:[#allocation3 + $0x24]] }
  0x6d   :  { %6600 = vmatpush3.bf16.msra.mxu1 %v6597_v17  ;;  %6041 = vmatprep.mubr.msk.f32.mxu1 %vm103_vm0, %v1068_v18  ;;  %v946_v61 = vadd.f32 %v942_v3, %v931_v40  ;;  %v947_v57 = vadd.f32 %v943_v52, %v932_v6  ;;  %v1345_v39 = vmul.f32 %v1341_v51, %v7022_v5  ;;  %v7397_v8 = vstv %s7344_s16  ;;  %s7754_s16 = sld [smem:[#allocation7 + $0x24]] }
  0x6e   :  { %6000 = vmatmul.mubr.msk.f32.gmra.mrb[10].mxu0 %vm103_vm0, %v639_v43  ;;  %v1069_v7 = vadd.f32 %v1065_v24, %v1055_v60  ;;  %v1354_v42 = vmul.f32 %v1351_v34, %v7143_v63  ;;  %v1355_v44 = vmul.f32 %v1351_v34, %v7164_v33  ;;  %v908_v31 = vmul.f32 %v7342_v25, %v7008_v0  ;;  %v7423_v43 = vld [vmem:[#allocation9 + $0xf0] sm:$0xff] }
  0x6f   :  { %v6577_v22 = vpack.c.bf16 %v947_v57, %v946_v61  ;;  %v909_v16 = vmul.f32 %v7342_v25, %v7010_v1  ;;  %v919_v51 = vmul.f32 %v7351_v36, %v7385_v56  ;;  %v920_v2 = vmul.f32 %v7351_v36, %v7387_v59 }
  0x70   :  { %6042 = vmatmul.mubr.msk.f32.gmra.mrb[14].mxu1 %vm103_vm0, %v1069_v7  ;;  %v1358_v35 = vadd.f32 %v1354_v42, %v1344_v54  ;;  %v1359_v17 = vadd.f32 %v1355_v44, %v1345_v39  ;;  %v1322_v63 = vmul.f32 %v7376_v37, %v7008_v0  ;;  %v1323_v33 = vmul.f32 %v7376_v37, %v7010_v1  ;;  %v7439_v7 = vld [vmem:[#allocation9 + $0xf8] sm:$0xff] }
  0x71   :  { %6578 = vmatprep.subr.bf16.mxu0 %v6577_v22  ;;  %v923_v34 = vadd.f32 %v919_v51, %v908_v31  ;;  %v1332_v18 = vmul.f32 %v7390_v41, %v7097_v23  ;;  %v1333_v40 = vmul.f32 %v7390_v41, %v7125_v46  ;;  %v924_v6 = vadd.f32 %v920_v2, %v909_v16 }
  0x72   :  { %v6601_v3 = vpack.c.bf16 %v1359_v17, %v1358_v35  ;;  %6580 = vmatpush3.bf16.msra.mxu0 %v6577_v22  ;;  %v6589_v52 = vpack.c.bf16 %v7231_v21, %v7185_v45  ;;  %v1626_v60 = vmul.f32 %v7397_v8, %v7008_v0  ;;  %v1627_v24 = vmul.f32 %v7397_v8, %v7010_v1 }
  0x73   :  { %6024 = vmatprep.mubr.msk.f32.mxu0 %vm103_vm0, %v923_v34  ;;  %v1336_v54 = vadd.f32 %v1332_v18, %v1322_v63  ;;  %v1337_v61 = vadd.f32 %v1333_v40, %v1323_v33  ;;  %v1635_v57 = vstv %s7378_s2  ;;  %v910_v39 = vmul.f32 %v7342_v25, %v7020_v4  ;;  %s7756_s2 = sld [smem:[#allocation3 + $0x1e]] }
  0x74   :  { %6602 = vmatprep.subr.bf16.mxu1 %v6601_v3  ;;  %6590 = vmatprep.subr.bf16.mxu0 %v6589_v52  ;;  %v1636_v42 = vmul.f32 %v1635_v57, %v7187_v47  ;;  %v1637_v44 = vmul.f32 %v1635_v57, %v7189_v48  ;;  %v921_v31 = vmul.f32 %v7351_v36, %v7423_v43  ;;  %v7448_v22 = vstv %s7392_s17  ;;  %s7761_s17 = sld [smem:[#allocation7 + $0x1e]] }
  0x75   :  { %6604 = vmatpush3.bf16.msra.mxu1 %v6601_v3  ;;  %6066 = vmatprep.mubr.msk.f32.mxu1 %vm103_vm0, %v1336_v54  ;;  %v1324_v16 = vmul.f32 %v7376_v37, %v7020_v4  ;;  %v1334_v51 = vmul.f32 %v7390_v41, %v7135_v58  ;;  %v911_v2 = vmul.f32 %v7342_v25, %v7022_v5  ;;  %v7458_v47 = vstv %s7399_s18  ;;  %v7477_v3 = vld [vmem:[#allocation9 + $0x180] sm:$0xff]  ;;  %s7768_s18 = sld [smem:[#allocation3 + $0x23]] }
  0x76   :  { %6025 = vmatmul.mubr.msk.f32.vlgmr.msra.gmra.mrb[12].mxu0 %vm103_vm0, %v924_v6  ;;  %v1640_v48 = vadd.f32 %v1636_v42, %v1626_v60  ;;  %v1641_v35 = vadd.f32 %v1637_v44, %v1627_v24  ;;  %v925_v17 = vadd.f32 %v921_v31, %v910_v39  ;;  %v922_v63 = vmul.f32 %v7351_v36, %v7439_v7 }
  0x77   :  { %6592 = vmatpush3.bf16.msra.mxu0 %v6589_v52  ;;  %v1338_v33 = vadd.f32 %v1334_v51, %v1324_v16  ;;  %v6593_v34 = vpack.c.bf16 %v7271_v10, %v7241_v38  ;;  %v1325_v18 = vmul.f32 %v7376_v37, %v7022_v5  ;;  %v1335_v25 = vmul.f32 %v7390_v41, %v7160_v20  ;;  %v7479_v37 = vld [vmem:[#allocation9 + $0x188] sm:$0xff] }
  0x78   :  { %6067 = vmatmul.mubr.msk.f32.vlgmr.msra.gmra.mrb[16].mxu1 %vm103_vm0, %v1337_v61  ;;  %v6613_v40 = vpack.c.bf16 %v1641_v35, %v1640_v48  ;;  %6027 = vmatprep.mubr.msk.f32.mxu0 %vm103_vm0, %v925_v17  ;;  %v926_v36 = vadd.f32 %v922_v63, %v911_v2  ;;  %v1628_v6 = vmul.f32 %v7397_v8, %v7020_v4  ;;  %v7482_v41 = vstv %s7417_s19  ;;  %s7791_s19 = sld [smem:[#allocation7 + $0x23]] }
  0x79   :  { %6069 = vmatprep.mubr.msk.f32.mxu1 %vm103_vm0, %v1338_v33  ;;  %6594 = vmatprep.subr.bf16.mxu0 %v6593_v34  ;;  %v1339_v52 = vadd.f32 %v1335_v25, %v1325_v18  ;;  %v1629_v60 = vmul.f32 %v7397_v8, %v7022_v5  ;;  %v1638_v24 = vmul.f32 %v1635_v57, %v7219_v13  ;;  %v7491_v54 = vstv %s7425_s20  ;;  %s7793_s20 = sld [smem:[#allocation3 + $0x1d]] }
  0x7a   :  { %6614 = vmatprep.subr.bf16.mxu1 %v6613_v40  ;;  %6028 = vmatmul.mubr.msk.f32.gmra.mrb[14].mxu0 %vm103_vm0, %v926_v36  ;;  %v1639_v61 = vmul.f32 %v1635_v57, %v7253_v30  ;;  %v1195_v39 = vmul.f32 %v7448_v22, %v7008_v0  ;;  %v1196_v42 = vmul.f32 %v7448_v22, %v7010_v1  ;;  %v1483_v44 = vstv %s7433_s21  ;;  %v7521_v36 = vld [vmem:[#allocation9 + $0x88] sm:$0xff]  ;;  %s7802_s21 = sld [smem:[#allocation7 + $0x1d]] }
  0x7b   :  { %6616 = vmatpush3.bf16.msra.mxu1 %v6613_v40  ;;  %v1642_v8 = vadd.f32 %v1638_v24, %v1628_v6  ;;  %6596 = vmatpush3.bf16.msra.mxu0 %v6593_v34  ;;  %v1206_v13 = vmul.f32 %v7458_v47, %v7477_v3  ;;  %v1207_v31 = vmul.f32 %v7458_v47, %v7479_v37  ;;  %v1493_v16 = vstv %s7441_s22  ;;  %v7519_v40 = vld [vmem:[#allocation9 + $0x80] sm:$0xff]  ;;  %s7808_s22 = sld [smem:[#allocation3 + $0x22]] }
  0x7c   :  { %6070 = vmatmul.mubr.msk.f32.gmra.mrb[18].mxu1 %vm103_vm0, %v1339_v52  ;;  %v1643_v30 = vadd.f32 %v1639_v61, %v1629_v60  ;;  %v1606_v57 = vmul.f32 %v7482_v41, %v7008_v0  ;;  %v1607_v51 = vmul.f32 %v7482_v41, %v7010_v1  ;;  %v1616_v2 = vmul.f32 %v7491_v54, %v7212_v9  ;;  %v7531_v60 = vld [vmem:[#allocation9 + $0x190] sm:$0xff] }
  0x7d   :  { %v1210_v48 = vadd.f32 %v1206_v13, %v1195_v39  ;;  %v1617_v35 = vmul.f32 %v7491_v54, %v7214_v55  ;;  %v1211_v17 = vadd.f32 %v1207_v31, %v1196_v42  ;;  %v1484_v63 = vmul.f32 %v1483_v44, %v7008_v0  ;;  %v7548_v13 = vld [vmem:[#allocation9 + $0x198] sm:$0xff] }
  0x7e   :  { %v6617_v33 = vpack.c.bf16 %v1643_v30, %v1642_v8  ;;  %v1620_v34 = vadd.f32 %v1616_v2, %v1606_v57  ;;  %v1485_v18 = vmul.f32 %v1483_v44, %v7010_v1  ;;  %v1494_v25 = vmul.f32 %v1493_v16, %v7044_v27 }
  0x7f   :  { %6052 = vmatprep.mubr.msk.f32.mxu0 %vm103_vm0, %v1210_v48  ;;  %v1495_v9 = vmul.f32 %v1493_v16, %v7046_v28  ;;  %v1621_v55 = vadd.f32 %v1617_v35, %v1607_v51  ;;  %v1909_v6 = vstv %s7469_s23  ;;  %v7529_v52 = vstv %s7471_s0  ;;  %s7814_s23 = sld [smem:[#allocation7 + $0x22]]  ;;  %s7819_s0 = sld [smem:[#allocation3 + $0x21]] }
  0x80   :  { %6618 = vmatprep.subr.bf16.mxu1 %v6617_v33  ;;  %6094 = vmatprep.mubr.msk.f32.mxu1 %vm103_vm0, %v1620_v34  ;;  %v1498_v27 = vadd.f32 %v1494_v25, %v1484_v63  ;;  %v1910_v24 = vmul.f32 %v1909_v6, %v7008_v0  ;;  %v1911_v61 = vmul.f32 %v1909_v6, %v7010_v1  ;;  %v7539_v39 = vstv %s7484_s1  ;;  %s7831_s1 = sld [smem:[#allocation7 + $0x21]] }
  0x81   :  { %6620 = vmatpush3.bf16.msra.mxu1 %v6617_v33  ;;  %6053 = vmatmul.mubr.msk.f32.vlgmr.msra.gmra.mrb[16].mxu0 %vm103_vm0, %v1211_v17  ;;  %v1499_v28 = vadd.f32 %v1495_v9, %v1485_v18  ;;  %v1920_v42 = vmul.f32 %v7529_v52, %v7519_v40  ;;  %v1921_v8 = vmul.f32 %v7529_v52, %v7521_v36  ;;  %v7551_v31 = vstv %s7493_s24  ;;  %s7841_s24 = sld [smem:[#allocation3 + $0x26]] }
  0x82   :  { %v1197_v0 = vmul.f32 %v7448_v22, %v7020_v4  ;;  %v1208_v1 = vmul.f32 %v7458_v47, %v7531_v60  ;;  %v1608_v30 = vmul.f32 %v7482_v41, %v7020_v4  ;;  %v1618_v57 = vmul.f32 %v7491_v54, %v7247_v26 }
  0x83   :  { %v6605_v51 = vpack.c.bf16 %v1499_v28, %v1498_v27  ;;  %v1924_v2 = vadd.f32 %v1920_v42, %v1910_v24  ;;  %v1925_v48 = vadd.f32 %v1921_v8, %v1911_v61  ;;  %v1198_v35 = vmul.f32 %v7448_v22, %v7022_v5  ;;  %v7570_v24 = vld [vmem:[#allocation9 + $0x90] sm:$0xff]  ;;  %v7602_v42 = vld [vmem:[#allocation9 + $0x18] sm:$0xff] }
  0x84   :  { %6095 = vmatmul.mubr.msk.f32.vlgmr.msra.gmra.mrb[20].mxu1 %vm103_vm0, %v1621_v55  ;;  %v1212_v17 = vadd.f32 %v1208_v1, %v1197_v0  ;;  %v1622_v63 = vadd.f32 %v1618_v57, %v1608_v30  ;;  %v1209_v33 = vmul.f32 %v7458_v47, %v7548_v13  ;;  %v1486_v34 = vmul.f32 %v1483_v44, %v7020_v4  ;;  %v7589_v55 = vld [vmem:[#allocation9 + $0x10] sm:$0xff] }
  0x85   :  { %6606 = vmatprep.subr.bf16.mxu0 %v6605_v51  ;;  %v6629_v18 = vpack.c.bf16 %v1925_v48, %v1924_v2  ;;  %v1487_v25 = vmul.f32 %v1483_v44, %v7022_v5  ;;  %v1496_v9 = vmul.f32 %v1493_v16, %v7072_v49  ;;  %v1497_v27 = vmul.f32 %v1493_v16, %v7074_v50  ;;  %v7579_v44 = vld [vmem:[#allocation9 + $0x98] sm:$0xff]  ;;  %v7616_v48 = vld [vmem:[#allocation9 + $0x8] sm:$0xff] }
  0x86   :  { %6608 = vmatpush3.bf16.msra.mxu0 %v6605_v51  ;;  %6055 = vmatprep.mubr.msk.f32.mxu0 %vm103_vm0, %v1212_v17  ;;  %v1213_v22 = vadd.f32 %v1209_v33, %v1198_v35  ;;  %v1609_v4 = vmul.f32 %v7482_v41, %v7022_v5  ;;  %v1619_v47 = vmul.f32 %v7491_v54, %v7251_v53  ;;  %v7582_v49 = vstv %s7523_s25  ;;  %v7592_v41 = vld [vmem:[#allocation9 + $0x120] sm:$0xff]  ;;  %v7594_v54 = vld [vmem:[#allocation9 + $0x128] sm:$0xff]  ;;  %s7843_s25 = sld [smem:[#allocation7 + $0x26]] }
  0x87   :  { %6630 = vmatprep.subr.bf16.mxu1 %v6629_v18  ;;  %6097 = vmatprep.mubr.msk.f32.mxu1 %vm103_vm0, %v1622_v63  ;;  %v1500_v50 = vadd.f32 %v1496_v9, %v1486_v34  ;;  %v1501_v16 = vadd.f32 %v1497_v27, %v1487_v25  ;;  %v1912_v5 = vmul.f32 %v7589_v55, %v1909_v6  ;;  %v7597_v61 = vstv %s7533_s26  ;;  %v7612_v51 = vld [vmem:[#allocation9] sm:$0xff]  ;;  %s7866_s26 = sld [smem:[#allocation3 + $0x25]] }
  0x88   :  { %6632 = vmatpush3.bf16.msra.mxu1 %v6629_v18  ;;  %6056 = vmatmul.mubr.msk.f32.gmra.mrb[18].mxu0 %vm103_vm0, %v1213_v22  ;;  %v1623_v28 = vadd.f32 %v1619_v47, %v1609_v4  ;;  %v1913_v8 = vmul.f32 %v7602_v42, %v1909_v6  ;;  %v1922_v0 = vmul.f32 %v7529_v52, %v7570_v24  ;;  %v1767_v1 = vstv %s7541_s27  ;;  %s7868_s27 = sld [smem:[#allocation7 + $0x25]] }
  0x89   :  { %v6609_v30 = vpack.c.bf16 %v1501_v16, %v1500_v50  ;;  %v1923_v57 = vmul.f32 %v7529_v52, %v7579_v44  ;;  %v1464_v2 = vmul.f32 %v7612_v51, %v7539_v39  ;;  %v1465_v6 = vmul.f32 %v7616_v48, %v7539_v39 }
  0x8a   :  { %6098 = vmatmul.mubr.msk.f32.gmra.mrb[22].mxu1 %vm103_vm0, %v1623_v28  ;;  %v1926_v35 = vadd.f32 %v1922_v0, %v1912_v5  ;;  %v1474_v17 = vmul.f32 %v7551_v31, %v7592_v41  ;;  %v1475_v52 = vmul.f32 %v7551_v31, %v7594_v54  ;;  %v1890_v63 = vmul.f32 %v7612_v51, %v7582_v49 }
  0x8b   :  { %6610 = vmatprep.subr.bf16.mxu0 %v6609_v30  ;;  %v1927_v33 = vadd.f32 %v1923_v57, %v1913_v8  ;;  %v1891_v34 = vmul.f32 %v7616_v48, %v7582_v49  ;;  %v1900_v18 = vmul.f32 %v7597_v61, %v7323_v11  ;;  %v1901_v25 = vmul.f32 %v7597_v61, %v7325_v12  ;;  %v7643_v57 = vld [vmem:[#allocation9 + $0x130] sm:$0xff] }
  0x8c   :  { %6612 = vmatpush3.bf16.msra.mxu0 %v6609_v30  ;;  %v1478_v9 = vadd.f32 %v1474_v17, %v1464_v2  ;;  %v1479_v27 = vadd.f32 %v1475_v52, %v1465_v6  ;;  %v1768_v22 = vmul.f32 %v7612_v51, %v1767_v1  ;;  %v1769_v4 = vmul.f32 %v7616_v48, %v1767_v1 }
  0x8d   :  { %v6633_v47 = vpack.c.bf16 %v1927_v33, %v1926_v35  ;;  %v1904_v50 = vadd.f32 %v1900_v18, %v1890_v63  ;;  %v1777_v16 = vstv %s7572_s28  ;;  %v1905_v5 = vadd.f32 %v1901_v25, %v1891_v34  ;;  %v7658_v34 = vld [vmem:[#allocation9 + $0x138] sm:$0xff]  ;;  %s5516_s28 = sld [smem:[#allocation3 + $0x27]] }
  0x8e   :  { %6080 = vmatprep.mubr.msk.f32.mxu0 %vm103_vm0, %v1478_v9  ;;  %v1778_v28 = vmul.f32 %v1777_v16, %v7385_v56  ;;  %v1779_v8 = vmul.f32 %v1777_v16, %v7387_v59  ;;  %v2177_v0 = vstv %s7584_s29  ;;  %v2187_v30 = vstv %s7586_s30  ;;  %s5517_s29 = sld [smem:[#allocation7 + $0x27]] }
  0x8f   :  { %6634 = vmatprep.subr.bf16.mxu1 %v6633_v47  ;;  %6122 = vmatprep.mubr.msk.f32.mxu1 %vm103_vm0, %v1904_v50  ;;  %v2178_v2 = vmul.f32 %v7612_v51, %v2177_v0  ;;  %v2179_v6 = vmul.f32 %v7616_v48, %v2177_v0  ;;  %v2188_v35 = vmul.f32 %v2187_v30, %v7097_v23  ;;  %v7652_v17 = vstv %s7599_s5 }
  0x90   :  { %6636 = vmatpush3.bf16.msra.mxu1 %v6633_v47  ;;  %6081 = vmatmul.mubr.msk.f32.vlgmr.msra.gmra.mrb[20].mxu0 %vm103_vm0, %v1479_v27  ;;  %v1782_v52 = vadd.f32 %v1778_v28, %v1768_v22  ;;  %v1783_v63 = vadd.f32 %v1779_v8, %v1769_v4  ;;  %v2189_v33 = vmul.f32 %v2187_v30, %v7125_v46  ;;  %v7661_v18 = vstv %s7608_s6 }
  0x91   :  { %v2192_v25 = vadd.f32 %v2188_v35, %v2178_v2  ;;  %v1466_v9 = vmul.f32 %v7589_v55, %v7539_v39  ;;  %v1476_v23 = vmul.f32 %v7551_v31, %v7643_v57  ;;  %v1892_v47 = vmul.f32 %v7589_v55, %v7582_v49 }
  0x92   :  { %v6621_v50 = vpack.c.bf16 %v1783_v63, %v1782_v52  ;;  %v2193_v27 = vadd.f32 %v2189_v33, %v2179_v6  ;;  %v1902_v22 = vmul.f32 %v7597_v61, %v7361_v15  ;;  %v1467_v46 = vmul.f32 %v7602_v42, %v7539_v39 }
  0x93   :  { %6123 = vmatmul.mubr.msk.f32.vlgmr.msra.gmra.mrb[24].mxu1 %vm103_vm0, %v1905_v5  ;;  %v1480_v4 = vadd.f32 %v1476_v23, %v1466_v9  ;;  %v1477_v28 = vmul.f32 %v7551_v31, %v7658_v34  ;;  %v1770_v8 = vmul.f32 %v7589_v55, %v1767_v1  ;;  %v1771_v2 = vmul.f32 %v7602_v42, %v1767_v1  ;;  %v7692_v23 = vld [vmem:[#allocation9 + $0x68] sm:$0xff] }
  0x94   :  { %6622 = vmatprep.subr.bf16.mxu0 %v6621_v50  ;;  %v6645_v6 = vpack.c.bf16 %v2193_v27, %v2192_v25  ;;  %v1906_v35 = vadd.f32 %v1902_v22, %v1892_v47  ;;  %v1780_v52 = vmul.f32 %v1777_v16, %v7423_v43  ;;  %v1781_v39 = vmul.f32 %v1777_v16, %v7439_v7  ;;  %v7690_v16 = vld [vmem:[#allocation9 + $0x60] sm:$0xff] }
  0x95   :  { %6624 = vmatpush3.bf16.msra.mxu0 %v6621_v50  ;;  %6083 = vmatprep.mubr.msk.f32.mxu0 %vm103_vm0, %v1480_v4  ;;  %v1481_v5 = vadd.f32 %v1477_v28, %v1467_v46  ;;  %v1893_v63 = vmul.f32 %v7602_v42, %v7582_v49  ;;  %v1903_v31 = vmul.f32 %v7597_v61, %v7363_v32  ;;  %v2051_v1 = vstv %s7636_s7 }
  0x96   :  { %6646 = vmatprep.subr.bf16.mxu1 %v6645_v6  ;;  %6125 = vmatprep.mubr.msk.f32.mxu1 %vm103_vm0, %v1906_v35  ;;  %v1784_v33 = vadd.f32 %v1780_v52, %v1770_v8  ;;  %v1785_v25 = vadd.f32 %v1781_v39, %v1771_v2  ;;  %v2180_v9 = vmul.f32 %v7589_v55, %v2177_v0  ;;  %v2061_v47 = vstv %s7645_s8  ;;  %v7718_v52 = vld [vmem:[#allocation9 + $0x78] sm:$0xff] }
  0x97   :  { %6648 = vmatpush3.bf16.msra.mxu1 %v6645_v6  ;;  %6084 = vmatmul.mubr.msk.f32.gmra.mrb[22].mxu0 %vm103_vm0, %v1481_v5  ;;  %v1907_v49 = vadd.f32 %v1903_v31, %v1893_v63  ;;  %v2181_v61 = vmul.f32 %v7602_v42, %v2177_v0  ;;  %v2190_v50 = vmul.f32 %v2187_v30, %v7135_v58  ;;  %v2031_v27 = vstv %s7654_s9  ;;  %v7712_v6 = vld [vmem:[#allocation9 + $0x70] sm:$0xff] }
  0x98   :  { %v6625_v22 = vpack.c.bf16 %v1785_v25, %v1784_v33  ;;  %v2191_v46 = vmul.f32 %v2187_v30, %v7160_v20  ;;  %v1748_v4 = vmul.f32 %v7612_v51, %v7652_v17  ;;  %v1749_v28 = vmul.f32 %v7616_v48, %v7652_v17 }
  0x99   :  { %6126 = vmatmul.mubr.msk.f32.gmra.mrb[26].mxu1 %vm103_vm0, %v1907_v49  ;;  %v2194_v8 = vadd.f32 %v2190_v50, %v2180_v9  ;;  %v1758_v2 = vmul.f32 %v7661_v18, %v7690_v16  ;;  %v1759_v58 = vmul.f32 %v7661_v18, %v7692_v23  ;;  %v2052_v0 = vmul.f32 %v7612_v51, %v2051_v1 }
  0x9a   :  { %6626 = vmatprep.subr.bf16.mxu0 %v6625_v22  ;;  %v2195_v20 = vadd.f32 %v2191_v46, %v2181_v61  ;;  %6150 = vmatprep.mubr.msk.f32.mxu1 %vm103_vm0, %v7185_v45  ;;  %v2053_v30 = vmul.f32 %v7616_v48, %v2051_v1  ;;  %v2062_v35 = vmul.f32 %v2061_v47, %v7477_v3  ;;  %v2041_v39 = vstv %s7673_s10 }
  0x9b   :  { %6628 = vmatpush3.bf16.msra.mxu0 %v6625_v22  ;;  %v1762_v5 = vadd.f32 %v1758_v2, %v1748_v4  ;;  %v1763_v63 = vadd.f32 %v1759_v58, %v1749_v28  ;;  %v2063_v31 = vmul.f32 %v2061_v47, %v7479_v37  ;;  %v1750_v33 = vmul.f32 %v7589_v55, %v7652_v17 }
  0x9c   :  { %v6649_v45 = vpack.c.bf16 %v2195_v20, %v2194_v8  ;;  %v2066_v25 = vadd.f32 %v2062_v35, %v2052_v0  ;;  %v1760_v3 = vmul.f32 %v7661_v18, %v7712_v6  ;;  %v1751_v9 = vmul.f32 %v7602_v42, %v7652_v17  ;;  %v2467_v35 = vld [vmem:[#allocation9 + $0xc0] sm:$0xff] }
  0x9d   :  { %6108 = vmatprep.mubr.msk.f32.mxu0 %vm103_vm0, %v1762_v5  ;;  %v2067_v49 = vadd.f32 %v2063_v31, %v2053_v30  ;;  %v1761_v37 = vmul.f32 %v7661_v18, %v7718_v52  ;;  %v2054_v61 = vmul.f32 %v7589_v55, %v2051_v1  ;;  %v2055_v50 = vmul.f32 %v7602_v42, %v2051_v1  ;;  %v2468_v5 = vld [vmem:[#allocation9 + $0xc8] sm:$0xff] }
  0x9e   :  { %6650 = vmatprep.subr.bf16.mxu1 %v6649_v45  ;;  %6109 = vmatmul.mubr.msk.f32.vlgmr.msra.gmra.mrb[24].mxu0 %vm103_vm0, %v1763_v63  ;;  %v1764_v22 = vadd.f32 %v1760_v3, %v1750_v33  ;;  %v2064_v46 = vmul.f32 %v2061_v47, %v7531_v60  ;;  %v2065_v17 = vmul.f32 %v2061_v47, %v7548_v13  ;;  %v2461_v4 = vstv %s7695_s11 }
  0x9f   :  { %6652 = vmatpush3.bf16.msra.mxu1 %v6649_v45  ;;  %v6637_v28 = vpack.c.bf16 %v2067_v49, %v2066_v25  ;;  %v1765_v8 = vadd.f32 %v1761_v37, %v1751_v9  ;;  %v2032_v18 = vmul.f32 %v7612_v51, %v2031_v27  ;;  %v2033_v2 = vmul.f32 %v7616_v48, %v2031_v27  ;;  %v2447_v25 = vld [vmem:[#allocation9 + $0x40] sm:$0xff] }
  0xa0   :  { %6111 = vmatprep.mubr.msk.f32.mxu0 %vm103_vm0, %v1764_v22  ;;  %v2068_v1 = vadd.f32 %v2064_v46, %v2054_v61  ;;  %v2069_v58 = vadd.f32 %v2065_v17, %v2055_v50  ;;  %v2042_v0 = vmul.f32 %v2041_v39, %v7225_v19  ;;  %v2043_v60 = vmul.f32 %v2041_v39, %v7227_v14  ;;  %v2448_v61 = vld [vmem:[#allocation9 + $0x48] sm:$0xff] }
  0xa1   :  { %6638 = vmatprep.subr.bf16.mxu0 %v6637_v28  ;;  %v2034_v13 = vmul.f32 %v7589_v55, %v2031_v27  ;;  %v2044_v47 = vmul.f32 %v2041_v39, %v7267_v62  ;;  %v2035_v20 = vmul.f32 %v7602_v42, %v2031_v27  ;;  %v2045_v30 = vmul.f32 %v2041_v39, %v7279_v29 }
  0xa2   :  { %6151 = vmatmul.mubr.msk.f32.vlgmr.msra.gmra.mrb[28].mxu1 %vm103_vm0, %v7231_v21  ;;  %6640 = vmatpush3.bf16.msra.mxu0 %v6637_v28  ;;  %v6641_v19 = vpack.c.bf16 %v2069_v58, %v2068_v1  ;;  %v2046_v14 = vadd.f32 %v2042_v0, %v2032_v18  ;;  %v2047_v63 = vadd.f32 %v2043_v60, %v2033_v2  ;;  %v2471_v62 = vstv %s7721_s12  ;;  %s6964_s12 = smov [#allocation10]  }
  0xa3   :  { %6153 = vmatprep.mubr.msk.f32.mxu1 %vm103_vm0, %v7241_v38  ;;  %6112 = vmatmul.mubr.msk.f32.gmra.mrb[26].mxu0 %vm103_vm0, %v1765_v8  ;;  %v2048_v29 = vadd.f32 %v2044_v47, %v2034_v13  ;;  %v2049_v27 = vadd.f32 %v2045_v30, %v2035_v20  ;;  %v2462_v39 = vmul.f32 %v7612_v51, %v2461_v4  ;;  %v2441_v31 = vstv %s7726_s13  ;;  %s5345_s13 = sshll.u32 %s6964_s12, 4  ;;  %s5346_s13 = int_to_ptr.vmem [resolvable:$true] %s5345_s13 }
  0xa4   :  { %6642 = vmatprep.subr.bf16.mxu0 %v6641_v19  ;;  %6136 = vmatprep.mubr.msk.f32.mxu0 %vm103_vm0, %v2046_v14  ;;  %v2463_v21 = vmul.f32 %v7616_v48, %v2461_v4  ;;  %v2472_v33 = vmul.f32 %v2471_v62, %v2467_v35  ;;  %v2473_v45 = vmul.f32 %v2471_v62, %v2468_v5  ;;  %v2451_v3 = vstv %s7732_s14  ;;  %v2449_v35 = vld [vmem:[#allocation9 + $0x50] sm:$0xff]  ;;  %v2450_v5 = vld [vmem:[#allocation9 + $0x58] sm:$0xff]  ;;  %s6926_s14 = scalar_lea.vmem %s5346_s13, 16  ;;  %p6931_p5 = scmp.lt.s32.totalorder %s5346_s13, %s5346_s13 }
  0xa5   :  { %v2464_v38 = vmul.f32 %v7589_v55, %v2461_v4  ;;  %v2465_v9 = vmul.f32 %v7602_v42, %v2461_v4  ;;  %v2474_v49 = vmul.f32 %v2471_v62, %v7247_v26  ;;  %v2475_v37 = vmul.f32 %v2471_v62, %v7251_v53  ;;  %p6927_p4 = scmp.ne.s32.totalorder %s5346_s13, %s6926_s14 }
  0xa6   :  { %6154 = vmatmul.mubr.msk.f32.gmra.mrb[30].mxu1 %vm103_vm0, %v7271_v10  ;;  %6644 = vmatpush3.bf16.msra.mxu0 %v6641_v19  ;;  %v2476_v50 = vadd.f32 %v2472_v33, %v2462_v39  ;;  %v2477_v22 = vadd.f32 %v2473_v45, %v2463_v21  ;;  %v2442_v46 = vmul.f32 %v7612_v51, %v2441_v31  ;;  %v2745_v17 = vstv %s7743_s15  ;;  %s6930_s15 = scalar_lea.vmem %s5346_s13, 32 }
  0xa7   :  { %v2478_v28 = vadd.f32 %v2474_v49, %v2464_v38  ;;  %v2479_v8 = vadd.f32 %v2475_v37, %v2465_v9  ;;  %v2443_v4 = vmul.f32 %v7616_v48, %v2441_v31  ;;  %v2452_v26 = vmul.f32 %v2451_v3, %v2447_v25  ;;  %p6932_p6 = scmp.lt.s32.totalorder %s6930_s15, %s6926_s14 }
  0xa8   :  { %v6661_v18 = vpack.c.bf16 %v2477_v22, %v2476_v50  ;;  %v2453_v53 = vmul.f32 %v2451_v3, %v2448_v61  ;;  %v2746_v2 = vmul.f32 %v7612_v51, %v2745_v17  ;;  %v2747_v10 = vmul.f32 %v7616_v48, %v2745_v17 }
  0xa9   :  { %6137 = vmatmul.mubr.msk.f32.vlgmr.msra.gmra.mrb[28].mxu0 %vm103_vm0, %v2047_v63  ;;  %v6665_v1 = vpack.c.bf16 %v2479_v8, %v2478_v28  ;;  %v2456_v58 = vadd.f32 %v2452_v26, %v2442_v46  ;;  %v2755_v0 = vstv %s7754_s16  ;;  %v2319_v60 = vstv %s7756_s2  ;;  %v2305_v28 = vld [vmem:[#allocation9 + $0xa0] sm:$0xff]  ;;  %p6933_p7 = por %p6932_p6, %p6931_p5 }
  0xaa   :  { %6139 = vmatprep.mubr.msk.f32.mxu0 %vm103_vm0, %v2048_v29  ;;  %6662 = vmatprep.subr.bf16.mxu1 %v6661_v18  ;;  %v2457_v13 = vadd.f32 %v2453_v53, %v2443_v4  ;;  %v2756_v47 = vmul.f32 %v2755_v0, %v7323_v11  ;;  %v2757_v20 = vmul.f32 %v2755_v0, %v7325_v12  ;;  %v2329_v30 = vstv %s7761_s17 }
  0xab   :  { %6664 = vmatpush3.bf16.msra.mxu1 %v6661_v18  ;;  %6178 = vmatprep.mubr.msk.f32.mxu1 %vm103_vm0, %v2456_v58  ;;  %v2320_v19 = vmul.f32 %v7612_v51, %v2319_v60  ;;  %v2321_v14 = vmul.f32 %v7616_v48, %v2319_v60  ;;  %v2330_v63 = vmul.f32 %v2329_v30, %v7592_v41  ;;  %v7800_v62 = vstv %s7768_s18  ;;  %v2306_v18 = vld [vmem:[#allocation9 + $0xa8] sm:$0xff]  ;;  %p6934_p8 = pnand %p6933_p7, %p6927_p4 }
  0xac   :  { %6666 = vmatprep.subr.bf16.mxu1 %v6665_v1  ;;  %v2760_v11 = vadd.f32 %v2756_v47, %v2746_v2  ;;  %v2761_v12 = vadd.f32 %v2757_v20, %v2747_v10  ;;  %v2331_v29 = vmul.f32 %v2329_v30, %v7594_v54  ;;  %v2444_v39 = vmul.f32 %v7589_v55, %v2441_v31 }
  0xad   :  { %6140 = vmatmul.mubr.msk.f32.gmra.mrb[30].mxu0 %vm103_vm0, %v2049_v27  ;;  %v2334_v21 = vadd.f32 %v2330_v63, %v2320_v19  ;;  %v2454_v33 = vmul.f32 %v2451_v3, %v2449_v35  ;;  %v2445_v45 = vmul.f32 %v7602_v42, %v2441_v31  ;;  %v2455_v25 = vmul.f32 %v2451_v3, %v2450_v5 }
  0xae   :  { %v6677_v41 = vpack.c.bf16 %v2761_v12, %v2760_v11  ;;  %v2335_v38 = vadd.f32 %v2331_v29, %v2321_v14  ;;  %v2748_v9 = vmul.f32 %v7589_v55, %v2745_v17  ;;  %v2749_v49 = vmul.f32 %v7602_v42, %v2745_v17  ;;  %v2308_v29 = vld [vmem:[#allocation9 + $0xb8] sm:$0xff] }
  0xaf   :  { %6668 = vmatpush3.bf16.msra.mxu1 %v6665_v1  ;;  %v2458_v37 = vadd.f32 %v2454_v33, %v2444_v39  ;;  %v2459_v54 = vadd.f32 %v2455_v25, %v2445_v45  ;;  %v2758_v61 = vmul.f32 %v2755_v0, %v7361_v15  ;;  %v2759_v27 = vmul.f32 %v2755_v0, %v7363_v32 }
  0xb0   :  { %6678 = vmatprep.subr.bf16.mxu1 %v6677_v41  ;;  %v6653_v31 = vpack.c.bf16 %v2335_v38, %v2334_v21  ;;  %v2322_v3 = vmul.f32 %v7589_v55, %v2319_v60  ;;  %v2323_v50 = vmul.f32 %v7602_v42, %v2319_v60  ;;  %v2332_v22 = vmul.f32 %v2329_v30, %v7643_v57 }
  0xb1   :  { %v2762_v46 = vadd.f32 %v2758_v61, %v2748_v9  ;;  %v2763_v17 = vadd.f32 %v2759_v27, %v2749_v49  ;;  %v2333_v15 = vmul.f32 %v2329_v30, %v7658_v34  ;;  %v2726_v32 = vmul.f32 %v7612_v51, %v7800_v62 }
  0xb2   :  { %6179 = vmatmul.mubr.msk.f32.vlgmr.msra.gmra.mrb[32].mxu1 %vm103_vm0, %v2457_v13  ;;  %6654 = vmatprep.subr.bf16.mxu0 %v6653_v31  ;;  %v2336_v8 = vadd.f32 %v2332_v22, %v2322_v3  ;;  %v2727_v4 = vmul.f32 %v7616_v48, %v7800_v62  ;;  %v2735_v26 = vstv %s7791_s19  ;;  %v2299_v57 = vstv %s7793_s20 }
  0xb3   :  { %6680 = vmatpush3.bf16.msra.mxu1 %v6677_v41  ;;  %6656 = vmatpush3.bf16.msra.mxu0 %v6653_v31  ;;  %v6681_v53 = vpack.c.bf16 %v2763_v17, %v2762_v46  ;;  %v2337_v2 = vadd.f32 %v2333_v15, %v2323_v50  ;;  %v2736_v34 = vmul.f32 %v2735_v26, %v7385_v56  ;;  %v2309_v10 = vstv %s7802_s21  ;;  %v2590_v31 = vld [vmem:[#allocation9 + $0x148] sm:$0xff] }
  0xb4   :  { %6181 = vmatprep.mubr.msk.f32.mxu1 %vm103_vm0, %v2458_v37  ;;  %v2737_v1 = vmul.f32 %v2735_v26, %v7387_v59  ;;  %v2300_v58 = vmul.f32 %v7612_v51, %v2299_v57  ;;  %v2301_v0 = vmul.f32 %v7616_v48, %v2299_v57  ;;  %v2310_v60 = vmul.f32 %v2309_v10, %v2305_v28  ;;  %v2307_v59 = vld [vmem:[#allocation9 + $0xb0] sm:$0xff]  ;;  %v2589_v37 = vld [vmem:[#allocation9 + $0x140] sm:$0xff] }
  0xb5   :  { %6682 = vmatprep.subr.bf16.mxu1 %v6681_v53  ;;  %v6657_v13 = vpack.c.bf16 %v2337_v2, %v2336_v8  ;;  %v2740_v47 = vadd.f32 %v2736_v34, %v2726_v32  ;;  %v2311_v20 = vmul.f32 %v2309_v10, %v2306_v18  ;;  %v2603_v30 = vstv %s7808_s22  ;;  %v2893_v28 = vld [vmem:[#allocation9 + $0x100] sm:$0xff]  ;;  %v2894_v8 = vld [vmem:[#allocation9 + $0x108] sm:$0xff]  ;;  %v2591_v18 = vld [vmem:[#allocation9 + $0x150] sm:$0xff] }
  0xb6   :  { %6182 = vmatmul.mubr.msk.f32.gmra.mrb[34].mxu1 %vm103_vm0, %v2459_v54  ;;  %v2314_v56 = vadd.f32 %v2310_v60, %v2300_v58  ;;  %v2741_v35 = vadd.f32 %v2737_v1, %v2727_v4  ;;  %v2604_v5 = vmul.f32 %v7612_v51, %v2603_v30  ;;  %v2605_v19 = vmul.f32 %v7616_v48, %v2603_v30  ;;  %v2895_v60 = vld [vmem:[#allocation9 + $0x110] sm:$0xff] }
  0xb7   :  { %6658 = vmatprep.subr.bf16.mxu0 %v6657_v13  ;;  %6684 = vmatpush3.bf16.msra.mxu1 %v6681_v53  ;;  %v2315_v14 = vadd.f32 %v2311_v20, %v2301_v0  ;;  %v2613_v63 = vstv %s7814_s23  ;;  %v2728_v11 = vmul.f32 %v7589_v55, %v7800_v62  ;;  %v2738_v12 = vmul.f32 %v2735_v26, %v7423_v43  ;;  %v2592_v0 = vld [vmem:[#allocation9 + $0x158] sm:$0xff] }
  0xb8   :  { %6660 = vmatpush3.bf16.msra.mxu0 %v6657_v13  ;;  %6206 = vmatprep.mubr.msk.f32.mxu1 %vm103_vm0, %v2740_v47  ;;  %v2614_v39 = vmul.f32 %v2613_v63, %v7690_v16  ;;  %v2615_v21 = vmul.f32 %v2613_v63, %v7692_v23  ;;  %v2302_v33 = vmul.f32 %v7589_v55, %v2299_v57  ;;  %v2583_v45 = vstv %s7819_s0  ;;  %v2896_v13 = vld [vmem:[#allocation9 + $0x118] sm:$0xff] }
  0xb9   :  { %6164 = vmatprep.mubr.msk.f32.mxu0 %vm103_vm0, %v2314_v56  ;;  %v2742_v25 = vadd.f32 %v2738_v12, %v2728_v11  ;;  %v2312_v41 = vmul.f32 %v2309_v10, %v2307_v59  ;;  %v2729_v38 = vmul.f32 %v7602_v42, %v7800_v62  ;;  %v2739_v43 = vmul.f32 %v2735_v26, %v7439_v7 }
  0xba   :  { %6207 = vmatmul.mubr.msk.f32.vlgmr.msra.gmra.mrb[36].mxu1 %vm103_vm0, %v2741_v35  ;;  %v2618_v9 = vadd.f32 %v2614_v39, %v2604_v5  ;;  %v2619_v49 = vadd.f32 %v2615_v21, %v2605_v19  ;;  %v2303_v16 = vmul.f32 %v7602_v42, %v2299_v57  ;;  %v2313_v23 = vmul.f32 %v2309_v10, %v2308_v29 }
  0xbb   :  { %6165 = vmatmul.mubr.msk.f32.vlgmr.msra.gmra.mrb[32].mxu0 %vm103_vm0, %v2315_v14  ;;  %6209 = vmatprep.mubr.msk.f32.mxu1 %vm103_vm0, %v2742_v25  ;;  %v2316_v54 = vadd.f32 %v2312_v41, %v2302_v33  ;;  %v2743_v61 = vadd.f32 %v2739_v43, %v2729_v38  ;;  %v2606_v27 = vmul.f32 %v7589_v55, %v2603_v30  ;;  %v2593_v62 = vstv %s7831_s1 }
  0xbc   :  { %v6669_v3 = vpack.c.bf16 %v2619_v49, %v2618_v9  ;;  %v2317_v7 = vadd.f32 %v2313_v23, %v2303_v16  ;;  %v2607_v50 = vmul.f32 %v7602_v42, %v2603_v30  ;;  %v2616_v22 = vmul.f32 %v2613_v63, %v7712_v6 }
  0xbd   :  { %6167 = vmatprep.mubr.msk.f32.mxu0 %vm103_vm0, %v2316_v54  ;;  %v2617_v46 = vmul.f32 %v2613_v63, %v7718_v52  ;;  %v2584_v17 = vmul.f32 %v7612_v51, %v2583_v45  ;;  %v2585_v15 = vmul.f32 %v7616_v48, %v2583_v45  ;;  %v2594_v32 = vmul.f32 %v2593_v62, %v2589_v37 }
  0xbe   :  { %6670 = vmatprep.subr.bf16.mxu0 %v6669_v3  ;;  %6210 = vmatmul.mubr.msk.f32.gmra.mrb[38].mxu1 %vm103_vm0, %v2743_v61  ;;  %v2620_v4 = vadd.f32 %v2616_v22, %v2606_v27  ;;  %v2595_v6 = vmul.f32 %v2593_v62, %v2590_v31  ;;  %v2887_v26 = vstv %s7841_s24  ;;  %v2897_v57 = vstv %s7843_s25 }
  0xbf   :  { %6672 = vmatpush3.bf16.msra.mxu0 %v6669_v3  ;;  %v2621_v53 = vadd.f32 %v2617_v46, %v2607_v50  ;;  %v2598_v2 = vadd.f32 %v2594_v32, %v2584_v17  ;;  %v2888_v52 = vmul.f32 %v7612_v51, %v2887_v26  ;;  %v2889_v34 = vmul.f32 %v7616_v48, %v2887_v26 }
  0xc0   :  { %6168 = vmatmul.mubr.msk.f32.gmra.mrb[34].mxu0 %vm103_vm0, %v2317_v7  ;;  %v2898_v10 = vmul.f32 %v2897_v57, %v2893_v28  ;;  %v2899_v1 = vmul.f32 %v2897_v57, %v2894_v8  ;;  %v2586_v58 = vmul.f32 %v7589_v55, %v2583_v45  ;;  %v2599_v20 = vadd.f32 %v2595_v6, %v2585_v15 }
  0xc1   :  { %v6673_v47 = vpack.c.bf16 %v2621_v53, %v2620_v4  ;;  %6192 = vmatprep.mubr.msk.f32.mxu0 %vm103_vm0, %v2598_v2  ;;  %v2596_v30 = vmul.f32 %v2593_v62, %v2591_v18  ;;  %v2890_v5 = vmul.f32 %v7589_v55, %v2887_v26  ;;  %v2891_v19 = vmul.f32 %v7602_v42, %v2887_v26 }
  0xc2   :  { %v2902_v56 = vadd.f32 %v2898_v10, %v2888_v52  ;;  %v2903_v35 = vadd.f32 %v2899_v1, %v2889_v34  ;;  %v2587_v59 = vmul.f32 %v7602_v42, %v2583_v45  ;;  %v2597_v14 = vmul.f32 %v2593_v62, %v2592_v0 }
  0xc3   :  { %6674 = vmatprep.subr.bf16.mxu0 %v6673_v47  ;;  %v2900_v63 = vmul.f32 %v2897_v57, %v2895_v60  ;;  %v2901_v11 = vmul.f32 %v2897_v57, %v2896_v13  ;;  %v2600_v29 = vadd.f32 %v2596_v30, %v2586_v58  ;;  %v2867_v39 = vstv %s7866_s26 }
  0xc4   :  { %6676 = vmatpush3.bf16.msra.mxu0 %v6673_v47  ;;  %v6685_v12 = vpack.c.bf16 %v2903_v35, %v2902_v56  ;;  %v2877_v21 = vstv %s7868_s27  ;;  %v2868_v41 = vmul.f32 %v7612_v51, %v2867_v39  ;;  %v2601_v43 = vadd.f32 %v2597_v14, %v2587_v59 }
  0xc5   :  { %v2904_v33 = vadd.f32 %v2900_v63, %v2890_v5  ;;  %v2905_v25 = vadd.f32 %v2901_v11, %v2891_v19  ;;  %v2878_v38 = vmul.f32 %v2877_v21, %v7519_v40  ;;  %v2869_v45 = vmul.f32 %v7616_v48, %v2867_v39 }
  0xc6   :  { %6686 = vmatprep.subr.bf16.mxu0 %v6685_v12  ;;  %v2879_v49 = vmul.f32 %v2877_v21, %v7521_v36  ;;  %v2870_v23 = vmul.f32 %v7589_v55, %v2867_v39  ;;  %v2880_v37 = vmul.f32 %v2877_v21, %v7570_v24  ;;  %v2871_v51 = vmul.f32 %v7602_v42, %v2867_v39 }
  0xc7   :  { %6193 = vmatmul.mubr.msk.f32.vlgmr.msra.gmra.mrb[36].mxu0 %vm103_vm0, %v2599_v20  ;;  %v6689_v9 = vpack.c.bf16 %v2905_v25, %v2904_v33  ;;  %v2882_v16 = vadd.f32 %v2878_v38, %v2868_v41  ;;  %v2881_v54 = vmul.f32 %v2877_v21, %v7579_v44 }
  0xc8   :  { %6688 = vmatpush3.bf16.msra.mxu0 %v6685_v12  ;;  %6195 = vmatprep.mubr.msk.f32.mxu0 %vm103_vm0, %v2600_v29  ;;  %v2883_v40 = vadd.f32 %v2879_v49, %v2869_v45  ;;  %v2884_v36 = vadd.f32 %v2880_v37, %v2870_v23 }
  0xc9   :  { %6690 = vmatprep.subr.bf16.mxu0 %v6689_v9  ;;  %v2885_v48 = vadd.f32 %v2881_v54, %v2871_v51 }
  0xcb   :  { %6196 = vmatmul.mubr.msk.f32.gmra.mrb[38].mxu0 %vm103_vm0, %v2601_v43 }
  0xcc   :  { %6692 = vmatpush3.bf16.msra.mxu0 %v6689_v9  ;;  %6220 = vmatprep.mubr.msk.f32.mxu0 %vm103_vm0, %v2882_v16 }
  0xcf   :  { %6221 = vmatmul.mubr.msk.f32.vlgmr.msra.gmra.mrb[40].mxu0 %vm103_vm0, %v2883_v40 }
  0xd0   :  { %6223 = vmatprep.mubr.msk.f32.mxu0 %vm103_vm0, %v2884_v36 }
  0xd3   :  { %6224 = vmatmul.mubr.msk.f32.gmra.mrb[42].mxu0 %vm103_vm0, %v2885_v48 }
 0x118   :  { %v5956_v24 = vpop.f32.mrb[0].mxu1 }
 0x119   :  { %346 = vst.msk [vmem:[#allocation2 + $0x28] sm:$0xff] %vm103_vm0, %v5956_v24  ;;  %v325_v55 = vpop.f32.mrb[1].mxu1 }
 0x11a   :  { %345 = vst.msk [vmem:[#allocation2 + $0x20] sm:$0xff] %vm103_vm0, %v325_v55 }
 0x11c   :  { %v5959_v42 = vpop.f32.mrb[2].mxu1 }
 0x11d   :  { %348 = vst.msk [vmem:[#allocation2 + $0x38] sm:$0xff] %vm103_vm0, %v5959_v42  ;;  %v335_v44 = vpop.f32.mrb[3].mxu1 }
 0x11e   :  { %347 = vst.msk [vmem:[#allocation2 + $0x30] sm:$0xff] %vm103_vm0, %v335_v44 }
 0x11f   :  { %v5942_v61 = vpop.f32.mrb[0].mxu0 }
 0x120   :  { %v3038_v27 = vld [vmem:[#allocation2 + $0x28] sm:$0xff]  ;;  %202 = vst.msk [vmem:[#allocation2 + $0x8] sm:$0xff] %vm103_vm0, %v5942_v61  ;;  %v182_v62 = vpop.f32.mrb[1].mxu0 }
 0x121   :  { %v5984_v31 = vpop.f32.mrb[4].mxu1  ;;  %v3037_v3 = vld [vmem:[#allocation2 + $0x20] sm:$0xff]  ;;  %201 = vst.msk [vmem:[#allocation2] sm:$0xff] %vm103_vm0, %v182_v62 }
 0x122   :  { %617 = vst.msk [vmem:[#allocation2 + $0x68] sm:$0xff] %vm103_vm0, %v5984_v31  ;;  %v596_v7 = vpop.f32.mrb[5].mxu1  ;;  %v6693_v50 = vpack.c.bf16 %v3038_v27, %v3037_v3 }
 0x123   :  { %616 = vst.msk [vmem:[#allocation2 + $0x60] sm:$0xff] %vm103_vm0, %v596_v7 }
 0x124   :  { %6694 = vmatprep.subr.bf16.mxu1 %v6693_v50  ;;  %v3040_v22 = vld [vmem:[#allocation2 + $0x38] sm:$0xff] }
 0x125   :  { %6696 = vmatpush3.bf16.msra.mxu1 %v6693_v50  ;;  %v3039_v46 = vld [vmem:[#allocation2 + $0x30] sm:$0xff] }
 0x126   :  { %v6697_v17 = vpack.c.bf16 %v3040_v22, %v3039_v46  ;;  %v5945_v15 = vpop.f32.mrb[2].mxu0 }
 0x127   :  { %204 = vst.msk [vmem:[#allocation2 + $0x18] sm:$0xff] %vm103_vm0, %v5945_v15  ;;  %v192_v32 = vpop.f32.mrb[3].mxu0  ;;  %v3034_v57 = vld [vmem:[#allocation2 + $0x8] sm:$0xff] }
 0x128   :  { %6698 = vmatprep.subr.bf16.mxu1 %v6697_v17  ;;  %v5987_v28 = vpop.f32.mrb[6].mxu1  ;;  %203 = vst.msk [vmem:[#allocation2 + $0x10] sm:$0xff] %vm103_vm0, %v192_v32  ;;  %v3033_v8 = vld [vmem:[#allocation2] sm:$0xff] }
 0x129   :  { %6700 = vmatpush3.bf16.msra.mxu1 %v6697_v17  ;;  %v3147_v4 = vld [vmem:[#allocation2 + $0x68] sm:$0xff]  ;;  %619 = vst.msk [vmem:[#allocation2 + $0x78] sm:$0xff] %vm103_vm0, %v5987_v28  ;;  %v606_v6 = vpop.f32.mrb[7].mxu1  ;;  %6234 = vmatprep.mubr.msk.f32.mxu1 %vm103_vm0, %v3033_v8 }
 0x12a   :  { %v3146_v26 = vld [vmem:[#allocation2 + $0x60] sm:$0xff]  ;;  %618 = vst.msk [vmem:[#allocation2 + $0x70] sm:$0xff] %vm103_vm0, %v606_v6 }
 0x12b   :  { %v6701_v18 = vpack.c.bf16 %v3147_v4, %v3146_v26 }
 0x12c   :  { %6235 = vmatmul.mubr.msk.f32.vlgmr.msra.gmra.mrb[40].mxu1 %vm103_vm0, %v3034_v57 }
 0x12d   :  { %6702 = vmatprep.subr.bf16.mxu0 %v6701_v18  ;;  %v5970_v53 = vpop.f32.mrb[4].mxu0 }
 0x12e   :  { %6704 = vmatpush3.bf16.msra.mxu0 %v6701_v18  ;;  %473 = vst.msk [vmem:[#allocation2 + $0x48] sm:$0xff] %vm103_vm0, %v5970_v53  ;;  %v452_v2 = vpop.f32.mrb[5].mxu0  ;;  %v3036_v10 = vld [vmem:[#allocation2 + $0x18] sm:$0xff] }
 0x12f   :  { %472 = vst.msk [vmem:[#allocation2 + $0x40] sm:$0xff] %vm103_vm0, %v452_v2  ;;  %v3035_v52 = vld [vmem:[#allocation2 + $0x10] sm:$0xff] }
 0x130   :  { %v6012_v34 = vpop.f32.mrb[8].mxu1  ;;  %6237 = vmatprep.mubr.msk.f32.mxu1 %vm103_vm0, %v3035_v52  ;;  %v3149_v1 = vld [vmem:[#allocation2 + $0x78] sm:$0xff] }
 0x131   :  { %903 = vst.msk [vmem:[#allocation2 + $0xa8] sm:$0xff] %vm103_vm0, %v6012_v34  ;;  %v882_v58 = vpop.f32.mrb[9].mxu1  ;;  %6238 = vmatmul.mubr.msk.f32.gmra.mrb[42].mxu1 %vm103_vm0, %v3036_v10  ;;  %v3148_v0 = vld [vmem:[#allocation2 + $0x70] sm:$0xff] }
 0x132   :  { %902 = vst.msk [vmem:[#allocation2 + $0xa0] sm:$0xff] %vm103_vm0, %v882_v58  ;;  %v5973_v60 = vpop.f32.mrb[6].mxu0  ;;  %v6705_v13 = vpack.c.bf16 %v3149_v1, %v3148_v0 }
 0x133   :  { %475 = vst.msk [vmem:[#allocation2 + $0x58] sm:$0xff] %vm103_vm0, %v5973_v60  ;;  %v462_v47 = vpop.f32.mrb[7].mxu0 }
 0x134   :  { %v6015_v20 = vpop.f32.mrb[10].mxu1  ;;  %474 = vst.msk [vmem:[#allocation2 + $0x50] sm:$0xff] %vm103_vm0, %v462_v47  ;;  %6706 = vmatprep.subr.bf16.mxu0 %v6705_v13 }
 0x135   :  { %905 = vst.msk [vmem:[#allocation2 + $0xb8] sm:$0xff] %vm103_vm0, %v6015_v20  ;;  %v892_v30 = vpop.f32.mrb[11].mxu1  ;;  %6708 = vmatpush3.bf16.msra.mxu0 %v6705_v13  ;;  %v3143_v35 = vld [vmem:[#allocation2 + $0x48] sm:$0xff] }
 0x136   :  { %904 = vst.msk [vmem:[#allocation2 + $0xb0] sm:$0xff] %vm103_vm0, %v892_v30  ;;  %v3142_v56 = vld [vmem:[#allocation2 + $0x40] sm:$0xff] }
 0x137   :  { %6248 = vmatprep.mubr.msk.f32.mxu0 %vm103_vm0, %v3142_v56 }
 0x138   :  { %6249 = vmatmul.mubr.msk.f32.vlgmr.msra.gmra.mrb[44].mxu0 %vm103_vm0, %v3143_v35  ;;  %v3256_v5 = vld [vmem:[#allocation2 + $0xa8] sm:$0xff] }
 0x139   :  { %v5998_v19 = vpop.f32.mrb[8].mxu0  ;;  %v3255_v59 = vld [vmem:[#allocation2 + $0xa0] sm:$0xff] }
 0x13a   :  { %760 = vst.msk [vmem:[#allocation2 + $0x88] sm:$0xff] %vm103_vm0, %v5998_v19  ;;  %v739_v14 = vpop.f32.mrb[9].mxu0  ;;  %v6709_v63 = vpack.c.bf16 %v3256_v5, %v3255_v59  ;;  %v3145_v29 = vld [vmem:[#allocation2 + $0x58] sm:$0xff] }
 0x13b   :  { %759 = vst.msk [vmem:[#allocation2 + $0x80] sm:$0xff] %vm103_vm0, %v739_v14  ;;  %v3144_v11 = vld [vmem:[#allocation2 + $0x50] sm:$0xff] }
 0x13c   :  { %v6040_v12 = vpop.f32.mrb[12].mxu1  ;;  %6710 = vmatprep.subr.bf16.mxu1 %v6709_v63  ;;  %6251 = vmatprep.mubr.msk.f32.mxu0 %vm103_vm0, %v3144_v11  ;;  %v3258_v39 = vld [vmem:[#allocation2 + $0xb8] sm:$0xff] }
 0x13d   :  { %1190 = vst.msk [vmem:[#allocation2 + $0xe8] sm:$0xff] %vm103_vm0, %v6040_v12  ;;  %v1169_v21 = vpop.f32.mrb[13].mxu1  ;;  %6712 = vmatpush3.bf16.msra.mxu1 %v6709_v63  ;;  %6252 = vmatmul.mubr.msk.f32.gmra.mrb[46].mxu0 %vm103_vm0, %v3145_v29  ;;  %v3257_v33 = vld [vmem:[#allocation2 + $0xb0] sm:$0xff] }
 0x13e   :  { %1189 = vst.msk [vmem:[#allocation2 + $0xe0] sm:$0xff] %vm103_vm0, %v1169_v21  ;;  %v6713_v25 = vpack.c.bf16 %v3258_v39, %v3257_v33 }
 0x140   :  { %6714 = vmatprep.subr.bf16.mxu1 %v6713_v25 }
 0x141   :  { %v6001_v41 = vpop.f32.mrb[10].mxu0  ;;  %6716 = vmatpush3.bf16.msra.mxu1 %v6713_v25  ;;  %v3252_v45 = vld [vmem:[#allocation2 + $0x88] sm:$0xff] }
 0x142   :  { %762 = vst.msk [vmem:[#allocation2 + $0x98] sm:$0xff] %vm103_vm0, %v6001_v41  ;;  %v749_v38 = vpop.f32.mrb[11].mxu0  ;;  %v3251_v43 = vld [vmem:[#allocation2 + $0x80] sm:$0xff] }
 0x143   :  { %v6043_v9 = vpop.f32.mrb[14].mxu1  ;;  %761 = vst.msk [vmem:[#allocation2 + $0x90] sm:$0xff] %vm103_vm0, %v749_v38  ;;  %6262 = vmatprep.mubr.msk.f32.mxu1 %vm103_vm0, %v3251_v43 }
 0x144   :  { %1192 = vst.msk [vmem:[#allocation2 + $0xf8] sm:$0xff] %vm103_vm0, %v6043_v9  ;;  %v1179_v49 = vpop.f32.mrb[15].mxu1  ;;  %6263 = vmatmul.mubr.msk.f32.vlgmr.msra.gmra.mrb[44].mxu1 %vm103_vm0, %v3252_v45  ;;  %v3365_v16 = vld [vmem:[#allocation2 + $0xe8] sm:$0xff] }
 0x145   :  { %1191 = vst.msk [vmem:[#allocation2 + $0xf0] sm:$0xff] %vm103_vm0, %v1179_v49  ;;  %v3364_v23 = vld [vmem:[#allocation2 + $0xe0] sm:$0xff] }
 0x146   :  { %v6717_v37 = vpack.c.bf16 %v3365_v16, %v3364_v23 }
 0x148   :  { %6718 = vmatprep.subr.bf16.mxu0 %v6717_v37 }
 0x149   :  { %v6026_v40 = vpop.f32.mrb[12].mxu0  ;;  %6720 = vmatpush3.bf16.msra.mxu0 %v6717_v37  ;;  %v3254_v48 = vld [vmem:[#allocation2 + $0x98] sm:$0xff] }
 0x14a   :  { %1047 = vst.msk [vmem:[#allocation2 + $0xc8] sm:$0xff] %vm103_vm0, %v6026_v40  ;;  %v1026_v51 = vpop.f32.mrb[13].mxu0  ;;  %v3253_v54 = vld [vmem:[#allocation2 + $0x90] sm:$0xff] }
 0x14b   :  { %v6068_v36 = vpop.f32.mrb[16].mxu1  ;;  %1046 = vst.msk [vmem:[#allocation2 + $0xc0] sm:$0xff] %vm103_vm0, %v1026_v51  ;;  %6265 = vmatprep.mubr.msk.f32.mxu1 %vm103_vm0, %v3253_v54  ;;  %v3367_v24 = vld [vmem:[#allocation2 + $0xf8] sm:$0xff] }
 0x14c   :  { %1459 = vst.msk [vmem:[#allocation2 + $0x128] sm:$0xff] %vm103_vm0, %v6068_v36  ;;  %v1438_v55 = vpop.f32.mrb[17].mxu1  ;;  %6266 = vmatmul.mubr.msk.f32.gmra.mrb[46].mxu1 %vm103_vm0, %v3254_v48  ;;  %v3366_v42 = vld [vmem:[#allocation2 + $0xf0] sm:$0xff] }
 0x14d   :  { %1458 = vst.msk [vmem:[#allocation2 + $0x120] sm:$0xff] %vm103_vm0, %v1438_v55  ;;  %v6029_v44 = vpop.f32.mrb[14].mxu0  ;;  %v6721_v61 = vpack.c.bf16 %v3367_v24, %v3366_v42 }
 0x14e   :  { %1049 = vst.msk [vmem:[#allocation2 + $0xd8] sm:$0xff] %vm103_vm0, %v6029_v44  ;;  %v1036_v27 = vpop.f32.mrb[15].mxu0 }
 0x14f   :  { %v6071_v31 = vpop.f32.mrb[18].mxu1  ;;  %1048 = vst.msk [vmem:[#allocation2 + $0xd0] sm:$0xff] %vm103_vm0, %v1036_v27  ;;  %6722 = vmatprep.subr.bf16.mxu0 %v6721_v61 }
 0x150   :  { %1461 = vst.msk [vmem:[#allocation2 + $0x138] sm:$0xff] %vm103_vm0, %v6071_v31  ;;  %v1448_v62 = vpop.f32.mrb[19].mxu1  ;;  %6724 = vmatpush3.bf16.msra.mxu0 %v6721_v61 }
 0x151   :  { %1460 = vst.msk [vmem:[#allocation2 + $0x130] sm:$0xff] %vm103_vm0, %v1448_v62  ;;  %v3361_v7 = vld [vmem:[#allocation2 + $0xc8] sm:$0xff] }
 0x152   :  { %v3360_v3 = vld [vmem:[#allocation2 + $0xc0] sm:$0xff] }
 0x153   :  { %6276 = vmatprep.mubr.msk.f32.mxu0 %vm103_vm0, %v3360_v3  ;;  %v3474_v50 = vld [vmem:[#allocation2 + $0x128] sm:$0xff] }
 0x154   :  { %v6054_v22 = vpop.f32.mrb[16].mxu0  ;;  %6277 = vmatmul.mubr.msk.f32.vlgmr.msra.gmra.mrb[48].mxu0 %vm103_vm0, %v3361_v7  ;;  %v3473_v46 = vld [vmem:[#allocation2 + $0x120] sm:$0xff] }
 0x155   :  { %1317 = vst.msk [vmem:[#allocation2 + $0x108] sm:$0xff] %vm103_vm0, %v6054_v22  ;;  %v1296_v17 = vpop.f32.mrb[17].mxu0  ;;  %v6725_v15 = vpack.c.bf16 %v3474_v50, %v3473_v46  ;;  %v3363_v8 = vld [vmem:[#allocation2 + $0xd8] sm:$0xff] }
 0x156   :  { %1316 = vst.msk [vmem:[#allocation2 + $0x100] sm:$0xff] %vm103_vm0, %v1296_v17  ;;  %v3362_v32 = vld [vmem:[#allocation2 + $0xd0] sm:$0xff] }
 0x157   :  { %v6096_v28 = vpop.f32.mrb[20].mxu1  ;;  %6726 = vmatprep.subr.bf16.mxu1 %v6725_v15  ;;  %6279 = vmatprep.mubr.msk.f32.mxu0 %vm103_vm0, %v3362_v32  ;;  %v3476_v4 = vld [vmem:[#allocation2 + $0x138] sm:$0xff] }
 0x158   :  { %1743 = vst.msk [vmem:[#allocation2 + $0x168] sm:$0xff] %vm103_vm0, %v6096_v28  ;;  %v1722_v6 = vpop.f32.mrb[21].mxu1  ;;  %6728 = vmatpush3.bf16.msra.mxu1 %v6725_v15  ;;  %6280 = vmatmul.mubr.msk.f32.gmra.mrb[50].mxu0 %vm103_vm0, %v3363_v8  ;;  %v3475_v26 = vld [vmem:[#allocation2 + $0x130] sm:$0xff] }
 0x159   :  { %1742 = vst.msk [vmem:[#allocation2 + $0x160] sm:$0xff] %vm103_vm0, %v1722_v6  ;;  %v6729_v57 = vpack.c.bf16 %v3476_v4, %v3475_v26 }
 0x15b   :  { %v6057_v18 = vpop.f32.mrb[18].mxu0  ;;  %6730 = vmatprep.subr.bf16.mxu1 %v6729_v57 }
 0x15c   :  { %1319 = vst.msk [vmem:[#allocation2 + $0x118] sm:$0xff] %vm103_vm0, %v6057_v18  ;;  %v1306_v53 = vpop.f32.mrb[19].mxu0  ;;  %6732 = vmatpush3.bf16.msra.mxu1 %v6729_v57  ;;  %v3470_v10 = vld [vmem:[#allocation2 + $0x108] sm:$0xff] }
 0x15d   :  { %v6099_v2 = vpop.f32.mrb[22].mxu1  ;;  %1318 = vst.msk [vmem:[#allocation2 + $0x110] sm:$0xff] %vm103_vm0, %v1306_v53  ;;  %v3469_v52 = vld [vmem:[#allocation2 + $0x100] sm:$0xff] }
 0x15e   :  { %1745 = vst.msk [vmem:[#allocation2 + $0x178] sm:$0xff] %vm103_vm0, %v6099_v2  ;;  %v1732_v34 = vpop.f32.mrb[23].mxu1  ;;  %6290 = vmatprep.mubr.msk.f32.mxu1 %vm103_vm0, %v3469_v52 }
 0x15f   :  { %1744 = vst.msk [vmem:[#allocation2 + $0x170] sm:$0xff] %vm103_vm0, %v1732_v34  ;;  %6291 = vmatmul.mubr.msk.f32.vlgmr.msra.gmra.mrb[48].mxu1 %vm103_vm0, %v3470_v10  ;;  %v3583_v1 = vld [vmem:[#allocation2 + $0x168] sm:$0xff] }
 0x160   :  { %v3582_v58 = vld [vmem:[#allocation2 + $0x160] sm:$0xff] }
 0x161   :  { %v6733_v0 = vpack.c.bf16 %v3583_v1, %v3582_v58 }
 0x163   :  { %v6082_v60 = vpop.f32.mrb[20].mxu0  ;;  %6734 = vmatprep.subr.bf16.mxu0 %v6733_v0  ;;  %v3472_v20 = vld [vmem:[#allocation2 + $0x118] sm:$0xff] }
 0x164   :  { %1601 = vst.msk [vmem:[#allocation2 + $0x148] sm:$0xff] %vm103_vm0, %v6082_v60  ;;  %v1580_v13 = vpop.f32.mrb[21].mxu0  ;;  %6736 = vmatpush3.bf16.msra.mxu0 %v6733_v0  ;;  %v3471_v47 = vld [vmem:[#allocation2 + $0x110] sm:$0xff] }
 0x165   :  { %1600 = vst.msk [vmem:[#allocation2 + $0x140] sm:$0xff] %vm103_vm0, %v1580_v13  ;;  %6293 = vmatprep.mubr.msk.f32.mxu1 %vm103_vm0, %v3471_v47  ;;  %v3585_v30 = vld [vmem:[#allocation2 + $0x178] sm:$0xff] }
 0x166   :  { %v6124_v56 = vpop.f32.mrb[24].mxu1  ;;  %6294 = vmatmul.mubr.msk.f32.gmra.mrb[50].mxu1 %vm103_vm0, %v3472_v20  ;;  %v3584_v35 = vld [vmem:[#allocation2 + $0x170] sm:$0xff] }
 0x167   :  { %2027 = vst.msk [vmem:[#allocation2 + $0x1a8] sm:$0xff] %vm103_vm0, %v6124_v56  ;;  %v2006_v5 = vpop.f32.mrb[25].mxu1  ;;  %v6737_v19 = vpack.c.bf16 %v3585_v30, %v3584_v35  ;;  %v3015_v35 = vld [vmem:[#allocation9 + $0x180] sm:$0xff] }
 0x168   :  { %2026 = vst.msk [vmem:[#allocation2 + $0x1a0] sm:$0xff] %vm103_vm0, %v2006_v5 }
 0x169   :  { %6738 = vmatprep.subr.bf16.mxu0 %v6737_v19 }
 0x16a   :  { %v6085_v59 = vpop.f32.mrb[22].mxu0  ;;  %6740 = vmatpush3.bf16.msra.mxu0 %v6737_v19 }
 0x16b   :  { %1603 = vst.msk [vmem:[#allocation2 + $0x158] sm:$0xff] %vm103_vm0, %v6085_v59  ;;  %v1590_v14 = vpop.f32.mrb[23].mxu0  ;;  %v3579_v29 = vld [vmem:[#allocation2 + $0x148] sm:$0xff] }
 0x16c   :  { %v6127_v63 = vpop.f32.mrb[26].mxu1  ;;  %1602 = vst.msk [vmem:[#allocation2 + $0x150] sm:$0xff] %vm103_vm0, %v1590_v14  ;;  %v3578_v11 = vld [vmem:[#allocation2 + $0x140] sm:$0xff]  ;;  %v3016_v59 = vld [vmem:[#allocation9 + $0x188] sm:$0xff]  ;;  %v3009_v14 = vstv %s5516_s28 }
 0x16d   :  { %2029 = vst.msk [vmem:[#allocation2 + $0x1b8] sm:$0xff] %vm103_vm0, %v6127_v63  ;;  %v2016_v12 = vpop.f32.mrb[27].mxu1  ;;  %6304 = vmatprep.mubr.msk.f32.mxu0 %vm103_vm0, %v3578_v11  ;;  %v3019_v63 = vstv %s5517_s29 }
 0x16e   :  { %2028 = vst.msk [vmem:[#allocation2 + $0x1b0] sm:$0xff] %vm103_vm0, %v2016_v12  ;;  %6305 = vmatmul.mubr.msk.f32.vlgmr.msra.gmra.mrb[52].mxu0 %vm103_vm0, %v3579_v29  ;;  %v3692_v39 = vld [vmem:[#allocation2 + $0x1a8] sm:$0xff]  ;;  %v6876_v12 = vld [vmem:[#allocation9] sm:$0xff] }
 0x16f   :  { %v3691_v21 = vld [vmem:[#allocation2 + $0x1a0] sm:$0xff]  ;;  %v3010_v29 = vmul.f32 %v6876_v12, %v3009_v14 }
 0x170   :  { %v6741_v33 = vpack.c.bf16 %v3692_v39, %v3691_v21  ;;  %v6877_v39 = vld [vmem:[#allocation9 + $0x8] sm:$0xff] }
 0x171   :  { %v6110_v25 = vpop.f32.mrb[24].mxu0  ;;  %v3011_v21 = vmul.f32 %v6877_v39, %v3009_v14 }
 0x172   :  { %1885 = vst.msk [vmem:[#allocation2 + $0x188] sm:$0xff] %vm103_vm0, %v6110_v25  ;;  %v1864_v41 = vpop.f32.mrb[25].mxu0  ;;  %6742 = vmatprep.subr.bf16.mxu1 %v6741_v33  ;;  %v3581_v43 = vld [vmem:[#allocation2 + $0x158] sm:$0xff]  ;;  %v3017_v25 = vld [vmem:[#allocation9 + $0x190] sm:$0xff] }
 0x173   :  { %1884 = vst.msk [vmem:[#allocation2 + $0x180] sm:$0xff] %vm103_vm0, %v1864_v41  ;;  %6744 = vmatpush3.bf16.msra.mxu1 %v6741_v33  ;;  %v3580_v38 = vld [vmem:[#allocation2 + $0x150] sm:$0xff]  ;;  %v3020_v33 = vmul.f32 %v3019_v63, %v3015_v35  ;;  %v3018_v41 = vld [vmem:[#allocation9 + $0x198] sm:$0xff] }
 0x174   :  { %6307 = vmatprep.mubr.msk.f32.mxu0 %vm103_vm0, %v3580_v38  ;;  %v3694_v9 = vld [vmem:[#allocation2 + $0x1b8] sm:$0xff] }
 0x175   :  { %v6152_v45 = vpop.f32.mrb[28].mxu1  ;;  %6308 = vmatmul.mubr.msk.f32.gmra.mrb[54].mxu0 %vm103_vm0, %v3581_v43  ;;  %v3693_v49 = vld [vmem:[#allocation2 + $0x1b0] sm:$0xff] }
 0x176   :  { %2295 = vst.msk [vmem:[#allocation2 + $0x1e8] sm:$0xff] %vm103_vm0, %v6152_v45  ;;  %v2274_v16 = vpop.f32.mrb[29].mxu1  ;;  %v6113_v23 = vpop.f32.mrb[26].mxu0  ;;  %v6745_v37 = vpack.c.bf16 %v3694_v9, %v3693_v49  ;;  %v3021_v9 = vmul.f32 %v3019_v63, %v3016_v59  ;;  %v6878_v45 = vld [vmem:[#allocation9 + $0x10] sm:$0xff] }
 0x177   :  { %2294 = vst.msk [vmem:[#allocation2 + $0x1e0] sm:$0xff] %vm103_vm0, %v2274_v16  ;;  %1887 = vst.msk [vmem:[#allocation2 + $0x198] sm:$0xff] %vm103_vm0, %v6113_v23  ;;  %v1874_v40 = vpop.f32.mrb[27].mxu0  ;;  %v3012_v49 = vmul.f32 %v6878_v45, %v3009_v14  ;;  %v6879_v16 = vld [vmem:[#allocation9 + $0x18] sm:$0xff] }
 0x178   :  { %1886 = vst.msk [vmem:[#allocation2 + $0x190] sm:$0xff] %vm103_vm0, %v1874_v40  ;;  %6746 = vmatprep.subr.bf16.mxu1 %v6745_v37  ;;  %v3013_v23 = vmul.f32 %v6879_v16, %v3009_v14 }
 0x179   :  { %v6155_v51 = vpop.f32.mrb[30].mxu1  ;;  %6748 = vmatpush3.bf16.msra.mxu1 %v6745_v37  ;;  %v3688_v48 = vld [vmem:[#allocation2 + $0x188] sm:$0xff]  ;;  %v3022_v37 = vmul.f32 %v3019_v63, %v3017_v25 }
 0x17a   :  { %2297 = vst.msk [vmem:[#allocation2 + $0x1f8] sm:$0xff] %vm103_vm0, %v6155_v51  ;;  %v2284_v54 = vpop.f32.mrb[31].mxu1  ;;  %v3687_v36 = vld [vmem:[#allocation2 + $0x180] sm:$0xff] }
 0x17b   :  { %2296 = vst.msk [vmem:[#allocation2 + $0x1f0] sm:$0xff] %vm103_vm0, %v2284_v54  ;;  %6318 = vmatprep.mubr.msk.f32.mxu1 %vm103_vm0, %v3687_v36  ;;  %v3024_v54 = vadd.f32 %v3020_v33, %v3010_v29 }
 0x17c   :  { %v6138_v24 = vpop.f32.mrb[28].mxu0  ;;  %6319 = vmatmul.mubr.msk.f32.vlgmr.msra.gmra.mrb[52].mxu1 %vm103_vm0, %v3688_v48  ;;  %v3023_v48 = vmul.f32 %v3019_v63, %v3018_v41 }
 0x17d   :  { %2169 = vst.msk [vmem:[#allocation2 + $0x1c8] sm:$0xff] %vm103_vm0, %v6138_v24  ;;  %v2148_v55 = vpop.f32.mrb[29].mxu0  ;;  %v3801_v42 = vld [vmem:[#allocation2 + $0x1e8] sm:$0xff]  ;;  %v3025_v24 = vadd.f32 %v3021_v9, %v3011_v21  ;;  %3029 = vst.msk [vmem:[#allocation2 + $0x2a0] sm:$0xff] %vm103_vm0, %v3024_v54 }
 0x17e   :  { %2168 = vst.msk [vmem:[#allocation2 + $0x1c0] sm:$0xff] %vm103_vm0, %v2148_v55  ;;  %v3800_v44 = vld [vmem:[#allocation2 + $0x1e0] sm:$0xff]  ;;  %v3690_v62 = vld [vmem:[#allocation2 + $0x198] sm:$0xff] }
 0x17f   :  { %v6749_v61 = vpack.c.bf16 %v3801_v42, %v3800_v44  ;;  %v3689_v27 = vld [vmem:[#allocation2 + $0x190] sm:$0xff]  ;;  %v3026_v42 = vadd.f32 %v3022_v37, %v3012_v49  ;;  %v3027_v44 = vadd.f32 %v3023_v48, %v3013_v23  ;;  %3030 = vst.msk [vmem:[#allocation2 + $0x2a8] sm:$0xff] %vm103_vm0, %v3025_v24 }
 0x180   :  { %v6141_v31 = vpop.f32.mrb[30].mxu0  ;;  %6321 = vmatprep.mubr.msk.f32.mxu1 %vm103_vm0, %v3689_v27 }
 0x181   :  { %2171 = vst.msk [vmem:[#allocation2 + $0x1d8] sm:$0xff] %vm103_vm0, %v6141_v31  ;;  %6750 = vmatprep.subr.bf16.mxu0 %v6749_v61  ;;  %v2158_v3 = vpop.f32.mrb[31].mxu0  ;;  %6322 = vmatmul.mubr.msk.f32.gmra.mrb[54].mxu1 %vm103_vm0, %v3690_v62  ;;  %v3803_v7 = vld [vmem:[#allocation2 + $0x1f8] sm:$0xff]  ;;  %3031 = vst.msk [vmem:[#allocation2 + $0x2b0] sm:$0xff] %vm103_vm0, %v3026_v42 }
 0x182   :  { %2170 = vst.msk [vmem:[#allocation2 + $0x1d0] sm:$0xff] %vm103_vm0, %v2158_v3  ;;  %6752 = vmatpush3.bf16.msra.mxu0 %v6749_v61  ;;  %v3802_v50 = vld [vmem:[#allocation2 + $0x1f0] sm:$0xff]  ;;  %3032 = vst.msk [vmem:[#allocation2 + $0x2b8] sm:$0xff] %vm103_vm0, %v3027_v44 }
 0x183   :  { %v6753_v22 = vpack.c.bf16 %v3803_v7, %v3802_v50 }
 0x184   :  { %v3797_v32 = vld [vmem:[#allocation2 + $0x1c8] sm:$0xff]  ;;  %v4127_v50 = vld [vmem:[#allocation2 + $0x2a0] sm:$0xff] }
 0x185   :  { %6754 = vmatprep.subr.bf16.mxu0 %v6753_v22  ;;  %v3796_v46 = vld [vmem:[#allocation2 + $0x1c0] sm:$0xff]  ;;  %v6180_v17 = vpop.f32.mrb[32].mxu1 }
 0x186   :  { %6756 = vmatpush3.bf16.msra.mxu0 %v6753_v22  ;;  %6332 = vmatprep.mubr.msk.f32.mxu0 %vm103_vm0, %v3796_v46  ;;  %2579 = vst.msk [vmem:[#allocation2 + $0x228] sm:$0xff] %vm103_vm0, %v6180_v17  ;;  %v2558_v15 = vpop.f32.mrb[33].mxu1  ;;  %v4128_v22 = vld [vmem:[#allocation2 + $0x2a8] sm:$0xff] }
 0x187   :  { %2578 = vst.msk [vmem:[#allocation2 + $0x220] sm:$0xff] %vm103_vm0, %v2558_v15 }
 0x188   :  { %v3799_v6 = vld [vmem:[#allocation2 + $0x1d8] sm:$0xff]  ;;  %v4129_v46 = vld [vmem:[#allocation2 + $0x2b0] sm:$0xff] }
 0x189   :  { %6333 = vmatmul.mubr.msk.f32.vlgmr.msra.gmra.mrb[56].mxu0 %vm103_vm0, %v3797_v32  ;;  %v3798_v28 = vld [vmem:[#allocation2 + $0x1d0] sm:$0xff]  ;;  %v6183_v8 = vpop.f32.mrb[34].mxu1  ;;  %v6773_v32 = vpack.c.bf16 %v4128_v22, %v4127_v50 }
 0x18a   :  { %6335 = vmatprep.mubr.msk.f32.mxu0 %vm103_vm0, %v3798_v28  ;;  %2581 = vst.msk [vmem:[#allocation2 + $0x238] sm:$0xff] %vm103_vm0, %v6183_v8  ;;  %v2568_v4 = vpop.f32.mrb[35].mxu1  ;;  %v4130_v28 = vld [vmem:[#allocation2 + $0x2b8] sm:$0xff] }
 0x18b   :  { %2580 = vst.msk [vmem:[#allocation2 + $0x230] sm:$0xff] %vm103_vm0, %v2568_v4 }
 0x18d   :  { %6336 = vmatmul.mubr.msk.f32.gmra.mrb[58].mxu0 %vm103_vm0, %v3799_v6  ;;  %v6208_v26 = vpop.f32.mrb[36].mxu1  ;;  %v3910_v57 = vld [vmem:[#allocation2 + $0x228] sm:$0xff]  ;;  %v6777_v6 = vpack.c.bf16 %v4130_v28, %v4129_v46 }
 0x18e   :  { %2863 = vst.msk [vmem:[#allocation2 + $0x268] sm:$0xff] %vm103_vm0, %v6208_v26  ;;  %v2842_v18 = vpop.f32.mrb[37].mxu1  ;;  %v6166_v53 = vpop.f32.mrb[32].mxu0  ;;  %v3909_v2 = vld [vmem:[#allocation2 + $0x220] sm:$0xff] }
 0x18f   :  { %2862 = vst.msk [vmem:[#allocation2 + $0x260] sm:$0xff] %vm103_vm0, %v2842_v18  ;;  %2437 = vst.msk [vmem:[#allocation2 + $0x208] sm:$0xff] %vm103_vm0, %v6166_v53  ;;  %v2416_v52 = vpop.f32.mrb[33].mxu0  ;;  %v6757_v34 = vpack.c.bf16 %v3910_v57, %v3909_v2 }
 0x190   :  { %2436 = vst.msk [vmem:[#allocation2 + $0x200] sm:$0xff] %vm103_vm0, %v2416_v52 }
 0x191   :  { %v6211_v10 = vpop.f32.mrb[38].mxu1  ;;  %6758 = vmatprep.subr.bf16.mxu1 %v6757_v34  ;;  %v3912_v1 = vld [vmem:[#allocation2 + $0x238] sm:$0xff] }
 0x192   :  { %2865 = vst.msk [vmem:[#allocation2 + $0x278] sm:$0xff] %vm103_vm0, %v6211_v10  ;;  %v2852_v58 = vpop.f32.mrb[39].mxu1  ;;  %6760 = vmatpush3.bf16.msra.mxu1 %v6757_v34  ;;  %v3911_v0 = vld [vmem:[#allocation2 + $0x230] sm:$0xff] }
 0x193   :  { %2864 = vst.msk [vmem:[#allocation2 + $0x270] sm:$0xff] %vm103_vm0, %v2852_v58  ;;  %v6169_v60 = vpop.f32.mrb[34].mxu0  ;;  %v6761_v13 = vpack.c.bf16 %v3912_v1, %v3911_v0 }
 0x194   :  { %2439 = vst.msk [vmem:[#allocation2 + $0x218] sm:$0xff] %vm103_vm0, %v6169_v60  ;;  %v2426_v47 = vpop.f32.mrb[35].mxu0 }
 0x195   :  { %2438 = vst.msk [vmem:[#allocation2 + $0x210] sm:$0xff] %vm103_vm0, %v2426_v47  ;;  %v4019_v20 = vld [vmem:[#allocation2 + $0x268] sm:$0xff]  ;;  %6762 = vmatprep.subr.bf16.mxu1 %v6761_v13 }
 0x196   :  { %v4018_v30 = vld [vmem:[#allocation2 + $0x260] sm:$0xff]  ;;  %6764 = vmatpush3.bf16.msra.mxu1 %v6761_v13  ;;  %v3906_v56 = vld [vmem:[#allocation2 + $0x208] sm:$0xff] }
 0x197   :  { %v6765_v5 = vpack.c.bf16 %v4019_v20, %v4018_v30  ;;  %v3905_v19 = vld [vmem:[#allocation2 + $0x200] sm:$0xff]  ;;  %6774 = vmatprep.subr.bf16.mxu1 %v6773_v32 }
 0x198   :  { %6346 = vmatprep.mubr.msk.f32.mxu1 %vm103_vm0, %v3905_v19 }
 0x199   :  { %6766 = vmatprep.subr.bf16.mxu0 %v6765_v5  ;;  %v4021_v11 = vld [vmem:[#allocation2 + $0x278] sm:$0xff]  ;;  %6347 = vmatmul.mubr.msk.f32.vlgmr.msra.gmra.mrb[56].mxu1 %vm103_vm0, %v3906_v56 }
 0x19a   :  { %v6194_v38 = vpop.f32.mrb[36].mxu0  ;;  %6768 = vmatpush3.bf16.msra.mxu0 %v6765_v5  ;;  %v4020_v43 = vld [vmem:[#allocation2 + $0x270] sm:$0xff]  ;;  %6776 = vmatpush3.bf16.msra.mxu1 %v6773_v32 }
 0x19b   :  { %2721 = vst.msk [vmem:[#allocation2 + $0x248] sm:$0xff] %vm103_vm0, %v6194_v38  ;;  %v2700_v40 = vpop.f32.mrb[37].mxu0  ;;  %v6769_v51 = vpack.c.bf16 %v4021_v11, %v4020_v43  ;;  %v3908_v36 = vld [vmem:[#allocation2 + $0x218] sm:$0xff]  ;;  %6778 = vmatprep.subr.bf16.mxu1 %v6777_v6 }
 0x19c   :  { %2720 = vst.msk [vmem:[#allocation2 + $0x240] sm:$0xff] %vm103_vm0, %v2700_v40  ;;  %v3907_v55 = vld [vmem:[#allocation2 + $0x210] sm:$0xff] }
 0x19d   :  { %6770 = vmatprep.subr.bf16.mxu0 %v6769_v51  ;;  %6349 = vmatprep.mubr.msk.f32.mxu1 %vm103_vm0, %v3907_v55 }
 0x19e   :  { %v6197_v61 = vpop.f32.mrb[38].mxu0  ;;  %6772 = vmatpush3.bf16.msra.mxu0 %v6769_v51  ;;  %6350 = vmatmul.mubr.msk.f32.gmra.mrb[58].mxu1 %vm103_vm0, %v3908_v36 }
 0x19f   :  { %2723 = vst.msk [vmem:[#allocation2 + $0x258] sm:$0xff] %vm103_vm0, %v6197_v61  ;;  %v2710_v27 = vpop.f32.mrb[39].mxu0  ;;  %6780 = vmatpush3.bf16.msra.mxu1 %v6777_v6 }
 0x1a0   :  { %2722 = vst.msk [vmem:[#allocation2 + $0x250] sm:$0xff] %vm103_vm0, %v2710_v27 }
 0x1a2   :  { %v4015_v31 = vld [vmem:[#allocation2 + $0x248] sm:$0xff]  ;;  %v6222_v62 = vpop.f32.mrb[40].mxu0 }
 0x1a3   :  { %v4014_v3 = vld [vmem:[#allocation2 + $0x240] sm:$0xff]  ;;  %3005 = vst.msk [vmem:[#allocation2 + $0x288] sm:$0xff] %vm103_vm0, %v6222_v62  ;;  %v2984_v7 = vpop.f32.mrb[41].mxu0 }
 0x1a4   :  { %6360 = vmatprep.mubr.msk.f32.mxu0 %vm103_vm0, %v4014_v3  ;;  %3004 = vst.msk [vmem:[#allocation2 + $0x280] sm:$0xff] %vm103_vm0, %v2984_v7 }
 0x1a5   :  { %6361 = vmatmul.mubr.msk.f32.vlgmr.msra.gmra.mrb[60].mxu0 %vm103_vm0, %v4015_v31 }
 0x1a6   :  { %v6225_v17 = vpop.f32.mrb[42].mxu0  ;;  %v4017_v15 = vld [vmem:[#allocation2 + $0x258] sm:$0xff] }
 0x1a7   :  { %3007 = vst.msk [vmem:[#allocation2 + $0x298] sm:$0xff] %vm103_vm0, %v6225_v17  ;;  %v4016_v8 = vld [vmem:[#allocation2 + $0x250] sm:$0xff]  ;;  %v2994_v4 = vpop.f32.mrb[43].mxu0 }
 0x1a8   :  { %6363 = vmatprep.mubr.msk.f32.mxu0 %vm103_vm0, %v4016_v8  ;;  %3006 = vst.msk [vmem:[#allocation2 + $0x290] sm:$0xff] %vm103_vm0, %v2994_v4 }
 0x1a9   :  { %6364 = vmatmul.mubr.msk.f32.gmra.mrb[62].mxu0 %vm103_vm0, %v4017_v15 }
 0x1aa   :  { %v4124_v57 = vld [vmem:[#allocation2 + $0x288] sm:$0xff] }
 0x1ab   :  { %v4123_v26 = vld [vmem:[#allocation2 + $0x280] sm:$0xff] }
 0x1ac   :  { %6374 = vmatprep.mubr.msk.f32.mxu1 %vm103_vm0, %v4123_v26 }
 0x1ad   :  { %6375 = vmatmul.mubr.msk.f32.vlgmr.msra.gmra.mrb[60].mxu1 %vm103_vm0, %v4124_v57 }
 0x1ae   :  { %v4126_v53 = vld [vmem:[#allocation2 + $0x298] sm:$0xff] }
 0x1af   :  { %v4125_v18 = vld [vmem:[#allocation2 + $0x290] sm:$0xff] }
 0x1b0   :  { %6377 = vmatprep.mubr.msk.f32.mxu1 %vm103_vm0, %v4125_v18 }
 0x1b1   :  { %6378 = vmatmul.mubr.msk.f32.gmra.mrb[62].mxu1 %vm103_vm0, %v4126_v53 }
 0x1ff   :  { %v6236_v2 = vpop.f32.mrb[40].mxu1 }
 0x200   :  { %3139 = vst.msk [vmem:[#allocation2 + $0x8] sm:$0xff] %vm103_vm0, %v6236_v2  ;;  %v3119_v52 = vpop.f32.mrb[41].mxu1 }
 0x201   :  { %3138 = vst.msk [vmem:[#allocation2] sm:$0xff] %vm103_vm0, %v3119_v52 }
 0x204   :  { %v6239_v34 = vpop.f32.mrb[42].mxu1 }
 0x205   :  { %3141 = vst.msk [vmem:[#allocation2 + $0x18] sm:$0xff] %vm103_vm0, %v6239_v34  ;;  %v3129_v10 = vpop.f32.mrb[43].mxu1 }
 0x206   :  { %3140 = vst.msk [vmem:[#allocation2 + $0x10] sm:$0xff] %vm103_vm0, %v3129_v10 }
 0x207   :  { %v4233_v63 = vld [vmem:[#allocation2 + $0x8] sm:$0xff] }
 0x208   :  { %v4232_v1 = vld [vmem:[#allocation2] sm:$0xff] }
 0x209   :  { %6388 = vmatprep.mubr.msk.f32.mxu0 %vm103_vm0, %v4232_v1 }
 0x20b   :  { %v6250_v58 = vpop.f32.mrb[44].mxu0 }
 0x20c   :  { %3248 = vst.msk [vmem:[#allocation2 + $0x48] sm:$0xff] %vm103_vm0, %v6250_v58  ;;  %v3228_v0 = vpop.f32.mrb[45].mxu0  ;;  %v4235_v39 = vld [vmem:[#allocation2 + $0x18] sm:$0xff] }
 0x20d   :  { %3247 = vst.msk [vmem:[#allocation2 + $0x40] sm:$0xff] %vm103_vm0, %v3228_v0  ;;  %v4234_v29 = vld [vmem:[#allocation2 + $0x10] sm:$0xff] }
 0x210   :  { %v6253_v60 = vpop.f32.mrb[46].mxu0 }
 0x211   :  { %3250 = vst.msk [vmem:[#allocation2 + $0x58] sm:$0xff] %vm103_vm0, %v6253_v60  ;;  %v3238_v13 = vpop.f32.mrb[47].mxu0 }
 0x212   :  { %3249 = vst.msk [vmem:[#allocation2 + $0x50] sm:$0xff] %vm103_vm0, %v3238_v13 }
 0x213   :  { %v4237_v47 = vld [vmem:[#allocation2 + $0x48] sm:$0xff] }
 0x214   :  { %v4236_v20 = vld [vmem:[#allocation2 + $0x40] sm:$0xff] }
 0x215   :  { %v6781_v30 = vpack.c.bf16 %v4237_v47, %v4236_v20 }
 0x217   :  { %v6264_v56 = vpop.f32.mrb[44].mxu1  ;;  %6782 = vmatprep.subr.bf16.mxu0 %v6781_v30 }
 0x218   :  { %3357 = vst.msk [vmem:[#allocation2 + $0x88] sm:$0xff] %vm103_vm0, %v6264_v56  ;;  %v3337_v35 = vpop.f32.mrb[45].mxu1  ;;  %6784 = vmatpush3.bf16.msra.mxu0 %v6781_v30  ;;  %v4239_v5 = vld [vmem:[#allocation2 + $0x58] sm:$0xff] }
 0x219   :  { %3356 = vst.msk [vmem:[#allocation2 + $0x80] sm:$0xff] %vm103_vm0, %v3337_v35  ;;  %v4238_v19 = vld [vmem:[#allocation2 + $0x50] sm:$0xff] }
 0x21a   :  { %v6785_v59 = vpack.c.bf16 %v4239_v5, %v4238_v19 }
 0x21c   :  { %6786 = vmatprep.subr.bf16.mxu0 %v6785_v59 }
 0x21d   :  { %6788 = vmatpush3.bf16.msra.mxu0 %v6785_v59 }
 0x21f   :  { %v6267_v14 = vpop.f32.mrb[46].mxu1  ;;  %v4342_v54 = vld [vmem:[#allocation2 + $0x88] sm:$0xff] }
 0x220   :  { %3359 = vst.msk [vmem:[#allocation2 + $0x98] sm:$0xff] %vm103_vm0, %v6267_v14  ;;  %v3347_v11 = vpop.f32.mrb[47].mxu1  ;;  %v4341_v12 = vld [vmem:[#allocation2 + $0x80] sm:$0xff]  ;;  %6389 = vmatmul.mubr.msk.f32.vlgmr.msra.gmra.mrb[64].mxu0 %vm103_vm0, %v4233_v63 }
 0x221   :  { %3358 = vst.msk [vmem:[#allocation2 + $0x90] sm:$0xff] %vm103_vm0, %v3347_v11  ;;  %6402 = vmatprep.mubr.msk.f32.mxu1 %vm103_vm0, %v4341_v12  ;;  %6391 = vmatprep.mubr.msk.f32.mxu0 %vm103_vm0, %v4234_v29 }
 0x224   :  { %6392 = vmatmul.mubr.msk.f32.gmra.mrb[66].mxu0 %vm103_vm0, %v4235_v39 }
 0x227   :  { %v6278_v21 = vpop.f32.mrb[48].mxu0  ;;  %v4344_v24 = vld [vmem:[#allocation2 + $0x98] sm:$0xff] }
 0x228   :  { %3466 = vst.msk [vmem:[#allocation2 + $0xc8] sm:$0xff] %vm103_vm0, %v6278_v21  ;;  %v3446_v33 = vpop.f32.mrb[49].mxu0  ;;  %v4343_v48 = vld [vmem:[#allocation2 + $0x90] sm:$0xff] }
 0x229   :  { %3465 = vst.msk [vmem:[#allocation2 + $0xc0] sm:$0xff] %vm103_vm0, %v3446_v33 }
 0x22b   :  { %v6281_v25 = vpop.f32.mrb[50].mxu0 }
 0x22c   :  { %3468 = vst.msk [vmem:[#allocation2 + $0xd8] sm:$0xff] %vm103_vm0, %v6281_v25  ;;  %v3456_v41 = vpop.f32.mrb[51].mxu0 }
 0x22d   :  { %3467 = vst.msk [vmem:[#allocation2 + $0xd0] sm:$0xff] %vm103_vm0, %v3456_v41 }
 0x22f   :  { %v4346_v38 = vld [vmem:[#allocation2 + $0xc8] sm:$0xff] }
 0x230   :  { %v4345_v43 = vld [vmem:[#allocation2 + $0xc0] sm:$0xff] }
 0x231   :  { %v6789_v9 = vpack.c.bf16 %v4346_v38, %v4345_v43 }
 0x232   :  { %v6292_v45 = vpop.f32.mrb[48].mxu1 }
 0x233   :  { %3575 = vst.msk [vmem:[#allocation2 + $0x108] sm:$0xff] %vm103_vm0, %v6292_v45  ;;  %v3555_v49 = vpop.f32.mrb[49].mxu1  ;;  %6790 = vmatprep.subr.bf16.mxu1 %v6789_v9  ;;  %v4348_v16 = vld [vmem:[#allocation2 + $0xd8] sm:$0xff] }
 0x234   :  { %3574 = vst.msk [vmem:[#allocation2 + $0x100] sm:$0xff] %vm103_vm0, %v3555_v49  ;;  %6792 = vmatpush3.bf16.msra.mxu1 %v6789_v9  ;;  %v4347_v23 = vld [vmem:[#allocation2 + $0xd0] sm:$0xff] }
 0x235   :  { %v6793_v37 = vpack.c.bf16 %v4348_v16, %v4347_v23 }
 0x237   :  { %6794 = vmatprep.subr.bf16.mxu1 %v6793_v37 }
 0x238   :  { %6796 = vmatpush3.bf16.msra.mxu1 %v6793_v37 }
 0x239   :  { %v6295_v40 = vpop.f32.mrb[50].mxu1 }
 0x23a   :  { %3577 = vst.msk [vmem:[#allocation2 + $0x118] sm:$0xff] %vm103_vm0, %v6295_v40  ;;  %v3565_v51 = vpop.f32.mrb[51].mxu1  ;;  %v4451_v32 = vld [vmem:[#allocation2 + $0x108] sm:$0xff] }
 0x23b   :  { %3576 = vst.msk [vmem:[#allocation2 + $0x110] sm:$0xff] %vm103_vm0, %v3565_v51  ;;  %v4450_v36 = vld [vmem:[#allocation2 + $0x100] sm:$0xff]  ;;  %6403 = vmatmul.mubr.msk.f32.vlgmr.msra.gmra.mrb[64].mxu1 %vm103_vm0, %v4342_v54 }
 0x23c   :  { %6416 = vmatprep.mubr.msk.f32.mxu0 %vm103_vm0, %v4450_v36  ;;  %6405 = vmatprep.mubr.msk.f32.mxu1 %vm103_vm0, %v4343_v48 }
 0x23f   :  { %6406 = vmatmul.mubr.msk.f32.gmra.mrb[66].mxu1 %vm103_vm0, %v4344_v24 }
 0x241   :  { %v6306_v55 = vpop.f32.mrb[52].mxu0  ;;  %v4453_v4 = vld [vmem:[#allocation2 + $0x118] sm:$0xff] }
 0x242   :  { %3684 = vst.msk [vmem:[#allocation2 + $0x148] sm:$0xff] %vm103_vm0, %v6306_v55  ;;  %v3664_v42 = vpop.f32.mrb[53].mxu0  ;;  %v4452_v8 = vld [vmem:[#allocation2 + $0x110] sm:$0xff] }
 0x243   :  { %3683 = vst.msk [vmem:[#allocation2 + $0x140] sm:$0xff] %vm103_vm0, %v3664_v42 }
 0x248   :  { %v6309_v44 = vpop.f32.mrb[54].mxu0 }
 0x249   :  { %3686 = vst.msk [vmem:[#allocation2 + $0x158] sm:$0xff] %vm103_vm0, %v6309_v44  ;;  %v3674_v61 = vpop.f32.mrb[55].mxu0  ;;  %v4455_v27 = vld [vmem:[#allocation2 + $0x148] sm:$0xff] }
 0x24a   :  { %3685 = vst.msk [vmem:[#allocation2 + $0x150] sm:$0xff] %vm103_vm0, %v3674_v61  ;;  %v4454_v31 = vld [vmem:[#allocation2 + $0x140] sm:$0xff] }
 0x24b   :  { %v6797_v62 = vpack.c.bf16 %v4455_v27, %v4454_v31 }
 0x24d   :  { %6798 = vmatprep.subr.bf16.mxu0 %v6797_v62 }
 0x24e   :  { %6800 = vmatpush3.bf16.msra.mxu0 %v6797_v62 }
 0x24f   :  { %v6320_v3 = vpop.f32.mrb[52].mxu1 }
 0x250   :  { %3793 = vst.msk [vmem:[#allocation2 + $0x188] sm:$0xff] %vm103_vm0, %v6320_v3  ;;  %v3773_v7 = vpop.f32.mrb[53].mxu1  ;;  %v4457_v50 = vld [vmem:[#allocation2 + $0x158] sm:$0xff] }
 0x251   :  { %3792 = vst.msk [vmem:[#allocation2 + $0x180] sm:$0xff] %vm103_vm0, %v3773_v7  ;;  %v4456_v22 = vld [vmem:[#allocation2 + $0x150] sm:$0xff] }
 0x252   :  { %v6801_v46 = vpack.c.bf16 %v4457_v50, %v4456_v22 }
 0x254   :  { %v6323_v17 = vpop.f32.mrb[54].mxu1  ;;  %6802 = vmatprep.subr.bf16.mxu0 %v6801_v46 }
 0x255   :  { %3795 = vst.msk [vmem:[#allocation2 + $0x198] sm:$0xff] %vm103_vm0, %v6323_v17  ;;  %v3783_v15 = vpop.f32.mrb[55].mxu1  ;;  %6804 = vmatpush3.bf16.msra.mxu0 %v6801_v46 }
 0x256   :  { %3794 = vst.msk [vmem:[#allocation2 + $0x190] sm:$0xff] %vm103_vm0, %v3783_v15 }
 0x257   :  { %v4560_v60 = vld [vmem:[#allocation2 + $0x188] sm:$0xff] }
 0x258   :  { %v4559_v28 = vld [vmem:[#allocation2 + $0x180] sm:$0xff]  ;;  %6417 = vmatmul.mubr.msk.f32.vlgmr.msra.gmra.mrb[68].mxu0 %vm103_vm0, %v4451_v32 }
 0x259   :  { %6430 = vmatprep.mubr.msk.f32.mxu1 %vm103_vm0, %v4559_v28  ;;  %6419 = vmatprep.mubr.msk.f32.mxu0 %vm103_vm0, %v4452_v8 }
 0x25c   :  { %v6334_v6 = vpop.f32.mrb[56].mxu0  ;;  %6420 = vmatmul.mubr.msk.f32.gmra.mrb[70].mxu0 %vm103_vm0, %v4453_v4  ;;  %v4562_v30 = vld [vmem:[#allocation2 + $0x198] sm:$0xff] }
 0x25d   :  { %3902 = vst.msk [vmem:[#allocation2 + $0x1c8] sm:$0xff] %vm103_vm0, %v6334_v6  ;;  %v3882_v26 = vpop.f32.mrb[57].mxu0  ;;  %v4561_v13 = vld [vmem:[#allocation2 + $0x190] sm:$0xff] }
 0x25e   :  { %3901 = vst.msk [vmem:[#allocation2 + $0x1c0] sm:$0xff] %vm103_vm0, %v3882_v26 }
 0x260   :  { %v6337_v57 = vpop.f32.mrb[58].mxu0 }
 0x261   :  { %3904 = vst.msk [vmem:[#allocation2 + $0x1d8] sm:$0xff] %vm103_vm0, %v6337_v57  ;;  %v3892_v18 = vpop.f32.mrb[59].mxu0 }
 0x262   :  { %3903 = vst.msk [vmem:[#allocation2 + $0x1d0] sm:$0xff] %vm103_vm0, %v3892_v18 }
 0x264   :  { %v4564_v53 = vld [vmem:[#allocation2 + $0x1c8] sm:$0xff] }
 0x265   :  { %v4563_v2 = vld [vmem:[#allocation2 + $0x1c0] sm:$0xff] }
 0x266   :  { %v6805_v52 = vpack.c.bf16 %v4564_v53, %v4563_v2 }
 0x268   :  { %6806 = vmatprep.subr.bf16.mxu1 %v6805_v52  ;;  %v4566_v34 = vld [vmem:[#allocation2 + $0x1d8] sm:$0xff] }
 0x269   :  { %6808 = vmatpush3.bf16.msra.mxu1 %v6805_v52  ;;  %v4565_v10 = vld [vmem:[#allocation2 + $0x1d0] sm:$0xff] }
 0x26a   :  { %v6809_v1 = vpack.c.bf16 %v4566_v34, %v4565_v10 }
 0x26c   :  { %6810 = vmatprep.subr.bf16.mxu1 %v6809_v1  ;;  %v6348_v58 = vpop.f32.mrb[56].mxu1 }
 0x26d   :  { %6812 = vmatpush3.bf16.msra.mxu1 %v6809_v1  ;;  %4011 = vst.msk [vmem:[#allocation2 + $0x208] sm:$0xff] %vm103_vm0, %v6348_v58  ;;  %v3991_v0 = vpop.f32.mrb[57].mxu1 }
 0x26e   :  { %4010 = vst.msk [vmem:[#allocation2 + $0x200] sm:$0xff] %vm103_vm0, %v3991_v0 }
 0x270   :  { %6431 = vmatmul.mubr.msk.f32.vlgmr.msra.gmra.mrb[68].mxu1 %vm103_vm0, %v4560_v60 }
 0x271   :  { %6433 = vmatprep.mubr.msk.f32.mxu1 %vm103_vm0, %v4561_v13  ;;  %v6351_v47 = vpop.f32.mrb[58].mxu1 }
 0x272   :  { %4013 = vst.msk [vmem:[#allocation2 + $0x218] sm:$0xff] %vm103_vm0, %v6351_v47  ;;  %v4001_v20 = vpop.f32.mrb[59].mxu1 }
 0x273   :  { %4012 = vst.msk [vmem:[#allocation2 + $0x210] sm:$0xff] %vm103_vm0, %v4001_v20 }
 0x274   :  { %6434 = vmatmul.mubr.msk.f32.gmra.mrb[70].mxu1 %vm103_vm0, %v4562_v30  ;;  %v4669_v38 = vld [vmem:[#allocation2 + $0x208] sm:$0xff] }
 0x275   :  { %v4668_v56 = vld [vmem:[#allocation2 + $0x200] sm:$0xff] }
 0x276   :  { %6444 = vmatprep.mubr.msk.f32.mxu0 %vm103_vm0, %v4668_v56 }
 0x278   :  { %v6362_v35 = vpop.f32.mrb[60].mxu0 }
 0x279   :  { %4120 = vst.msk [vmem:[#allocation2 + $0x248] sm:$0xff] %vm103_vm0, %v6362_v35  ;;  %v4100_v5 = vpop.f32.mrb[61].mxu0  ;;  %v4671_v9 = vld [vmem:[#allocation2 + $0x218] sm:$0xff] }
 0x27a   :  { %4119 = vst.msk [vmem:[#allocation2 + $0x240] sm:$0xff] %vm103_vm0, %v4100_v5  ;;  %v4670_v43 = vld [vmem:[#allocation2 + $0x210] sm:$0xff] }
 0x27c   :  { %v6365_v19 = vpop.f32.mrb[62].mxu0 }
 0x27d   :  { %4122 = vst.msk [vmem:[#allocation2 + $0x258] sm:$0xff] %vm103_vm0, %v6365_v19  ;;  %v4110_v59 = vpop.f32.mrb[63].mxu0 }
 0x27e   :  { %4121 = vst.msk [vmem:[#allocation2 + $0x250] sm:$0xff] %vm103_vm0, %v4110_v59  ;;  %v6961_v59 = vmov 0.0|0.0  }
 0x280   :  { %v4673_v14 = vld [vmem:[#allocation2 + $0x248] sm:$0xff]  ;;  %v6376_v12 = vpop.f32.mrb[60].mxu1 }
 0x281   :  { %v4672_v63 = vld [vmem:[#allocation2 + $0x240] sm:$0xff]  ;;  %4229 = vst.msk [vmem:[#allocation2 + $0x288] sm:$0xff] %vm103_vm0, %v6376_v12  ;;  %v4209_v39 = vpop.f32.mrb[61].mxu1 }
 0x282   :  { %v6813_v11 = vpack.c.bf16 %v4673_v14, %v4672_v63  ;;  %4228 = vst.msk [vmem:[#allocation2 + $0x280] sm:$0xff] %vm103_vm0, %v4209_v39  ;;  %v6963_v14 = vmov 0.0  }
 0x284   :  { %6814 = vmatprep.subr.bf16.mxu0 %v6813_v11  ;;  %v4675_v29 = vld [vmem:[#allocation2 + $0x258] sm:$0xff]  ;;  %v6379_v25 = vpop.f32.mrb[62].mxu1 }
 0x285   :  { %6816 = vmatpush3.bf16.msra.mxu0 %v6813_v11  ;;  %v4674_v21 = vld [vmem:[#allocation2 + $0x250] sm:$0xff]  ;;  %4231 = vst.msk [vmem:[#allocation2 + $0x298] sm:$0xff] %vm103_vm0, %v6379_v25  ;;  %v4219_v41 = vpop.f32.mrb[63].mxu1 }
 0x286   :  { %v6817_v33 = vpack.c.bf16 %v4675_v29, %v4674_v21  ;;  %4230 = vst.msk [vmem:[#allocation2 + $0x290] sm:$0xff] %vm103_vm0, %v4219_v41 }
 0x288   :  { %6818 = vmatprep.subr.bf16.mxu0 %v6817_v33  ;;  %v5000_v27 = vld [vmem:[#allocation2 + $0x288] sm:$0xff] }
 0x289   :  { %6820 = vmatpush3.bf16.msra.mxu0 %v6817_v33  ;;  %v4999_v61 = vld [vmem:[#allocation2 + $0x280] sm:$0xff] }
 0x28a   :  { %v6837_v62 = vpack.c.bf16 %v5000_v27, %v4999_v61  ;;  %v5261_v61 = vld [vmem:[%s8175_s3 + $0x8] sm:$0xff] }
 0x28c   :  { %6445 = vmatmul.mubr.msk.f32.vlgmr.msra.gmra.mrb[72].mxu0 %vm103_vm0, %v4669_v38  ;;  %v5002_v7 = vld [vmem:[#allocation2 + $0x298] sm:$0xff] }
 0x28d   :  { %6447 = vmatprep.mubr.msk.f32.mxu0 %vm103_vm0, %v4670_v43  ;;  %v5001_v3 = vld [vmem:[#allocation2 + $0x290] sm:$0xff] }
 0x28e   :  { %v6841_v46 = vpack.c.bf16 %v5002_v7, %v5001_v3  ;;  %v5262_v3 = vld [vmem:[%s8175_s3 + $0x10] sm:$0xff]  ;;  %v5263_v7 = vld [vmem:[%s8175_s3 + $0x18] sm:$0xff] }
 0x290   :  { %6448 = vmatmul.mubr.msk.f32.gmra.mrb[74].mxu0 %vm103_vm0, %v4671_v9 }
 0x2f3   :  { %v6390_v45 = vpop.f32.mrb[64].mxu0 }
 0x2f4   :  { %4338 = vst.msk [vmem:[#allocation2 + $0x8] sm:$0xff] %vm103_vm0, %v6390_v45  ;;  %v4318_v49 = vpop.f32.mrb[65].mxu0 }
 0x2f5   :  { %4337 = vst.msk [vmem:[#allocation2] sm:$0xff] %vm103_vm0, %v4318_v49 }
 0x2f7   :  { %v6393_v16 = vpop.f32.mrb[66].mxu0 }
 0x2f8   :  { %4340 = vst.msk [vmem:[#allocation2 + $0x18] sm:$0xff] %vm103_vm0, %v6393_v16  ;;  %v4328_v23 = vpop.f32.mrb[67].mxu0 }
 0x2f9   :  { %4339 = vst.msk [vmem:[#allocation2 + $0x10] sm:$0xff] %vm103_vm0, %v4328_v23 }
 0x2fb   :  { %v4778_v50 = vld [vmem:[#allocation2 + $0x8] sm:$0xff] }
 0x2fc   :  { %v4777_v37 = vld [vmem:[#allocation2] sm:$0xff] }
 0x2fd   :  { %6458 = vmatprep.mubr.msk.f32.mxu1 %vm103_vm0, %v4777_v37 }
 0x2ff   :  { %v4780_v17 = vld [vmem:[#allocation2 + $0x18] sm:$0xff] }
 0x300   :  { %v4779_v22 = vld [vmem:[#allocation2 + $0x10] sm:$0xff] }
 0x30e   :  { %v6404_v40 = vpop.f32.mrb[64].mxu1 }
 0x30f   :  { %4447 = vst.msk [vmem:[#allocation2 + $0x88] sm:$0xff] %vm103_vm0, %v6404_v40  ;;  %v4427_v51 = vpop.f32.mrb[65].mxu1 }
 0x310   :  { %4446 = vst.msk [vmem:[#allocation2 + $0x80] sm:$0xff] %vm103_vm0, %v4427_v51 }
 0x312   :  { %v6407_v54 = vpop.f32.mrb[66].mxu1 }
 0x313   :  { %4449 = vst.msk [vmem:[#allocation2 + $0x98] sm:$0xff] %vm103_vm0, %v6407_v54  ;;  %v4437_v36 = vpop.f32.mrb[67].mxu1 }
 0x314   :  { %4448 = vst.msk [vmem:[#allocation2 + $0x90] sm:$0xff] %vm103_vm0, %v4437_v36 }
 0x316   :  { %v4782_v48 = vld [vmem:[#allocation2 + $0x88] sm:$0xff] }
 0x317   :  { %v4781_v24 = vld [vmem:[#allocation2 + $0x80] sm:$0xff] }
 0x318   :  { %v6821_v55 = vpack.c.bf16 %v4782_v48, %v4781_v24 }
 0x31a   :  { %6822 = vmatprep.subr.bf16.mxu1 %v6821_v55  ;;  %v4784_v42 = vld [vmem:[#allocation2 + $0x98] sm:$0xff] }
 0x31b   :  { %6824 = vmatpush3.bf16.msra.mxu1 %v6821_v55  ;;  %v4783_v44 = vld [vmem:[#allocation2 + $0x90] sm:$0xff] }
 0x31c   :  { %v6825_v31 = vpack.c.bf16 %v4784_v42, %v4783_v44  ;;  %v5260_v44 = vld [vmem:[%s8175_s3] sm:$0xff] }
 0x31d   :  { %v6858_v27 = vpack.c.bf16 %v5261_v61, %v5260_v44 }
 0x31e   :  { %6826 = vmatprep.subr.bf16.mxu1 %v6825_v31 }
 0x31f   :  { %6828 = vmatpush3.bf16.msra.mxu1 %v6825_v31 }
 0x320   :  { %6838 = vmatprep.subr.bf16.mxu1 %v6837_v62 }
 0x322   :  { %6459 = vmatmul.mubr.msk.f32.vlgmr.msra.gmra.mrb[72].mxu1 %vm103_vm0, %v4778_v50  ;;  %v6861_v50 = vpack.c.bf16 %v5263_v7, %v5262_v3 }
 0x323   :  { %6461 = vmatprep.mubr.msk.f32.mxu1 %vm103_vm0, %v4779_v22  ;;  %6840 = vmatpush3.bf16.msra.mxu1 %v6837_v62 }
 0x324   :  { %6842 = vmatprep.subr.bf16.mxu1 %v6841_v46 }
 0x326   :  { %6462 = vmatmul.mubr.msk.f32.gmra.mrb[74].mxu1 %vm103_vm0, %v4780_v17 }
 0x327   :  { %6844 = vmatpush3.bf16.msra.mxu1 %v6841_v46 }
 0x328   :  { %6851 = vmatprep.subr.bf16.mxu1 %v6961_v59 }
 0x32b   :  { %v6418_v15 = vpop.f32.mrb[68].mxu0 }
 0x32c   :  { %4556 = vst.msk [vmem:[#allocation2 + $0x108] sm:$0xff] %vm103_vm0, %v6418_v15  ;;  %v4536_v32 = vpop.f32.mrb[69].mxu0 }
 0x32d   :  { %4555 = vst.msk [vmem:[#allocation2 + $0x100] sm:$0xff] %vm103_vm0, %v4536_v32 }
 0x32f   :  { %v6421_v28 = vpop.f32.mrb[70].mxu0 }
 0x330   :  { %4558 = vst.msk [vmem:[#allocation2 + $0x118] sm:$0xff] %vm103_vm0, %v6421_v28  ;;  %v4546_v8 = vpop.f32.mrb[71].mxu0 }
 0x331   :  { %4557 = vst.msk [vmem:[#allocation2 + $0x110] sm:$0xff] %vm103_vm0, %v4546_v8 }
 0x333   :  { %v4887_v58 = vld [vmem:[#allocation2 + $0x108] sm:$0xff] }
 0x334   :  { %v4886_v4 = vld [vmem:[#allocation2 + $0x100] sm:$0xff] }
 0x335   :  { %6472 = vmatprep.mubr.msk.f32.mxu0 %vm103_vm0, %v4886_v4 }
 0x337   :  { %v4889_v60 = vld [vmem:[#allocation2 + $0x118] sm:$0xff] }
 0x338   :  { %v4888_v0 = vld [vmem:[#allocation2 + $0x110] sm:$0xff] }
 0x343   :  { %v6432_v6 = vpop.f32.mrb[68].mxu1 }
 0x344   :  { %4665 = vst.msk [vmem:[#allocation2 + $0x188] sm:$0xff] %vm103_vm0, %v6432_v6  ;;  %v4645_v26 = vpop.f32.mrb[69].mxu1 }
 0x345   :  { %4664 = vst.msk [vmem:[#allocation2 + $0x180] sm:$0xff] %vm103_vm0, %v4645_v26 }
 0x347   :  { %v6435_v57 = vpop.f32.mrb[70].mxu1 }
 0x348   :  { %4667 = vst.msk [vmem:[#allocation2 + $0x198] sm:$0xff] %vm103_vm0, %v6435_v57  ;;  %v4655_v18 = vpop.f32.mrb[71].mxu1 }
 0x349   :  { %4666 = vst.msk [vmem:[#allocation2 + $0x190] sm:$0xff] %vm103_vm0, %v4655_v18 }
 0x34b   :  { %v4891_v53 = vld [vmem:[#allocation2 + $0x188] sm:$0xff] }
 0x34c   :  { %v4890_v2 = vld [vmem:[#allocation2 + $0x180] sm:$0xff] }
 0x34d   :  { %v6829_v52 = vpack.c.bf16 %v4891_v53, %v4890_v2 }
 0x34f   :  { %6830 = vmatprep.subr.bf16.mxu0 %v6829_v52  ;;  %v4893_v34 = vld [vmem:[#allocation2 + $0x198] sm:$0xff] }
 0x350   :  { %6832 = vmatpush3.bf16.msra.mxu0 %v6829_v52  ;;  %v4892_v10 = vld [vmem:[#allocation2 + $0x190] sm:$0xff] }
 0x351   :  { %v6833_v1 = vpack.c.bf16 %v4893_v34, %v4892_v10 }
 0x353   :  { %6834 = vmatprep.subr.bf16.mxu0 %v6833_v1 }
 0x354   :  { %6836 = vmatpush3.bf16.msra.mxu0 %v6833_v1 }
 0x355   :  { %6845 = vmatprep.subr.bf16.mxu0 %v6961_v59 }
 0x357   :  { %6473 = vmatmul.mubr.msk.f32.vlgmr.msra.gmra.mrb[76].mxu0 %vm103_vm0, %v4887_v58 }
 0x358   :  { %6475 = vmatprep.mubr.msk.f32.mxu0 %vm103_vm0, %v4888_v0 }
 0x35b   :  { %6476 = vmatmul.mubr.msk.f32.gmra.mrb[78].mxu0 %vm103_vm0, %v4889_v60 }
 0x35c   :  { %6500 = vmatprep.mubr.msk.f32.mxu0 %vm6962_vm1, %v6963_v14 }
 0x35f   :  { %v6446_v13 = vpop.f32.mrb[72].mxu0 }
 0x360   :  { %4774 = vst.msk [vmem:[#allocation2 + $0x208] sm:$0xff] %vm103_vm0, %v6446_v13  ;;  %v4754_v47 = vpop.f32.mrb[73].mxu0 }
 0x361   :  { %4773 = vst.msk [vmem:[#allocation2 + $0x200] sm:$0xff] %vm103_vm0, %v4754_v47 }
 0x363   :  { %v6449_v20 = vpop.f32.mrb[74].mxu0 }
 0x364   :  { %4776 = vst.msk [vmem:[#allocation2 + $0x218] sm:$0xff] %vm103_vm0, %v6449_v20  ;;  %v4764_v30 = vpop.f32.mrb[75].mxu0 }
 0x365   :  { %4775 = vst.msk [vmem:[#allocation2 + $0x210] sm:$0xff] %vm103_vm0, %v4764_v30 }
 0x367   :  { %v4996_v56 = vld [vmem:[#allocation2 + $0x208] sm:$0xff] }
 0x368   :  { %v4995_v35 = vld [vmem:[#allocation2 + $0x200] sm:$0xff] }
 0x369   :  { %6486 = vmatprep.mubr.msk.f32.mxu1 %vm103_vm0, %v4995_v35 }
 0x36a   :  { %6487 = vmatmul.mubr.msk.f32.vlgmr.msra.gmra.mrb[76].mxu1 %vm103_vm0, %v4996_v56 }
 0x36b   :  { %v4998_v5 = vld [vmem:[#allocation2 + $0x218] sm:$0xff] }
 0x36c   :  { %v4997_v19 = vld [vmem:[#allocation2 + $0x210] sm:$0xff] }
 0x36d   :  { %6489 = vmatprep.mubr.msk.f32.mxu1 %vm103_vm0, %v4997_v19 }
 0x36e   :  { %6490 = vmatmul.mubr.msk.f32.gmra.mrb[78].mxu1 %vm103_vm0, %v4998_v5 }
 0x36f   :  { %6511 = vmatprep.mubr.msk.f32.mxu1 %vm6962_vm1, %v6963_v14 }
 0x3f5   :  { %v6460_v63 = vpop.f32.mrb[72].mxu1 }
 0x3f6   :  { %4883 = vst.msk [vmem:[#allocation2 + $0x8] sm:$0xff] %vm103_vm0, %v6460_v63  ;;  %v4863_v11 = vpop.f32.mrb[73].mxu1 }
 0x3f7   :  { %4882 = vst.msk [vmem:[#allocation2] sm:$0xff] %vm103_vm0, %v4863_v11 }
 0x3f9   :  { %v6463_v12 = vpop.f32.mrb[74].mxu1 }
 0x3fa   :  { %4885 = vst.msk [vmem:[#allocation2 + $0x18] sm:$0xff] %vm103_vm0, %v6463_v12  ;;  %v4873_v29 = vpop.f32.mrb[75].mxu1 }
 0x3fb   :  { %4884 = vst.msk [vmem:[#allocation2 + $0x10] sm:$0xff] %vm103_vm0, %v4873_v29 }
 0x3fe   :  { %v5104_v16 = vld [vmem:[#allocation2] sm:$0xff] }
 0x42a   :  { %v6474_v39 = vpop.f32.mrb[76].mxu0 }
 0x42b   :  { %4992 = vst.msk [vmem:[#allocation2 + $0x108] sm:$0xff] %vm103_vm0, %v6474_v39  ;;  %v4972_v21 = vpop.f32.mrb[77].mxu0 }
 0x42c   :  { %4991 = vst.msk [vmem:[#allocation2 + $0x100] sm:$0xff] %vm103_vm0, %v4972_v21 }
 0x42e   :  { %v6477_v33 = vpop.f32.mrb[78].mxu0 }
 0x42f   :  { %4994 = vst.msk [vmem:[#allocation2 + $0x118] sm:$0xff] %vm103_vm0, %v6477_v33  ;;  %v4982_v25 = vpop.f32.mrb[79].mxu0 }
 0x430   :  { %4993 = vst.msk [vmem:[#allocation2 + $0x110] sm:$0xff] %vm103_vm0, %v4982_v25 }
 0x432   :  { %v5106_v41 = vld [vmem:[#allocation2 + $0x108] sm:$0xff] }
 0x433   :  { %v5105_v38 = vld [vmem:[#allocation2 + $0x100] sm:$0xff] }
 0x434   :  { %v6846_v43 = vpack.c.bf16 %v5106_v41, %v5105_v38 }
 0x436   :  { %6847 = vmatpush3.bf16.msra.mxu0 %v6846_v43  ;;  %v5108_v9 = vld [vmem:[#allocation2 + $0x118] sm:$0xff] }
 0x437   :  { %6848 = vmatprep.subr.bf16.mxu0 %v6961_v59  ;;  %v5107_v45 = vld [vmem:[#allocation2 + $0x110] sm:$0xff] }
 0x438   :  { %v6849_v49 = vpack.c.bf16 %v5108_v9, %v5107_v45 }
 0x43a   :  { %6850 = vmatpush3.bf16.msra.mxu0 %v6849_v49 }
 0x43b   :  { %6857 = vmatprep.subr.bf16.mxu0 %v6961_v59 }
 0x43d   :  { %6501 = vmatmul.mubr.msk.f32.vlgmr.msra.gmra.mrb[80].mxu0 %vm103_vm0, %v5104_v16  ;;  %v6488_v23 = vpop.f32.mrb[76].mxu1 }
 0x43e   :  { %5101 = vst.msk [vmem:[#allocation2 + $0x208] sm:$0xff] %vm103_vm0, %v6488_v23  ;;  %v5081_v37 = vpop.f32.mrb[77].mxu1  ;;  %6522 = vmatprep.mubr.msk.f32.mxu0 %vm6962_vm1, %v6963_v14  ;;  %6859 = vmatpush3.bf16.msra.mxu0 %v6858_v27 }
 0x43f   :  { %5100 = vst.msk [vmem:[#allocation2 + $0x200] sm:$0xff] %vm103_vm0, %v5081_v37  ;;  %6860 = vmatprep.subr.bf16.mxu0 %v6961_v59 }
 0x441   :  { %v6491_v40 = vpop.f32.mrb[78].mxu1 }
 0x442   :  { %5103 = vst.msk [vmem:[#allocation2 + $0x218] sm:$0xff] %vm103_vm0, %v6491_v40  ;;  %v5091_v51 = vpop.f32.mrb[79].mxu1  ;;  %6862 = vmatpush3.bf16.msra.mxu0 %v6861_v50 }
 0x443   :  { %5102 = vst.msk [vmem:[#allocation2 + $0x210] sm:$0xff] %vm103_vm0, %v5091_v51 }
 0x445   :  { %v5183_v54 = vld [vmem:[#allocation2 + $0x208] sm:$0xff] }
 0x446   :  { %v5182_v36 = vld [vmem:[#allocation2 + $0x200] sm:$0xff] }
 0x447   :  { %v6852_v48 = vpack.c.bf16 %v5183_v54, %v5182_v36 }
 0x449   :  { %6853 = vmatpush3.bf16.msra.mxu1 %v6852_v48  ;;  %v5185_v24 = vld [vmem:[#allocation2 + $0x218] sm:$0xff] }
 0x44a   :  { %6854 = vmatprep.subr.bf16.mxu1 %v6961_v59  ;;  %v5184_v55 = vld [vmem:[#allocation2 + $0x210] sm:$0xff] }
 0x44b   :  { %v6855_v42 = vpack.c.bf16 %v5185_v24, %v5184_v55 }
 0x44d   :  { %6856 = vmatpush3.bf16.msra.mxu1 %v6855_v42 }
 0x510   :  { %v5178_v31 = vpop.f32.mrb[80].mxu0 }
 0x511   :  { %v6502_v62 = vpop.f32.mrb[81].mxu0  ;;  %6512 = vmatmul.mubr.msk.f32.vlgmr.msra.gmra.mrb[80].mxu1 %vm103_vm0, %v5178_v31 }
 0x5e4   :  { %v5255_v22 = vpop.f32.mrb[80].mxu1 }
 0x5e5   :  { %v5259_v46 = vmul.f32 %v5255_v22, %v5255_v22  ;;  %v6513_v17 = vpop.f32.mrb[81].mxu1 }
 0x5e7   :  { %6523 = vmatmul.mubr.msk.f32.vlgmr.msra.gmra.mrb[82].mxu0 %vm103_vm0, %v5259_v46 }
 0x6ba   :  { %v5333_v15 = vpop.f32.mrb[82].mxu0 }
 0x6bb   :  { %v6524_v32 = vpop.f32.mrb[83].mxu0  ;;  %5338 = vst.msk [vmem:[#allocation10] sm:$0x1] %vm5337_vm2, %v5333_v15 }
 0x6bc   :  { %6937 = shalt.err (!%p6934_p8)
}
 0x6bd   :  { %s6938_s2 = scalar_lea.hbm %s8176_s4, 16 }
 0x6be   :  { %p6939_p9 = scmp.ne.s32.totalorder %s8176_s4, %s6938_s2  ;;  %p6942_p10 = scmp.lt.u32.totalorder %s6938_s2, %s8176_s4 }
 0x6c0   :  { %p6944_p11 = pnand %p6942_p10, %p6939_p9 }
 0x6c2   :  { %6947 = shalt.err (!%p6944_p11)
}
 0x6c3   :  { %5348 = dma.vmem_to_hbm [thread:$0]  %s5346_s13, 16, %s8176_s4, [#allocation5]  }
 0x6c4   :  { %6954 = dma.done.wait [#allocation5], 16  }
 0x6c5   :  { %6955 = vsyncadd [#allocation5], 4294967280 }
 0x6c6   :  { %5352 = vsyncpa [#allocation4], 1 }
 0x6c7   :  { %5353 = vsyncpa [#allocation5], 1 }
 0x6c8   :  { %5354 = vsyncpa [#allocation6], 1 }
 0x6c9   :  { %5355 = vsyncpa [#allocation8], 1 }

</bundles_post_ra>
